<compile_context>
chip_gen: v6e
topology: v6e:2x2x1
jax: 0.10.0
libtpu: 0.0.40
codegen_flags: <defaults>
</compile_context>

<pallas_src>
import functools

import jax
import jax.numpy as jnp
from jax.experimental import pallas as pl
from jax.experimental.pallas import tpu as pltpu

# Layer sizes straight from the nn.Module __init__.
ENC_DIMS = [500, 256, 128, 78, 64, 32, 30]
DEC_DIMS = [30, 32, 64, 78, 128, 256, 500]
ALL_DIMS = list(zip(ENC_DIMS[:-1], ENC_DIMS[1:])) + list(zip(DEC_DIMS[:-1], DEC_DIMS[1:]))
N_LAYERS = len(ALL_DIMS)          # 12 Linear layers total
ENC_LAST = len(ENC_DIMS) - 2      # index 5: Linear(32, 30)  -> encoded output, no ReLU
DEC_LAST = N_LAYERS - 1           # index 11: Linear(256,500) -> decoded output, no ReLU


def _pad128(n):
    return ((n + 127) // 128) * 128


def _round_up(n, m):
    return ((n + m - 1) // m) * m


ENC_PAD = [_pad128(d) for d in ENC_DIMS]          # [512, 256, 128, 128, 128, 128, 128]
DEC_PAD = [_pad128(d) for d in DEC_DIMS]          # [128, 128, 128, 128, 128, 256, 512]
PAD_DIMS = list(zip(ENC_PAD[:-1], ENC_PAD[1:])) + list(zip(DEC_PAD[:-1], DEC_PAD[1:]))

IN_DIM = ENC_DIMS[0]       # 500
IN_PAD = ENC_PAD[0]        # 512
ENC_OUT = ENC_DIMS[-1]     # 30
DEC_OUT = DEC_DIMS[-1]     # 500

MAX_TB = 512               # biggest batch tile: ~85% of HBM roofline, tiny VMEM footprint


def choose_tb(batch):
    """Large tiles amortize per-step overhead; keep >=2 grid steps for v7x megacore."""
    if batch <= 16:
        return _round_up(batch, 8)
    half = _round_up(-(-batch // 2), 8)
    return min(MAX_TB, half)


def autoencoder_kernel(x_ref, *refs):
    """One batch tile: all 12 matmuls + bias + ReLU, activations kept in bf16 vregs."""
    param_refs = refs[:-2]            # 12 * (W bf16 [in_pad, out_pad], b f32 [1, out_pad])
    enc_ref, dec_ref = refs[-2], refs[-1]

    h = x_ref[...]                    # bf16 [tb, 512] (padded lanes are exactly zero)
    for layer in range(N_LAYERS):
        w = param_refs[2 * layer][...]        # bf16 [in_pad, out_pad]
        b = param_refs[2 * layer + 1][...]    # f32  [1, out_pad]
        # bf16 MXU matmul with f32 accumulation; bias-add / ReLU in f32.
        y = jnp.dot(h, w, preferred_element_type=jnp.float32) + b
        if layer == ENC_LAST:
            enc_ref[...] = y[:, :ENC_OUT]     # encoded (no ReLU), true width 30, f32
            h = y.astype(jnp.bfloat16)        # feed decoder in bf16 (padded cols stay 0)
        elif layer == DEC_LAST:
            dec_ref[...] = y[:, :DEC_OUT]     # decoded (no ReLU), true width 500, f32
        else:
            h = jnp.maximum(y, 0.0).astype(jnp.bfloat16)   # fused bias+ReLU+downcast


@functools.partial(jax.jit, static_argnames=("tb",))
def _autoencoder_call(x, padded_params, tb):
    batch = x.shape[0]
    # Single cheap pass: cast to bf16 and zero-pad features 500 -> 512.
    x_p = jnp.pad(x.astype(jnp.bfloat16), ((0, 0), (0, IN_PAD - IN_DIM)))

    x_spec = pl.BlockSpec((tb, IN_PAD), lambda i: (i, 0))
    param_specs = []
    for (p_in, p_out) in PAD_DIMS:
        # Constant block index -> params fetched once, resident across grid steps.
        param_specs.append(pl.BlockSpec((p_in, p_out), lambda i: (0, 0)))
        param_specs.append(pl.BlockSpec((1, p_out), lambda i: (0, 0)))
    enc_spec = pl.BlockSpec((tb, ENC_OUT), lambda i: (i, 0))   # full last dim -> legal
    dec_spec = pl.BlockSpec((tb, DEC_OUT), lambda i: (i, 0))   # full last dim -> legal

    encoded, decoded = pl.pallas_call(
        autoencoder_kernel,
        grid=(pl.cdiv(batch, tb),),
        in_specs=[x_spec] + param_specs,
        out_specs=(enc_spec, dec_spec),
        out_shape=(
            jax.ShapeDtypeStruct((batch, ENC_OUT), jnp.float32),   # encoded, exact shape
            jax.ShapeDtypeStruct((batch, DEC_OUT), jnp.float32),   # decoded, exact shape
        ),
        compiler_params=pltpu.CompilerParams(
            dimension_semantics=("parallel",),     # v7x shards batch tiles over 2 TCs
            vmem_limit_bytes=32 * 1024 * 1024,
        ),
    )(x_p, *padded_params)
    return encoded, decoded


def autoencoder_forward(x, padded_params):
    """x: [B, 500] f32. Returns (encoded [B,30] f32, decoded [B,500] f32)."""
    return _autoencoder_call(x, padded_params, choose_tb(x.shape[0]))


def init_params(key):
    """Deterministic init mimicking nn.Linear's U(-1/sqrt(in), 1/sqrt(in)); W stored [in,out]."""
    params = []
    for (d_in, d_out) in ALL_DIMS:
        key, kw, kb = jax.random.split(key, 3)
        bound = 1.0 / jnp.sqrt(jnp.float32(d_in))
        w = jax.random.uniform(kw, (d_in, d_out), jnp.float32, -bound, bound)
        b = jax.random.uniform(kb, (1, d_out), jnp.float32, -bound, bound)
        params += [w, b]
    return params


def pad_params(params):
    """Zero-pad every W/b to 128-multiples; cast W to bf16 once on the host side."""
    padded = []
    for layer, ((d_in, d_out), (p_in, p_out)) in enumerate(zip(ALL_DIMS, PAD_DIMS)):
        w, b = params[2 * layer], params[2 * layer + 1]
        w_p = jnp.zeros((p_in, p_out), jnp.float32).at[:d_in, :d_out].set(w)
        b_p = jnp.zeros((1, p_out), jnp.float32).at[:, :d_out].set(b)
        padded += [w_p.astype(jnp.bfloat16), b_p]
    return padded


def reference_forward(x, params):
    """Pure-JAX reference with the same numerics (bf16 matmul, f32 accumulate/elementwise)."""
    h = x
    enc = None
    for layer in range(N_LAYERS):
        w, b = params[2 * layer], params[2 * layer + 1]
        h = jnp.dot(h.astype(jnp.bfloat16), w.astype(jnp.bfloat16),
                    preferred_element_type=jnp.float32) + b
        if layer == ENC_LAST:
            enc = h
        elif layer == DEC_LAST:
            pass
        else:
            h = jnp.maximum(h, 0.0)
    return enc, h


if __name__ == "__main__":
    key = jax.random.PRNGKey(0)
    key, kx = jax.random.split(key)
    batch = 512                                            # -> tb=256, 2 grid steps
    x = jax.random.normal(kx, (batch, 500), jnp.float32)
    params = init_params(key)
    padded_params = pad_params(params)

    encoded, decoded = autoencoder_forward(x, padded_params)
    jax.block_until_ready((encoded, decoded))

    # sanity check against a pure-JAX reference with matching precision
    enc_ref, dec_ref = reference_forward(x, params)
    assert encoded.shape == (batch, 30) and decoded.shape == (batch, 500)
    assert jnp.allclose(encoded, enc_ref, atol=2e-3, rtol=2e-3), \
        float(jnp.max(jnp.abs(encoded - enc_ref)))
    assert jnp.allclose(decoded, dec_ref, atol=2e-3, rtol=2e-3), \
        float(jnp.max(jnp.abs(decoded - dec_ref)))

    print("KERNEL_OK")
</pallas_src>

<mosaic_0001>
module attributes {stable_mosaic.version = 11 : i64} {
  func.func @autoencoder_kernel(%arg0: i32, %arg1: memref<256x512xbf16, #tpu.memory_space<vmem>>, %arg2: memref<512x256xbf16, #tpu.memory_space<vmem>>, %arg3: memref<1x256xf32, #tpu.memory_space<vmem>>, %arg4: memref<256x128xbf16, #tpu.memory_space<vmem>>, %arg5: memref<1x128xf32, #tpu.memory_space<vmem>>, %arg6: memref<128x128xbf16, #tpu.memory_space<vmem>>, %arg7: memref<1x128xf32, #tpu.memory_space<vmem>>, %arg8: memref<128x128xbf16, #tpu.memory_space<vmem>>, %arg9: memref<1x128xf32, #tpu.memory_space<vmem>>, %arg10: memref<128x128xbf16, #tpu.memory_space<vmem>>, %arg11: memref<1x128xf32, #tpu.memory_space<vmem>>, %arg12: memref<128x128xbf16, #tpu.memory_space<vmem>>, %arg13: memref<1x128xf32, #tpu.memory_space<vmem>>, %arg14: memref<128x128xbf16, #tpu.memory_space<vmem>>, %arg15: memref<1x128xf32, #tpu.memory_space<vmem>>, %arg16: memref<128x128xbf16, #tpu.memory_space<vmem>>, %arg17: memref<1x128xf32, #tpu.memory_space<vmem>>, %arg18: memref<128x128xbf16, #tpu.memory_space<vmem>>, %arg19: memref<1x128xf32, #tpu.memory_space<vmem>>, %arg20: memref<128x128xbf16, #tpu.memory_space<vmem>>, %arg21: memref<1x128xf32, #tpu.memory_space<vmem>>, %arg22: memref<128x256xbf16, #tpu.memory_space<vmem>>, %arg23: memref<1x256xf32, #tpu.memory_space<vmem>>, %arg24: memref<256x512xbf16, #tpu.memory_space<vmem>>, %arg25: memref<1x512xf32, #tpu.memory_space<vmem>>, %arg26: memref<256x30xf32, #tpu.memory_space<vmem>>, %arg27: memref<256x500xf32, #tpu.memory_space<vmem>>) attributes {dimension_semantics = [#tpu.dimension_semantics<parallel>], iteration_bounds = array<i64: 2>, scalar_prefetch = 0 : i64, scratch_operands = 0 : i64, tpu.core_type = #tpu.core_type<tc>, window_params = [{transform_indices = @transform_0, window_bounds = array<i64: 256, 512>}, {pipeline_mode = #tpu.pipeline_mode<synchronous>, transform_indices = @transform_1, window_bounds = array<i64: 512, 256>}, {pipeline_mode = #tpu.pipeline_mode<synchronous>, transform_indices = @transform_2, window_bounds = array<i64: 1, 256>}, {pipeline_mode = #tpu.pipeline_mode<synchronous>, transform_indices = @transform_3, window_bounds = array<i64: 256, 128>}, {pipeline_mode = #tpu.pipeline_mode<synchronous>, transform_indices = @transform_4, window_bounds = array<i64: 1, 128>}, {pipeline_mode = #tpu.pipeline_mode<synchronous>, transform_indices = @transform_5, window_bounds = array<i64: 128, 128>}, {pipeline_mode = #tpu.pipeline_mode<synchronous>, transform_indices = @transform_6, window_bounds = array<i64: 1, 128>}, {pipeline_mode = #tpu.pipeline_mode<synchronous>, transform_indices = @transform_7, window_bounds = array<i64: 128, 128>}, {pipeline_mode = #tpu.pipeline_mode<synchronous>, transform_indices = @transform_8, window_bounds = array<i64: 1, 128>}, {pipeline_mode = #tpu.pipeline_mode<synchronous>, transform_indices = @transform_9, window_bounds = array<i64: 128, 128>}, {pipeline_mode = #tpu.pipeline_mode<synchronous>, transform_indices = @transform_10, window_bounds = array<i64: 1, 128>}, {pipeline_mode = #tpu.pipeline_mode<synchronous>, transform_indices = @transform_11, window_bounds = array<i64: 128, 128>}, {pipeline_mode = #tpu.pipeline_mode<synchronous>, transform_indices = @transform_12, window_bounds = array<i64: 1, 128>}, {pipeline_mode = #tpu.pipeline_mode<synchronous>, transform_indices = @transform_13, window_bounds = array<i64: 128, 128>}, {pipeline_mode = #tpu.pipeline_mode<synchronous>, transform_indices = @transform_14, window_bounds = array<i64: 1, 128>}, {pipeline_mode = #tpu.pipeline_mode<synchronous>, transform_indices = @transform_15, window_bounds = array<i64: 128, 128>}, {pipeline_mode = #tpu.pipeline_mode<synchronous>, transform_indices = @transform_16, window_bounds = array<i64: 1, 128>}, {pipeline_mode = #tpu.pipeline_mode<synchronous>, transform_indices = @transform_17, window_bounds = array<i64: 128, 128>}, {pipeline_mode = #tpu.pipeline_mode<synchronous>, transform_indices = @transform_18, window_bounds = array<i64: 1, 128>}, {pipeline_mode = #tpu.pipeline_mode<synchronous>, transform_indices = @transform_19, window_bounds = array<i64: 128, 128>}, {pipeline_mode = #tpu.pipeline_mode<synchronous>, transform_indices = @transform_20, window_bounds = array<i64: 1, 128>}, {pipeline_mode = #tpu.pipeline_mode<synchronous>, transform_indices = @transform_21, window_bounds = array<i64: 128, 256>}, {pipeline_mode = #tpu.pipeline_mode<synchronous>, transform_indices = @transform_22, window_bounds = array<i64: 1, 256>}, {pipeline_mode = #tpu.pipeline_mode<synchronous>, transform_indices = @transform_23, window_bounds = array<i64: 256, 512>}, {pipeline_mode = #tpu.pipeline_mode<synchronous>, transform_indices = @transform_24, window_bounds = array<i64: 1, 512>}, {transform_indices = @transform_25, window_bounds = array<i64: 256, 30>}, {transform_indices = @transform_26, window_bounds = array<i64: 256, 500>}]} {
    %c0 = arith.constant 0 : index
    %c0_0 = arith.constant 0 : index
    %0 = vector.load %arg1[%c0, %c0_0] : memref<256x512xbf16, #tpu.memory_space<vmem>>, vector<256x512xbf16>
    %c0_1 = arith.constant 0 : index
    %c0_2 = arith.constant 0 : index
    %1 = vector.load %arg2[%c0_1, %c0_2] : memref<512x256xbf16, #tpu.memory_space<vmem>>, vector<512x256xbf16>
    %c0_3 = arith.constant 0 : index
    %c0_4 = arith.constant 0 : index
    %2 = vector.load %arg3[%c0_3, %c0_4] : memref<1x256xf32, #tpu.memory_space<vmem>>, vector<1x256xf32>
    %cst = arith.constant dense<0.000000e+00> : vector<256x256xf32>
    %3 = tpu.matmul %0, %1, %cst {dimension_numbers = #tpu.dot_dimension_numbers<[1], [0], [0], [1], [0, 0, 1, 1], [], []>} : vector<256x512xbf16>, vector<512x256xbf16>, vector<256x256xf32> -> vector<256x256xf32>
    %4 = vector.broadcast %2 : vector<1x256xf32> to vector<256x256xf32>
    %5 = arith.addf %3, %4 : vector<256x256xf32>
    %cst_5 = arith.constant 0.000000e+00 : f32
    %6 = vector.broadcast %cst_5 : f32 to vector<256x256xf32>
    %7 = arith.maximumf %5, %6 : vector<256x256xf32>
    %8 = arith.truncf %7 : vector<256x256xf32> to vector<256x256xbf16>
    %c0_6 = arith.constant 0 : index
    %c0_7 = arith.constant 0 : index
    %9 = vector.load %arg4[%c0_6, %c0_7] : memref<256x128xbf16, #tpu.memory_space<vmem>>, vector<256x128xbf16>
    %c0_8 = arith.constant 0 : index
    %c0_9 = arith.constant 0 : index
    %10 = vector.load %arg5[%c0_8, %c0_9] : memref<1x128xf32, #tpu.memory_space<vmem>>, vector<1x128xf32>
    %cst_10 = arith.constant dense<0.000000e+00> : vector<256x128xf32>
    %11 = tpu.matmul %8, %9, %cst_10 {dimension_numbers = #tpu.dot_dimension_numbers<[1], [0], [0], [1], [0, 0, 1, 1], [], []>} : vector<256x256xbf16>, vector<256x128xbf16>, vector<256x128xf32> -> vector<256x128xf32>
    %12 = vector.broadcast %10 : vector<1x128xf32> to vector<256x128xf32>
    %13 = arith.addf %11, %12 : vector<256x128xf32>
    %cst_11 = arith.constant 0.000000e+00 : f32
    %14 = vector.broadcast %cst_11 : f32 to vector<256x128xf32>
    %15 = arith.maximumf %13, %14 : vector<256x128xf32>
    %16 = arith.truncf %15 : vector<256x128xf32> to vector<256x128xbf16>
    %c0_12 = arith.constant 0 : index
    %c0_13 = arith.constant 0 : index
    %17 = vector.load %arg6[%c0_12, %c0_13] : memref<128x128xbf16, #tpu.memory_space<vmem>>, vector<128x128xbf16>
    %c0_14 = arith.constant 0 : index
    %c0_15 = arith.constant 0 : index
    %18 = vector.load %arg7[%c0_14, %c0_15] : memref<1x128xf32, #tpu.memory_space<vmem>>, vector<1x128xf32>
    %cst_16 = arith.constant dense<0.000000e+00> : vector<256x128xf32>
    %19 = tpu.matmul %16, %17, %cst_16 {dimension_numbers = #tpu.dot_dimension_numbers<[1], [0], [0], [1], [0, 0, 1, 1], [], []>} : vector<256x128xbf16>, vector<128x128xbf16>, vector<256x128xf32> -> vector<256x128xf32>
    %20 = vector.broadcast %18 : vector<1x128xf32> to vector<256x128xf32>
    %21 = arith.addf %19, %20 : vector<256x128xf32>
    %cst_17 = arith.constant 0.000000e+00 : f32
    %22 = vector.broadcast %cst_17 : f32 to vector<256x128xf32>
    %23 = arith.maximumf %21, %22 : vector<256x128xf32>
    %24 = arith.truncf %23 : vector<256x128xf32> to vector<256x128xbf16>
    %c0_18 = arith.constant 0 : index
    %c0_19 = arith.constant 0 : index
    %25 = vector.load %arg8[%c0_18, %c0_19] : memref<128x128xbf16, #tpu.memory_space<vmem>>, vector<128x128xbf16>
    %c0_20 = arith.constant 0 : index
    %c0_21 = arith.constant 0 : index
    %26 = vector.load %arg9[%c0_20, %c0_21] : memref<1x128xf32, #tpu.memory_space<vmem>>, vector<1x128xf32>
    %cst_22 = arith.constant dense<0.000000e+00> : vector<256x128xf32>
    %27 = tpu.matmul %24, %25, %cst_22 {dimension_numbers = #tpu.dot_dimension_numbers<[1], [0], [0], [1], [0, 0, 1, 1], [], []>} : vector<256x128xbf16>, vector<128x128xbf16>, vector<256x128xf32> -> vector<256x128xf32>
    %28 = vector.broadcast %26 : vector<1x128xf32> to vector<256x128xf32>
    %29 = arith.addf %27, %28 : vector<256x128xf32>
    %cst_23 = arith.constant 0.000000e+00 : f32
    %30 = vector.broadcast %cst_23 : f32 to vector<256x128xf32>
    %31 = arith.maximumf %29, %30 : vector<256x128xf32>
    %32 = arith.truncf %31 : vector<256x128xf32> to vector<256x128xbf16>
    %c0_24 = arith.constant 0 : index
    %c0_25 = arith.constant 0 : index
    %33 = vector.load %arg10[%c0_24, %c0_25] : memref<128x128xbf16, #tpu.memory_space<vmem>>, vector<128x128xbf16>
    %c0_26 = arith.constant 0 : index
    %c0_27 = arith.constant 0 : index
    %34 = vector.load %arg11[%c0_26, %c0_27] : memref<1x128xf32, #tpu.memory_space<vmem>>, vector<1x128xf32>
    %cst_28 = arith.constant dense<0.000000e+00> : vector<256x128xf32>
    %35 = tpu.matmul %32, %33, %cst_28 {dimension_numbers = #tpu.dot_dimension_numbers<[1], [0], [0], [1], [0, 0, 1, 1], [], []>} : vector<256x128xbf16>, vector<128x128xbf16>, vector<256x128xf32> -> vector<256x128xf32>
    %36 = vector.broadcast %34 : vector<1x128xf32> to vector<256x128xf32>
    %37 = arith.addf %35, %36 : vector<256x128xf32>
    %cst_29 = arith.constant 0.000000e+00 : f32
    %38 = vector.broadcast %cst_29 : f32 to vector<256x128xf32>
    %39 = arith.maximumf %37, %38 : vector<256x128xf32>
    %40 = arith.truncf %39 : vector<256x128xf32> to vector<256x128xbf16>
    %c0_30 = arith.constant 0 : index
    %c0_31 = arith.constant 0 : index
    %41 = vector.load %arg12[%c0_30, %c0_31] : memref<128x128xbf16, #tpu.memory_space<vmem>>, vector<128x128xbf16>
    %c0_32 = arith.constant 0 : index
    %c0_33 = arith.constant 0 : index
    %42 = vector.load %arg13[%c0_32, %c0_33] : memref<1x128xf32, #tpu.memory_space<vmem>>, vector<1x128xf32>
    %cst_34 = arith.constant dense<0.000000e+00> : vector<256x128xf32>
    %43 = tpu.matmul %40, %41, %cst_34 {dimension_numbers = #tpu.dot_dimension_numbers<[1], [0], [0], [1], [0, 0, 1, 1], [], []>} : vector<256x128xbf16>, vector<128x128xbf16>, vector<256x128xf32> -> vector<256x128xf32>
    %44 = vector.broadcast %42 : vector<1x128xf32> to vector<256x128xf32>
    %45 = arith.addf %43, %44 : vector<256x128xf32>
    %46 = vector.extract_strided_slice %45 {offsets = [0, 0], sizes = [256, 30], strides = [1, 1]} : vector<256x128xf32> to vector<256x30xf32>
    %c0_35 = arith.constant 0 : index
    %c0_36 = arith.constant 0 : index
    %47 = vector.load %arg26[%c0_35, %c0_36] : memref<256x30xf32, #tpu.memory_space<vmem>>, vector<256x30xf32>
    tpu.vector_store %arg26[%c0_35, %c0_36], %46 {strides = array<i32>} : memref<256x30xf32, #tpu.memory_space<vmem>>, vector<256x30xf32>,
    %48 = arith.truncf %45 : vector<256x128xf32> to vector<256x128xbf16>
    %c0_37 = arith.constant 0 : index
    %c0_38 = arith.constant 0 : index
    %49 = vector.load %arg14[%c0_37, %c0_38] : memref<128x128xbf16, #tpu.memory_space<vmem>>, vector<128x128xbf16>
    %c0_39 = arith.constant 0 : index
    %c0_40 = arith.constant 0 : index
    %50 = vector.load %arg15[%c0_39, %c0_40] : memref<1x128xf32, #tpu.memory_space<vmem>>, vector<1x128xf32>
    %cst_41 = arith.constant dense<0.000000e+00> : vector<256x128xf32>
    %51 = tpu.matmul %48, %49, %cst_41 {dimension_numbers = #tpu.dot_dimension_numbers<[1], [0], [0], [1], [0, 0, 1, 1], [], []>} : vector<256x128xbf16>, vector<128x128xbf16>, vector<256x128xf32> -> vector<256x128xf32>
    %52 = vector.broadcast %50 : vector<1x128xf32> to vector<256x128xf32>
    %53 = arith.addf %51, %52 : vector<256x128xf32>
    %cst_42 = arith.constant 0.000000e+00 : f32
    %54 = vector.broadcast %cst_42 : f32 to vector<256x128xf32>
    %55 = arith.maximumf %53, %54 : vector<256x128xf32>
    %56 = arith.truncf %55 : vector<256x128xf32> to vector<256x128xbf16>
    %c0_43 = arith.constant 0 : index
    %c0_44 = arith.constant 0 : index
    %57 = vector.load %arg16[%c0_43, %c0_44] : memref<128x128xbf16, #tpu.memory_space<vmem>>, vector<128x128xbf16>
    %c0_45 = arith.constant 0 : index
    %c0_46 = arith.constant 0 : index
    %58 = vector.load %arg17[%c0_45, %c0_46] : memref<1x128xf32, #tpu.memory_space<vmem>>, vector<1x128xf32>
    %cst_47 = arith.constant dense<0.000000e+00> : vector<256x128xf32>
    %59 = tpu.matmul %56, %57, %cst_47 {dimension_numbers = #tpu.dot_dimension_numbers<[1], [0], [0], [1], [0, 0, 1, 1], [], []>} : vector<256x128xbf16>, vector<128x128xbf16>, vector<256x128xf32> -> vector<256x128xf32>
    %60 = vector.broadcast %58 : vector<1x128xf32> to vector<256x128xf32>
    %61 = arith.addf %59, %60 : vector<256x128xf32>
    %cst_48 = arith.constant 0.000000e+00 : f32
    %62 = vector.broadcast %cst_48 : f32 to vector<256x128xf32>
    %63 = arith.maximumf %61, %62 : vector<256x128xf32>
    %64 = arith.truncf %63 : vector<256x128xf32> to vector<256x128xbf16>
    %c0_49 = arith.constant 0 : index
    %c0_50 = arith.constant 0 : index
    %65 = vector.load %arg18[%c0_49, %c0_50] : memref<128x128xbf16, #tpu.memory_space<vmem>>, vector<128x128xbf16>
    %c0_51 = arith.constant 0 : index
    %c0_52 = arith.constant 0 : index
    %66 = vector.load %arg19[%c0_51, %c0_52] : memref<1x128xf32, #tpu.memory_space<vmem>>, vector<1x128xf32>
    %cst_53 = arith.constant dense<0.000000e+00> : vector<256x128xf32>
    %67 = tpu.matmul %64, %65, %cst_53 {dimension_numbers = #tpu.dot_dimension_numbers<[1], [0], [0], [1], [0, 0, 1, 1], [], []>} : vector<256x128xbf16>, vector<128x128xbf16>, vector<256x128xf32> -> vector<256x128xf32>
    %68 = vector.broadcast %66 : vector<1x128xf32> to vector<256x128xf32>
    %69 = arith.addf %67, %68 : vector<256x128xf32>
    %cst_54 = arith.constant 0.000000e+00 : f32
    %70 = vector.broadcast %cst_54 : f32 to vector<256x128xf32>
    %71 = arith.maximumf %69, %70 : vector<256x128xf32>
    %72 = arith.truncf %71 : vector<256x128xf32> to vector<256x128xbf16>
    %c0_55 = arith.constant 0 : index
    %c0_56 = arith.constant 0 : index
    %73 = vector.load %arg20[%c0_55, %c0_56] : memref<128x128xbf16, #tpu.memory_space<vmem>>, vector<128x128xbf16>
    %c0_57 = arith.constant 0 : index
    %c0_58 = arith.constant 0 : index
    %74 = vector.load %arg21[%c0_57, %c0_58] : memref<1x128xf32, #tpu.memory_space<vmem>>, vector<1x128xf32>
    %cst_59 = arith.constant dense<0.000000e+00> : vector<256x128xf32>
    %75 = tpu.matmul %72, %73, %cst_59 {dimension_numbers = #tpu.dot_dimension_numbers<[1], [0], [0], [1], [0, 0, 1, 1], [], []>} : vector<256x128xbf16>, vector<128x128xbf16>, vector<256x128xf32> -> vector<256x128xf32>
    %76 = vector.broadcast %74 : vector<1x128xf32> to vector<256x128xf32>
    %77 = arith.addf %75, %76 : vector<256x128xf32>
    %cst_60 = arith.constant 0.000000e+00 : f32
    %78 = vector.broadcast %cst_60 : f32 to vector<256x128xf32>
    %79 = arith.maximumf %77, %78 : vector<256x128xf32>
    %80 = arith.truncf %79 : vector<256x128xf32> to vector<256x128xbf16>
    %c0_61 = arith.constant 0 : index
    %c0_62 = arith.constant 0 : index
    %81 = vector.load %arg22[%c0_61, %c0_62] : memref<128x256xbf16, #tpu.memory_space<vmem>>, vector<128x256xbf16>
    %c0_63 = arith.constant 0 : index
    %c0_64 = arith.constant 0 : index
    %82 = vector.load %arg23[%c0_63, %c0_64] : memref<1x256xf32, #tpu.memory_space<vmem>>, vector<1x256xf32>
    %cst_65 = arith.constant dense<0.000000e+00> : vector<256x256xf32>
    %83 = tpu.matmul %80, %81, %cst_65 {dimension_numbers = #tpu.dot_dimension_numbers<[1], [0], [0], [1], [0, 0, 1, 1], [], []>} : vector<256x128xbf16>, vector<128x256xbf16>, vector<256x256xf32> -> vector<256x256xf32>
    %84 = vector.broadcast %82 : vector<1x256xf32> to vector<256x256xf32>
    %85 = arith.addf %83, %84 : vector<256x256xf32>
    %cst_66 = arith.constant 0.000000e+00 : f32
    %86 = vector.broadcast %cst_66 : f32 to vector<256x256xf32>
    %87 = arith.maximumf %85, %86 : vector<256x256xf32>
    %88 = arith.truncf %87 : vector<256x256xf32> to vector<256x256xbf16>
    %c0_67 = arith.constant 0 : index
    %c0_68 = arith.constant 0 : index
    %89 = vector.load %arg24[%c0_67, %c0_68] : memref<256x512xbf16, #tpu.memory_space<vmem>>, vector<256x512xbf16>
    %c0_69 = arith.constant 0 : index
    %c0_70 = arith.constant 0 : index
    %90 = vector.load %arg25[%c0_69, %c0_70] : memref<1x512xf32, #tpu.memory_space<vmem>>, vector<1x512xf32>
    %cst_71 = arith.constant dense<0.000000e+00> : vector<256x512xf32>
    %91 = tpu.matmul %88, %89, %cst_71 {dimension_numbers = #tpu.dot_dimension_numbers<[1], [0], [0], [1], [0, 0, 1, 1], [], []>} : vector<256x256xbf16>, vector<256x512xbf16>, vector<256x512xf32> -> vector<256x512xf32>
    %92 = vector.broadcast %90 : vector<1x512xf32> to vector<256x512xf32>
    %93 = arith.addf %91, %92 : vector<256x512xf32>
    %94 = vector.extract_strided_slice %93 {offsets = [0, 0], sizes = [256, 500], strides = [1, 1]} : vector<256x512xf32> to vector<256x500xf32>
    %c0_72 = arith.constant 0 : index
    %c0_73 = arith.constant 0 : index
    %95 = vector.load %arg27[%c0_72, %c0_73] : memref<256x500xf32, #tpu.memory_space<vmem>>, vector<256x500xf32>
    tpu.vector_store %arg27[%c0_72, %c0_73], %94 {strides = array<i32>} : memref<256x500xf32, #tpu.memory_space<vmem>>, vector<256x500xf32>,
    return
  }
  func.func @transform_0(%arg0: i32) -> (i32, i32) {
    %c0_i32 = arith.constant 0 : i32
    %c0_i32_0 = arith.constant 0 : i32
    return %arg0, %c0_i32 : i32, i32
  }
  func.func @transform_1(%arg0: i32) -> (i32, i32) {
    %c0_i32 = arith.constant 0 : i32
    %c0_i32_0 = arith.constant 0 : i32
    %c0_i32_1 = arith.constant 0 : i32
    return %c0_i32, %c0_i32_0 : i32, i32
  }
  func.func @transform_2(%arg0: i32) -> (i32, i32) {
    %c0_i32 = arith.constant 0 : i32
    %c0_i32_0 = arith.constant 0 : i32
    %c0_i32_1 = arith.constant 0 : i32
    return %c0_i32, %c0_i32_0 : i32, i32
  }
  func.func @transform_3(%arg0: i32) -> (i32, i32) {
    %c0_i32 = arith.constant 0 : i32
    %c0_i32_0 = arith.constant 0 : i32
    %c0_i32_1 = arith.constant 0 : i32
    return %c0_i32, %c0_i32_0 : i32, i32
  }
  func.func @transform_4(%arg0: i32) -> (i32, i32) {
    %c0_i32 = arith.constant 0 : i32
    %c0_i32_0 = arith.constant 0 : i32
    %c0_i32_1 = arith.constant 0 : i32
    return %c0_i32, %c0_i32_0 : i32, i32
  }
  func.func @transform_5(%arg0: i32) -> (i32, i32) {
    %c0_i32 = arith.constant 0 : i32
    %c0_i32_0 = arith.constant 0 : i32
    %c0_i32_1 = arith.constant 0 : i32
    return %c0_i32, %c0_i32_0 : i32, i32
  }
  func.func @transform_6(%arg0: i32) -> (i32, i32) {
    %c0_i32 = arith.constant 0 : i32
    %c0_i32_0 = arith.constant 0 : i32
    %c0_i32_1 = arith.constant 0 : i32
    return %c0_i32, %c0_i32_0 : i32, i32
  }
  func.func @transform_7(%arg0: i32) -> (i32, i32) {
    %c0_i32 = arith.constant 0 : i32
    %c0_i32_0 = arith.constant 0 : i32
    %c0_i32_1 = arith.constant 0 : i32
    return %c0_i32, %c0_i32_0 : i32, i32
  }
  func.func @transform_8(%arg0: i32) -> (i32, i32) {
    %c0_i32 = arith.constant 0 : i32
    %c0_i32_0 = arith.constant 0 : i32
    %c0_i32_1 = arith.constant 0 : i32
    return %c0_i32, %c0_i32_0 : i32, i32
  }
  func.func @transform_9(%arg0: i32) -> (i32, i32) {
    %c0_i32 = arith.constant 0 : i32
    %c0_i32_0 = arith.constant 0 : i32
    %c0_i32_1 = arith.constant 0 : i32
    return %c0_i32, %c0_i32_0 : i32, i32
  }
  func.func @transform_10(%arg0: i32) -> (i32, i32) {
    %c0_i32 = arith.constant 0 : i32
    %c0_i32_0 = arith.constant 0 : i32
    %c0_i32_1 = arith.constant 0 : i32
    return %c0_i32, %c0_i32_0 : i32, i32
  }
  func.func @transform_11(%arg0: i32) -> (i32, i32) {
    %c0_i32 = arith.constant 0 : i32
    %c0_i32_0 = arith.constant 0 : i32
    %c0_i32_1 = arith.constant 0 : i32
    return %c0_i32, %c0_i32_0 : i32, i32
  }
  func.func @transform_12(%arg0: i32) -> (i32, i32) {
    %c0_i32 = arith.constant 0 : i32
    %c0_i32_0 = arith.constant 0 : i32
    %c0_i32_1 = arith.constant 0 : i32
    return %c0_i32, %c0_i32_0 : i32, i32
  }
  func.func @transform_13(%arg0: i32) -> (i32, i32) {
    %c0_i32 = arith.constant 0 : i32
    %c0_i32_0 = arith.constant 0 : i32
    %c0_i32_1 = arith.constant 0 : i32
    return %c0_i32, %c0_i32_0 : i32, i32
  }
  func.func @transform_14(%arg0: i32) -> (i32, i32) {
    %c0_i32 = arith.constant 0 : i32
    %c0_i32_0 = arith.constant 0 : i32
    %c0_i32_1 = arith.constant 0 : i32
    return %c0_i32, %c0_i32_0 : i32, i32
  }
  func.func @transform_15(%arg0: i32) -> (i32, i32) {
    %c0_i32 = arith.constant 0 : i32
    %c0_i32_0 = arith.constant 0 : i32
    %c0_i32_1 = arith.constant 0 : i32
    return %c0_i32, %c0_i32_0 : i32, i32
  }
  func.func @transform_16(%arg0: i32) -> (i32, i32) {
    %c0_i32 = arith.constant 0 : i32
    %c0_i32_0 = arith.constant 0 : i32
    %c0_i32_1 = arith.constant 0 : i32
    return %c0_i32, %c0_i32_0 : i32, i32
  }
  func.func @transform_17(%arg0: i32) -> (i32, i32) {
    %c0_i32 = arith.constant 0 : i32
    %c0_i32_0 = arith.constant 0 : i32
    %c0_i32_1 = arith.constant 0 : i32
    return %c0_i32, %c0_i32_0 : i32, i32
  }
  func.func @transform_18(%arg0: i32) -> (i32, i32) {
    %c0_i32 = arith.constant 0 : i32
    %c0_i32_0 = arith.constant 0 : i32
    %c0_i32_1 = arith.constant 0 : i32
    return %c0_i32, %c0_i32_0 : i32, i32
  }
  func.func @transform_19(%arg0: i32) -> (i32, i32) {
    %c0_i32 = arith.constant 0 : i32
    %c0_i32_0 = arith.constant 0 : i32
    %c0_i32_1 = arith.constant 0 : i32
    return %c0_i32, %c0_i32_0 : i32, i32
  }
  func.func @transform_20(%arg0: i32) -> (i32, i32) {
    %c0_i32 = arith.constant 0 : i32
    %c0_i32_0 = arith.constant 0 : i32
    %c0_i32_1 = arith.constant 0 : i32
    return %c0_i32, %c0_i32_0 : i32, i32
  }
  func.func @transform_21(%arg0: i32) -> (i32, i32) {
    %c0_i32 = arith.constant 0 : i32
    %c0_i32_0 = arith.constant 0 : i32
    %c0_i32_1 = arith.constant 0 : i32
    return %c0_i32, %c0_i32_0 : i32, i32
  }
  func.func @transform_22(%arg0: i32) -> (i32, i32) {
    %c0_i32 = arith.constant 0 : i32
    %c0_i32_0 = arith.constant 0 : i32
    %c0_i32_1 = arith.constant 0 : i32
    return %c0_i32, %c0_i32_0 : i32, i32
  }
  func.func @transform_23(%arg0: i32) -> (i32, i32) {
    %c0_i32 = arith.constant 0 : i32
    %c0_i32_0 = arith.constant 0 : i32
    %c0_i32_1 = arith.constant 0 : i32
    return %c0_i32, %c0_i32_0 : i32, i32
  }
  func.func @transform_24(%arg0: i32) -> (i32, i32) {
    %c0_i32 = arith.constant 0 : i32
    %c0_i32_0 = arith.constant 0 : i32
    %c0_i32_1 = arith.constant 0 : i32
    return %c0_i32, %c0_i32_0 : i32, i32
  }
  func.func @transform_25(%arg0: i32) -> (i32, i32) {
    %c0_i32 = arith.constant 0 : i32
    %c0_i32_0 = arith.constant 0 : i32
    return %arg0, %c0_i32 : i32, i32
  }
  func.func @transform_26(%arg0: i32) -> (i32, i32) {
    %c0_i32 = arith.constant 0 : i32
    %c0_i32_0 = arith.constant 0 : i32
    return %arg0, %c0_i32 : i32, i32
  }
}

</mosaic_0001>

<bundles_post_ra>
// kernel: _autoencoder_call.1
= control target key start
LH: loop header
LB: loop body
LE: loop exit
PB: predicated region body
PF: predicated region fallthrough
CT: control target
= control target key end

     0   :  { %s7651_s27 = smov 0   ;;  %s9450_s0 = inlined_call_operand.vmem [shape: bf16[512,512], index: 0, kind: input, shape index: {}]   ;;  %s9451_s1 = inlined_call_operand.vmem [shape: bf16[512,256], index: 1, kind: input, shape index: {}]   ;;  %s9452_s2 = inlined_call_operand.vmem [shape: f32[1,256], index: 2, kind: input, shape index: {}]   ;;  %s9453_s3 = inlined_call_operand.vmem [shape: bf16[256,128], index: 3, kind: input, shape index: {}]   ;;  %s9454_s4 = inlined_call_operand.vmem [shape: f32[1,128], index: 4, kind: input, shape index: {}]   ;;  %s9455_s5 = inlined_call_operand.vmem [shape: bf16[128,128], index: 5, kind: input, shape index: {}]   ;;  %s9456_s6 = inlined_call_operand.vmem [shape: f32[1,128], index: 6, kind: input, shape index: {}]   ;;  %s9457_s7 = inlined_call_operand.vmem [shape: bf16[128,128], index: 7, kind: input, shape index: {}]   ;;  %s9458_s8 = inlined_call_operand.vmem [shape: f32[1,128], index: 8, kind: input, shape index: {}]   ;;  %s9459_s9 = inlined_call_operand.vmem [shape: bf16[128,128], index: 9, kind: input, shape index: {}]   ;;  %s9460_s10 = inlined_call_operand.vmem [shape: f32[1,128], index: 10, kind: input, shape index: {}]   ;;  %s9461_s11 = inlined_call_operand.vmem [shape: bf16[128,128], index: 11, kind: input, shape index: {}]   ;;  %s9462_s12 = inlined_call_operand.vmem [shape: f32[1,128], index: 12, kind: input, shape index: {}]   ;;  %s9463_s13 = inlined_call_operand.vmem [shape: bf16[128,128], index: 13, kind: input, shape index: {}]   ;;  %s9464_s14 = inlined_call_operand.vmem [shape: f32[1,128], index: 14, kind: input, shape index: {}]   ;;  %s9465_s15 = inlined_call_operand.vmem [shape: bf16[128,128], index: 15, kind: input, shape index: {}]   ;;  %s9466_s16 = inlined_call_operand.vmem [shape: f32[1,128], index: 16, kind: input, shape index: {}]   ;;  %s9467_s17 = inlined_call_operand.vmem [shape: bf16[128,128], index: 17, kind: input, shape index: {}]   ;;  %s9468_s18 = inlined_call_operand.vmem [shape: f32[1,128], index: 18, kind: input, shape index: {}]   ;;  %s9469_s19 = inlined_call_operand.vmem [shape: bf16[128,128], index: 19, kind: input, shape index: {}]   ;;  %s9470_s20 = inlined_call_operand.vmem [shape: f32[1,128], index: 20, kind: input, shape index: {}]   ;;  %s9471_s21 = inlined_call_operand.vmem [shape: bf16[128,256], index: 21, kind: input, shape index: {}]   ;;  %s9472_s22 = inlined_call_operand.vmem [shape: f32[1,256], index: 22, kind: input, shape index: {}]   ;;  %s9473_s23 = inlined_call_operand.vmem [shape: bf16[256,512], index: 23, kind: input, shape index: {}]   ;;  %s9474_s24 = inlined_call_operand.vmem [shape: f32[1,512], index: 24, kind: input, shape index: {}]   ;;  %s9475_s25 = inlined_call_operand.vmem [shape: f32[512,30], index: 25, kind: output, shape index: {0}]   ;;  %s9476_s26 = inlined_call_operand.vmem [shape: f32[512,500], index: 26, kind: output, shape index: {1}]  }
   0x1   :  { %9490 = sst [smem:[#allocation10_spill]] %s9450_s0 }
   0x2   :  { %9491 = sst [smem:[#allocation11_spill]] %s9451_s1 }
   0x3   :  { %9492 = sst [smem:[#allocation12_spill]] %s9452_s2 }
   0x4   :  { %9493 = sst [smem:[#allocation13_spill]] %s9453_s3 }
   0x5   :  { %9494 = sst [smem:[#allocation14_spill]] %s9454_s4 }
   0x6   :  { %9495 = sst [smem:[#allocation15_spill]] %s9455_s5 }
   0x7   :  { %9496 = sst [smem:[#allocation16_spill]] %s9456_s6 }
   0x8   :  { %9497 = sst [smem:[#allocation17_spill]] %s9457_s7 }
   0x9   :  { %9498 = sst [smem:[#allocation18_spill]] %s9458_s8 }
   0xa   :  { %9499 = sst [smem:[#allocation19_spill]] %s9459_s9 }
   0xb   :  { %9500 = sst [smem:[#allocation20_spill]] %s9460_s10 }
   0xc LB: > { %s6072_s3 = sadd.s32 4294967295, %s7513_s27   ;;  %p6076_p0 = scmp.ge.s32.totalorder %s7513_s27, 1  ;;  %s7513_s27 = sphi %s7651_s27, %s37_s27  }
   0xd   : > { %p717_p1 = scmp.lt.s32.totalorder %s7513_s27, 3 }
   0xf   : > { %p718_p2 = pnand %p6076_p0, %p717_p1 }
  0x11   : > { %721 = sbr.rel (%p718_p2) target bundleno = 2751 (0xabf), region = 120 }
  0x16   : > { %s9501_s8 = sld [smem:[#allocation11_spill]]  ;;  %s6077_s6 = sshll.u32 %s6072_s3, 5  ;;  %vm3493_vm0 = vcmask 244736   ;;  %vm5854_vm1 = vcmask 949248  }
  0x17   : > { %p795_p3 = scmp.lt.s32.totalorder %s6077_s6, 63  ;;  %s9502_s0 = sld [smem:[#allocation10_spill]] }
  0x18   : > { %s9503_s28 = sld [smem:[#allocation13_spill]] }
  0x19   : > { %s9529_s6 = smov (!%p795_p3, %s6077_s6), 63  ;;  %s9508_s30 = sld [smem:[#allocation15_spill]] }
  0x1a   : > { %s6384_s1 = sshll.u32 %s9529_s6, 4  ;;  %s9519_s29 = sld [smem:[#allocation14_spill]] }
  0x1b   : > { %s9520_s9 = sld [smem:[#allocation17_spill]] }
  0x1c   : > { %v7115_v0 = vld [vmem:[%s9501_s8 + $0x74] ss:$8 sps:$4 sm:$0xff]   ;;  %v7117_v1 = vld [vmem:[%s9501_s8 + $0x70] ss:$8 sps:$4 sm:$0xff]   ;;  %v7118_v2 = vld [vmem:[%s9501_s8 + $0x64] ss:$8 sps:$4 sm:$0xff]  }
  0x1d   : > { %7074 = vmatprep.subr.bf16.mxu1 %v7115_v0  ;;  %1595 = vmatprep.subr.bf16.mxu0 %v7115_v0  ;;  %v7120_v3 = vld [vmem:[%s9501_s8 + $0x60] ss:$8 sps:$4 sm:$0xff]   ;;  %v7121_v4 = vld [vmem:[%s9501_s8 + $0x54] ss:$8 sps:$4 sm:$0xff]   ;;  %v7123_v5 = vld [vmem:[%s9501_s8 + $0x50] ss:$8 sps:$4 sm:$0xff]   ;;  %s7701_s3 = scalar_lea.vmem %s9502_s0, %s6384_s1 }
  0x1e   : > { %7090 = vmatpush1.bf16.msra.mxu1 %v7117_v1  ;;  %1596 = vmatpush1.bf16.msra.mxu0 %v7117_v1  ;;  %v7124_v6 = vld [vmem:[%s9501_s8 + $0x44] ss:$8 sps:$4 sm:$0xff]   ;;  %v7126_v7 = vld [vmem:[%s9501_s8 + $0x40] ss:$8 sps:$4 sm:$0xff]   ;;  %v7127_v8 = vld [vmem:[%s9501_s8 + $0x34] ss:$8 sps:$4 sm:$0xff]  }
  0x1f   : > { %7075 = vmatprep.subr.bf16.mxu1 %v7118_v2  ;;  %1597 = vmatprep.subr.bf16.mxu0 %v7118_v2  ;;  %v7129_v9 = vld [vmem:[%s9501_s8 + $0x30] ss:$8 sps:$4 sm:$0xff]   ;;  %v7130_v10 = vld [vmem:[%s9501_s8 + $0x24] ss:$8 sps:$4 sm:$0xff]   ;;  %v7132_v11 = vld [vmem:[%s9501_s8 + $0x20] ss:$8 sps:$4 sm:$0xff]  }
  0x20   : > { %v7133_v12 = vld [vmem:[%s9501_s8 + $0x14] ss:$8 sps:$4 sm:$0xff]   ;;  %v7135_v14 = vld [vmem:[%s9501_s8 + $0x10] ss:$8 sps:$4 sm:$0xff]   ;;  %v7136_v15 = vld [vmem:[%s9501_s8 + $0x4] ss:$8 sps:$4 sm:$0xff]  }
  0x21   : > { %v7165_v13 = vld [vmem:[%s7701_s3 + $0x104] ss:$16 sps:$4 sm:$0xff]   ;;  %v7138_v16 = vld [vmem:[%s9501_s8] ss:$8 sps:$4 sm:$0xff]   ;;  %v7141_v18 = vld [vmem:[%s9501_s8 + $0xf0] ss:$8 sps:$4 sm:$0xff]  }
  0x22   : > { %7091 = vmatpush1.bf16.msra.mxu1 %v7120_v3  ;;  %1598 = vmatpush1.bf16.msra.mxu0 %v7120_v3  ;;  %v7139_v17 = vld [vmem:[%s9501_s8 + $0xf4] ss:$8 sps:$4 sm:$0xff]   ;;  %v7142_v19 = vld [vmem:[%s9501_s8 + $0xe4] ss:$8 sps:$4 sm:$0xff]   ;;  %v7144_v20 = vld [vmem:[%s9501_s8 + $0xe0] ss:$8 sps:$4 sm:$0xff]  }
  0x23   : > { %7076 = vmatprep.subr.bf16.mxu1 %v7121_v4  ;;  %1599 = vmatprep.subr.bf16.mxu0 %v7121_v4  ;;  %v7145_v21 = vld [vmem:[%s9501_s8 + $0xd4] ss:$8 sps:$4 sm:$0xff]   ;;  %v7147_v22 = vld [vmem:[%s9501_s8 + $0xd0] ss:$8 sps:$4 sm:$0xff]   ;;  %v7148_v23 = vld [vmem:[%s9501_s8 + $0xc4] ss:$8 sps:$4 sm:$0xff]  }
  0x24   : > { %1707 = vmatprep.mubr.bf16.mxu1 %v7165_v13  ;;  %v7150_v24 = vld [vmem:[%s9501_s8 + $0xc0] ss:$8 sps:$4 sm:$0xff]   ;;  %v7151_v25 = vld [vmem:[%s9501_s8 + $0xb4] ss:$8 sps:$4 sm:$0xff]   ;;  %v7153_v26 = vld [vmem:[%s9501_s8 + $0xb0] ss:$8 sps:$4 sm:$0xff]  }
  0x25   : > { %v7154_v27 = vld [vmem:[%s9501_s8 + $0xa4] ss:$8 sps:$4 sm:$0xff]   ;;  %v7156_v28 = vld [vmem:[%s9501_s8 + $0xa0] ss:$8 sps:$4 sm:$0xff]   ;;  %v7157_v30 = vld [vmem:[%s9501_s8 + $0x94] ss:$8 sps:$4 sm:$0xff]  }
  0x26   : > { %7092 = vmatpush1.bf16.msra.mxu1 %v7123_v5  ;;  %1600 = vmatpush1.bf16.msra.mxu0 %v7123_v5  ;;  %v7230_v29 = vld [vmem:[%s7701_s3 + $0x4] ss:$16 sps:$4 sm:$0xff]   ;;  %v7159_v31 = vld [vmem:[%s9501_s8 + $0x90] ss:$8 sps:$4 sm:$0xff]   ;;  %v7162_v33 = vld [vmem:[%s9501_s8 + $0x80] ss:$8 sps:$4 sm:$0xff]  }
  0x27   : > { %7077 = vmatprep.subr.bf16.mxu1 %v7124_v6  ;;  %1601 = vmatprep.subr.bf16.mxu0 %v7124_v6  ;;  %v7160_v32 = vld [vmem:[%s9501_s8 + $0x84] ss:$8 sps:$4 sm:$0xff]   ;;  %v7168_v34 = vld [vmem:[%s9501_s8 + $0x174] ss:$8 sps:$4 sm:$0xff]   ;;  %v7163_v35 = vld [vmem:[%s7701_s3 + $0x100] ss:$16 sps:$4 sm:$0xff]  }
  0x28   : > { %1627 = vmatprep.mubr.bf16.mxu0 %v7230_v29  ;;  %v7166_v36 = vld [vmem:[%s9501_s8 + $0x170] ss:$8 sps:$4 sm:$0xff]   ;;  %v7172_v38 = vld [vmem:[%s7701_s3 + $0x124] ss:$16 sps:$4 sm:$0xff]   ;;  %v7169_v41 = vld [vmem:[%s9501_s8 + $0x160] ss:$8 sps:$4 sm:$0xff]  }
  0x29   : > { %v7228_v37 = vld [vmem:[%s7701_s3] ss:$16 sps:$4 sm:$0xff]   ;;  %v7171_v39 = vld [vmem:[%s9501_s8 + $0x164] ss:$8 sps:$4 sm:$0xff]   ;;  %v7177_v42 = vld [vmem:[%s9501_s8 + $0x154] ss:$8 sps:$4 sm:$0xff]  }
  0x2a   : > { %7093 = vmatpush1.bf16.msra.mxu1 %v7126_v7  ;;  %1602 = vmatpush1.bf16.msra.mxu0 %v7126_v7  ;;  %v7241_v40 = vld [vmem:[%s7701_s3 + $0x24] ss:$16 sps:$4 sm:$0xff]   ;;  %v7174_v43 = vld [vmem:[%s7701_s3 + $0x120] ss:$16 sps:$4 sm:$0xff]   ;;  %s9506_s0 = sld [smem:[#allocation12_spill]]  ;;  %s6081_s1 = sshll.u32 %s9529_s6, 3 }
  0x2b   : > { %7078 = vmatprep.subr.bf16.mxu1 %v7127_v8  ;;  %1603 = vmatprep.subr.bf16.mxu0 %v7127_v8  ;;  %v7175_v44 = vld [vmem:[%s9501_s8 + $0x150] ss:$8 sps:$4 sm:$0xff]   ;;  %v7181_v46 = vld [vmem:[%s7701_s3 + $0x144] ss:$16 sps:$4 sm:$0xff]   ;;  %v7178_v49 = vld [vmem:[%s9501_s8 + $0x140] ss:$8 sps:$4 sm:$0xff]  }
  0x2c   : > { %v7243_v45 = vld [vmem:[%s7701_s3 + $0x20] ss:$16 sps:$4 sm:$0xff]   ;;  %v7180_v47 = vld [vmem:[%s9501_s8 + $0x144] ss:$8 sps:$4 sm:$0xff]   ;;  %v7186_v51 = vld [vmem:[%s9501_s8 + $0x134] ss:$8 sps:$4 sm:$0xff]  }
  0x2d   : > { %v7246_v48 = vld [vmem:[%s7701_s3 + $0x44] ss:$16 sps:$4 sm:$0xff]   ;;  %v7183_v50 = vld [vmem:[%s7701_s3 + $0x140] ss:$16 sps:$4 sm:$0xff]   ;;  %s9523_s4 = sld [smem:[#allocation18_spill]] }
  0x2e   : > { %7094 = vmatpush1.bf16.msra.mxu1 %v7129_v9  ;;  %1604 = vmatpush1.bf16.msra.mxu0 %v7129_v9  ;;  %v7184_v52 = vld [vmem:[%s9501_s8 + $0x130] ss:$8 sps:$4 sm:$0xff]   ;;  %v7190_v53 = vld [vmem:[%s7701_s3 + $0x164] ss:$16 sps:$4 sm:$0xff]   ;;  %v7187_v57 = vld [vmem:[%s9501_s8 + $0x120] ss:$8 sps:$4 sm:$0xff]  }
  0x2f   : > { %7079 = vmatprep.subr.bf16.mxu1 %v7130_v10  ;;  %1605 = vmatprep.subr.bf16.mxu0 %v7130_v10  ;;  %v7189_v54 = vld [vmem:[%s9501_s8 + $0x124] ss:$8 sps:$4 sm:$0xff]   ;;  %v7249_v55 = vld [vmem:[%s7701_s3 + $0x40] ss:$16 sps:$4 sm:$0xff]   ;;  %v7195_v58 = vld [vmem:[%s9501_s8 + $0x114] ss:$8 sps:$4 sm:$0xff]  }
  0x30   : > { %v7252_v56 = vld [vmem:[%s7701_s3 + $0x64] ss:$16 sps:$4 sm:$0xff]   ;;  %v7192_v59 = vld [vmem:[%s7701_s3 + $0x160] ss:$16 sps:$4 sm:$0xff]  }
  0x31   : > { %v7255_v60 = vld [vmem:[%s7701_s3 + $0x60] ss:$16 sps:$4 sm:$0xff]   ;;  %v7199_v62 = vld [vmem:[%s7701_s3 + $0x184] ss:$16 sps:$4 sm:$0xff]  }
  0x32   : > { %7095 = vmatpush1.bf16.msra.mxu1 %v7132_v11  ;;  %1606 = vmatpush1.bf16.msra.mxu0 %v7132_v11  ;;  %v7193_v61 = vld [vmem:[%s9501_s8 + $0x110] ss:$8 sps:$4 sm:$0xff]   ;;  %v7198_v63 = vld [vmem:[%s9501_s8 + $0x104] ss:$8 sps:$4 sm:$0xff]   ;;  %v7196_v1 = vld [vmem:[%s9501_s8 + $0x100] ss:$8 sps:$4 sm:$0xff]  }
  0x33   : > { %7080 = vmatprep.subr.bf16.mxu1 %v7133_v12  ;;  %1607 = vmatprep.subr.bf16.mxu0 %v7133_v12  ;;  %v7258_v0 = vld [vmem:[%s7701_s3 + $0x84] ss:$16 sps:$4 sm:$0xff]   ;;  %v7201_v3 = vld [vmem:[%s7701_s3 + $0x180] ss:$16 sps:$4 sm:$0xff]  }
  0x34   : > { %v7204_v2 = vld [vmem:[%s9501_s8 + $0x1f4] ss:$8 sps:$4 sm:$0xff]   ;;  %v7261_v4 = vld [vmem:[%s7701_s3 + $0x80] ss:$16 sps:$4 sm:$0xff]   ;;  %v7207_v7 = vld [vmem:[%s9501_s8 + $0x1e4] ss:$8 sps:$4 sm:$0xff]  }
  0x35   : > { %v7202_v5 = vld [vmem:[%s9501_s8 + $0x1f0] ss:$8 sps:$4 sm:$0xff]   ;;  %v7208_v6 = vld [vmem:[%s7701_s3 + $0x1a4] ss:$16 sps:$4 sm:$0xff]   ;;  %v7205_v9 = vld [vmem:[%s9501_s8 + $0x1e0] ss:$8 sps:$4 sm:$0xff]  }
  0x36   : > { %7096 = vmatpush1.bf16.msra.mxu1 %v7135_v14  ;;  %1608 = vmatpush1.bf16.msra.mxu0 %v7135_v14  ;;  %v7264_v8 = vld [vmem:[%s7701_s3 + $0xa4] ss:$16 sps:$4 sm:$0xff]   ;;  %v7210_v11 = vld [vmem:[%s7701_s3 + $0x1a0] ss:$16 sps:$4 sm:$0xff]  }
  0x37   : > { %7081 = vmatprep.subr.bf16.mxu1 %v7136_v15  ;;  %1609 = vmatprep.subr.bf16.mxu0 %v7136_v15  ;;  %v7213_v10 = vld [vmem:[%s9501_s8 + $0x1d4] ss:$8 sps:$4 sm:$0xff]   ;;  %v7267_v12 = vld [vmem:[%s7701_s3 + $0xa0] ss:$16 sps:$4 sm:$0xff]   ;;  %v7216_v15 = vld [vmem:[%s9501_s8 + $0x1c4] ss:$8 sps:$4 sm:$0xff]  }
  0x38   : > { %v7211_v13 = vld [vmem:[%s9501_s8 + $0x1d0] ss:$8 sps:$4 sm:$0xff]   ;;  %v7217_v14 = vld [vmem:[%s7701_s3 + $0x1c4] ss:$16 sps:$4 sm:$0xff]  }
  0x39   : > { %v7232_v29 = vld [vmem:[%s9501_s8 + $0x190] ss:$8 sps:$4 sm:$0xff]  }
  0x3a   : > { %7097 = vmatpush1.bf16.msra.mxu1 %v7138_v16  ;;  %1610 = vmatpush1.bf16.msra.mxu0 %v7138_v16  ;;  %v7270_v16 = vld [vmem:[%s7701_s3 + $0xc4] ss:$16 sps:$4 sm:$0xff]  }
  0x3b   : > { %7082 = vmatprep.subr.bf16.mxu1 %v7139_v17  ;;  %1611 = vmatprep.subr.bf16.mxu0 %v7139_v17  ;;  %v7214_v17 = vld [vmem:[%s9501_s8 + $0x1c0] ss:$8 sps:$4 sm:$0xff]  }
  0x3e   : > { %7098 = vmatpush2.bf16.msra.mxu1 %v7141_v18  ;;  %1612 = vmatpush2.bf16.msra.mxu0 %v7141_v18  ;;  %v7222_v18 = vld [vmem:[%s9501_s8 + $0x1b4] ss:$8 sps:$4 sm:$0xff]  }
  0x3f   : > { %7083 = vmatprep.subr.bf16.mxu1 %v7142_v19  ;;  %1613 = vmatprep.subr.bf16.mxu0 %v7142_v19  ;;  %v7219_v19 = vld [vmem:[%s7701_s3 + $0x1c0] ss:$16 sps:$4 sm:$0xff]  }
  0x42   : > { %7099 = vmatpush2.bf16.msra.mxu1 %v7144_v20  ;;  %1614 = vmatpush2.bf16.msra.mxu0 %v7144_v20  ;;  %v7273_v20 = vld [vmem:[%s7701_s3 + $0xc0] ss:$16 sps:$4 sm:$0xff]  }
  0x43   : > { %7084 = vmatprep.subr.bf16.mxu1 %v7145_v21  ;;  %1615 = vmatprep.subr.bf16.mxu0 %v7145_v21  ;;  %v7220_v21 = vld [vmem:[%s9501_s8 + $0x1b0] ss:$8 sps:$4 sm:$0xff]  }
  0x46   : > { %7100 = vmatpush2.bf16.msra.mxu1 %v7147_v22  ;;  %1616 = vmatpush2.bf16.msra.mxu0 %v7147_v22  ;;  %v7226_v22 = vld [vmem:[%s7701_s3 + $0x1e4] ss:$16 sps:$4 sm:$0xff]  }
  0x47   : > { %7085 = vmatprep.subr.bf16.mxu1 %v7148_v23  ;;  %1617 = vmatprep.subr.bf16.mxu0 %v7148_v23  ;;  %v7225_v23 = vld [vmem:[%s9501_s8 + $0x1a4] ss:$8 sps:$4 sm:$0xff]  }
  0x4a   : > { %7101 = vmatpush2.bf16.msra.mxu1 %v7150_v24  ;;  %1618 = vmatpush2.bf16.msra.mxu0 %v7150_v24  ;;  %v7276_v24 = vld [vmem:[%s7701_s3 + $0xe4] ss:$16 sps:$4 sm:$0xff]  }
  0x4b   : > { %7086 = vmatprep.subr.bf16.mxu1 %v7151_v25  ;;  %1619 = vmatprep.subr.bf16.mxu0 %v7151_v25  ;;  %v7223_v25 = vld [vmem:[%s9501_s8 + $0x1a0] ss:$8 sps:$4 sm:$0xff]  }
  0x4e   : > { %7102 = vmatpush2.bf16.msra.mxu1 %v7153_v26  ;;  %1620 = vmatpush2.bf16.msra.mxu0 %v7153_v26  ;;  %v7234_v26 = vld [vmem:[%s9501_s8 + $0x194] ss:$8 sps:$4 sm:$0xff]  }
  0x4f   : > { %7087 = vmatprep.subr.bf16.mxu1 %v7154_v27  ;;  %1621 = vmatprep.subr.bf16.mxu0 %v7154_v27  ;;  %v7231_v27 = vld [vmem:[%s7701_s3 + $0x1e0] ss:$16 sps:$4 sm:$0xff]  }
  0x52   : > { %7103 = vmatpush2.bf16.msra.mxu1 %v7156_v28  ;;  %1622 = vmatpush2.bf16.msra.mxu0 %v7156_v28  ;;  %v7279_v28 = vld [vmem:[%s7701_s3 + $0xe0] ss:$16 sps:$4 sm:$0xff]  }
  0x53   : > { %7088 = vmatprep.subr.bf16.mxu1 %v7157_v30  ;;  %1623 = vmatprep.subr.bf16.mxu0 %v7157_v30  ;;  %v7240_v30 = vld [vmem:[%s7701_s3 + $0xc] ss:$16 sps:$4 sm:$0xff]  }
  0x56   : > { %7104 = vmatpush2.bf16.msra.mxu1 %v7159_v31  ;;  %1624 = vmatpush2.bf16.msra.mxu0 %v7159_v31  ;;  %v7237_v31 = vld [vmem:[%s9501_s8 + $0x184] ss:$8 sps:$4 sm:$0xff]  }
  0x57   : > { %7089 = vmatprep.subr.bf16.mxu1 %v7160_v32  ;;  %1625 = vmatprep.subr.bf16.mxu0 %v7160_v32  ;;  %v7235_v32 = vld [vmem:[%s9501_s8 + $0x180] ss:$8 sps:$4 sm:$0xff]   ;;  %s9522_s8 = sld [smem:[#allocation16_spill]] }
  0x5a   : > { %7105 = vmatpush2.bf16.msra.mxu1 %v7162_v33  ;;  %1626 = vmatpush2.bf16.msra.mxu0 %v7162_v33  ;;  %v7238_v33 = vld [vmem:[%s7701_s3 + $0x8] ss:$16 sps:$4 sm:$0xff]  }
  0x5b   : > { %1788 = vmatprep.subr.bf16.mxu1 %v7168_v34  ;;  %v7244_v34 = vld [vmem:[%s7701_s3 + $0x2c] ss:$16 sps:$4 sm:$0xff]  }
  0x5d   : > { %1708 = vmatmul.mubr.bf16.vlgmr.msra.gmra.mxu1 %v7163_v35  ;;  %1628 = vmatmul.mubr.bf16.vlgmr.msra.gmra.mxu0 %v7228_v37  ;;  %v7248_v35 = vld [vmem:[%s7701_s3 + $0x28] ss:$16 sps:$4 sm:$0xff]  }
  0x5e   : > { %1789 = vmatpush1.bf16.msra.mxu1 %v7166_v36  ;;  %1717 = vmatprep.mubr.bf16.mxu1 %v7172_v38  ;;  %v7250_v36 = vld [vmem:[%s7701_s3 + $0x4c] ss:$16 sps:$4 sm:$0xff]   ;;  %v7254_v37 = vld [vmem:[%s7701_s3 + $0x48] ss:$16 sps:$4 sm:$0xff]  }
  0x5f   : > { %1790 = vmatprep.subr.bf16.mxu1 %v7171_v39  ;;  %1637 = vmatprep.mubr.bf16.mxu0 %v7241_v40  ;;  %v7256_v38 = vld [vmem:[%s7701_s3 + $0x6c] ss:$16 sps:$4 sm:$0xff]  }
  0x60   : > { %v7307_v39 = vld [vmem:[%s9503_s28 + $0x78] sm:$0xff]  }
  0x61   : > { %v7308_v40 = vld [vmem:[%s9503_s28 + $0x38] sm:$0xff]   ;;  %6386 = vmatprep.subr.bf16.mxu0 %v7307_v39 }
  0x62   : > { %1791 = vmatpush1.bf16.msra.mxu1 %v7169_v41  ;;  %v7260_v41 = vld [vmem:[%s7701_s3 + $0x68] ss:$16 sps:$4 sm:$0xff]   ;;  %6387 = vmatpush3.bf16.msra.mxu0 %v7308_v40 }
  0x63   : > { %1792 = vmatprep.subr.bf16.mxu1 %v7177_v42  ;;  %v7262_v42 = vld [vmem:[%s7701_s3 + $0x8c] ss:$16 sps:$4 sm:$0xff]  }
  0x65   : > { %1718 = vmatmul.mubr.bf16.gmra.mxu1 %v7174_v43  ;;  %1638 = vmatmul.mubr.bf16.gmra.mxu0 %v7243_v45  ;;  %v7309_v43 = vld [vmem:[%s9503_s28 + $0x70] sm:$0xff]   ;;  %v7266_v45 = vld [vmem:[%s7701_s3 + $0x88] ss:$16 sps:$4 sm:$0xff]  }
  0x66   : > { %1793 = vmatpush1.bf16.msra.mxu1 %v7175_v44  ;;  %1727 = vmatprep.mubr.bf16.mxu1 %v7181_v46  ;;  %v7310_v44 = vld [vmem:[%s9503_s28 + $0x30] sm:$0xff]   ;;  %v7268_v46 = vld [vmem:[%s7701_s3 + $0xac] ss:$16 sps:$4 sm:$0xff]  }
  0x67   : > { %1794 = vmatprep.subr.bf16.mxu1 %v7180_v47  ;;  %1647 = vmatprep.mubr.bf16.mxu0 %v7246_v48  ;;  %v7311_v47 = vld [vmem:[%s9503_s28 + $0x68] sm:$0xff]  }
  0x68   : > { %6388 = vmatprep.subr.bf16.mxu0 %v7309_v43  ;;  %v7312_v48 = vld [vmem:[%s9503_s28 + $0x28] sm:$0xff]  }
  0x69   : > { %6389 = vmatpush3.bf16.msra.mxu0 %v7310_v44 }
  0x6a   : > { %1795 = vmatpush1.bf16.msra.mxu1 %v7178_v49  ;;  %6390 = vmatprep.subr.bf16.mxu0 %v7311_v47  ;;  %v7272_v49 = vld [vmem:[%s7701_s3 + $0xa8] ss:$16 sps:$4 sm:$0xff]  }
  0x6b   : > { %1796 = vmatprep.subr.bf16.mxu1 %v7186_v51  ;;  %v7313_v51 = vld [vmem:[%s9503_s28 + $0x60] sm:$0xff]  }
  0x6d   : > { %1728 = vmatmul.mubr.bf16.gmra.mxu1 %v7183_v50  ;;  %1648 = vmatmul.mubr.bf16.gmra.mxu0 %v7249_v55  ;;  %v7274_v50 = vld [vmem:[%s7701_s3 + $0xcc] ss:$16 sps:$4 sm:$0xff]  }
  0x6e   : > { %1797 = vmatpush1.bf16.msra.mxu1 %v7184_v52  ;;  %1737 = vmatprep.mubr.bf16.mxu1 %v7190_v53  ;;  %v7314_v52 = vld [vmem:[%s9503_s28 + $0x20] sm:$0xff]   ;;  %v7278_v53 = vld [vmem:[%s7701_s3 + $0xc8] ss:$16 sps:$4 sm:$0xff]  }
  0x6f   : > { %1798 = vmatprep.subr.bf16.mxu1 %v7189_v54  ;;  %1657 = vmatprep.mubr.bf16.mxu0 %v7252_v56  ;;  %v7280_v54 = vld [vmem:[%s7701_s3 + $0xec] ss:$16 sps:$4 sm:$0xff]  }
  0x70   : > { %6391 = vmatpush3.bf16.msra.mxu0 %v7312_v48  ;;  %v7315_v55 = vld [vmem:[%s9503_s28 + $0x58] sm:$0xff]  }
  0x71   : > { %6392 = vmatprep.subr.bf16.mxu0 %v7313_v51  ;;  %v7316_v56 = vld [vmem:[%s9503_s28 + $0x18] sm:$0xff]  }
  0x72   : > { %1799 = vmatpush1.bf16.msra.mxu1 %v7187_v57  ;;  %v7282_v57 = vld [vmem:[%s7701_s3 + $0xe8] ss:$16 sps:$4 sm:$0xff]  }
  0x73   : > { %1800 = vmatprep.subr.bf16.mxu1 %v7195_v58  ;;  %v7283_v58 = vld [vmem:[%s7701_s3 + $0x10c] ss:$16 sps:$4 sm:$0xff]  }
  0x74   : > { %6393 = vmatpush3.bf16.msra.mxu0 %v7314_v52 }
  0x75   : > { %1738 = vmatmul.mubr.bf16.gmra.mxu1 %v7192_v59  ;;  %1658 = vmatmul.mubr.bf16.gmra.mxu0 %v7255_v60  ;;  %v7317_v59 = vld [vmem:[%s9503_s28 + $0x50] sm:$0xff]  }
  0x76   : > { %1801 = vmatpush1.bf16.msra.mxu1 %v7193_v61  ;;  %1747 = vmatprep.mubr.bf16.mxu1 %v7199_v62  ;;  %v7318_v60 = vld [vmem:[%s9503_s28 + $0x10] sm:$0xff]   ;;  %v7285_v61 = vld [vmem:[%s7701_s3 + $0x108] ss:$16 sps:$4 sm:$0xff]   ;;  %v7286_v62 = vld [vmem:[%s7701_s3 + $0x12c] ss:$16 sps:$4 sm:$0xff]  }
  0x77   : > { %1802 = vmatprep.subr.bf16.mxu1 %v7198_v63  ;;  %1667 = vmatprep.mubr.bf16.mxu0 %v7258_v0  ;;  %v7319_v63 = vld [vmem:[%s9503_s28 + $0x48] sm:$0xff]  }
  0x78   : > { %6394 = vmatprep.subr.bf16.mxu0 %v7315_v55  ;;  %v7320_v0 = vld [vmem:[%s9503_s28 + $0x8] sm:$0xff]  }
  0x79   : > { %6395 = vmatpush3.bf16.msra.mxu0 %v7316_v56 }
  0x7a   : > { %1803 = vmatpush1.bf16.msra.mxu1 %v7196_v1  ;;  %6396 = vmatprep.subr.bf16.mxu0 %v7317_v59  ;;  %v7288_v1 = vld [vmem:[%s7701_s3 + $0x128] ss:$16 sps:$4 sm:$0xff]  }
  0x7b   : > { %1804 = vmatprep.subr.bf16.mxu1 %v7204_v2  ;;  %v7289_v2 = vld [vmem:[%s7701_s3 + $0x14c] ss:$16 sps:$4 sm:$0xff]  }
  0x7d   : > { %1748 = vmatmul.mubr.bf16.gmra.mxu1 %v7201_v3  ;;  %1668 = vmatmul.mubr.bf16.gmra.mxu0 %v7261_v4  ;;  %v7321_v3 = vld [vmem:[%s9503_s28 + $0x40] sm:$0xff]  }
  0x7e   : > { %1805 = vmatpush2.bf16.msra.mxu1 %v7202_v5  ;;  %1757 = vmatprep.mubr.bf16.mxu1 %v7208_v6  ;;  %v7322_v4 = vld [vmem:[%s9503_s28] sm:$0xff]   ;;  %v7291_v5 = vld [vmem:[%s7701_s3 + $0x148] ss:$16 sps:$4 sm:$0xff]   ;;  %v7292_v6 = vld [vmem:[%s7701_s3 + $0x16c] ss:$16 sps:$4 sm:$0xff]  }
  0x7f   : > { %1806 = vmatprep.subr.bf16.mxu1 %v7207_v7  ;;  %1677 = vmatprep.mubr.bf16.mxu0 %v7264_v8  ;;  %v7294_v7 = vld [vmem:[%s7701_s3 + $0x168] ss:$16 sps:$4 sm:$0xff]   ;;  %v7295_v8 = vld [vmem:[%s7701_s3 + $0x18c] ss:$16 sps:$4 sm:$0xff]  }
  0x80   : > { %6397 = vmatpush3.bf16.msra.mxu0 %v7318_v60 }
  0x81   : > { %6398 = vmatprep.subr.bf16.mxu0 %v7319_v63 }
  0x82   : > { %1807 = vmatpush2.bf16.msra.mxu1 %v7205_v9  ;;  %v7297_v9 = vld [vmem:[%s7701_s3 + $0x188] ss:$16 sps:$4 sm:$0xff]  }
  0x83   : > { %1808 = vmatprep.subr.bf16.mxu1 %v7213_v10  ;;  %v7298_v10 = vld [vmem:[%s7701_s3 + $0x1ac] ss:$16 sps:$4 sm:$0xff]  }
  0x84   : > { %6399 = vmatpush3.bf16.msra.mxu0 %v7320_v0 }
  0x85   : > { %1758 = vmatmul.mubr.bf16.gmra.mxu1 %v7210_v11  ;;  %1678 = vmatmul.mubr.bf16.gmra.mxu0 %v7267_v12  ;;  %v7300_v11 = vld [vmem:[%s7701_s3 + $0x1a8] ss:$16 sps:$4 sm:$0xff]   ;;  %v7301_v12 = vld [vmem:[%s7701_s3 + $0x1cc] ss:$16 sps:$4 sm:$0xff]  }
  0x86   : > { %1809 = vmatpush2.bf16.msra.mxu1 %v7211_v13  ;;  %1767 = vmatprep.mubr.bf16.mxu1 %v7217_v14  ;;  %v7303_v13 = vld [vmem:[%s7701_s3 + $0x1c8] ss:$16 sps:$4 sm:$0xff]   ;;  %v7304_v14 = vld [vmem:[%s7701_s3 + $0x1ec] ss:$16 sps:$4 sm:$0xff]  }
  0x87   : > { %1810 = vmatprep.subr.bf16.mxu1 %v7216_v15  ;;  %1687 = vmatprep.mubr.bf16.mxu0 %v7270_v16  ;;  %v945_v15 = vlaneseq  ;;  %v7306_v16 = vld [vmem:[%s7701_s3 + $0x1e8] ss:$16 sps:$4 sm:$0xff]  }
  0x88   : > { %6400 = vmatprep.subr.bf16.mxu0 %v7321_v3 }
  0x89   : > { %6401 = vmatpush3.bf16.msra.mxu0 %v7322_v4 }
  0x8a   : > { %1811 = vmatpush2.bf16.msra.mxu1 %v7214_v17  ;;  %v7971_v17 = vshrl.u32 %v945_v15, 7 }
  0x8b   : > { %1812 = vmatprep.subr.bf16.mxu1 %v7222_v18 }
  0x8c   : > { %9504 = vst [vmem:[#allocation2_spill] sm:$0xff] %v7971_v17  ;;  %v7974_v18 = vsub.s32 0, %v7971_v17 }
  0x8d   : > { %1768 = vmatmul.mubr.bf16.gmra.mxu1 %v7219_v19  ;;  %1688 = vmatmul.mubr.bf16.gmra.mxu0 %v7273_v20  ;;  %v943_v19 = vld [vmem:[%s9506_s0] sm:$0x3]  ;;  %v7980_v20 = vsub.s32 1, %v7971_v17  ;;  %v7325_v17 = vld [vmem:[%s9508_s30 + $0x28] sm:$0xff]   ;;  %s9521_s0 = sld [smem:[#allocation19_spill]] }
  0x8e   : > { %1813 = vmatpush2.bf16.msra.mxu1 %v7220_v21  ;;  %1777 = vmatprep.mubr.bf16.mxu1 %v7226_v22  ;;  %9505 = vst [vmem:[#allocation3_spill] sm:$0xff] %v7974_v18  ;;  %v7983_v21 = vrot.slane %v943_v19, %v7974_v18 }
  0x8f   : > { %1814 = vmatprep.subr.bf16.mxu1 %v7225_v23  ;;  %1697 = vmatprep.mubr.bf16.mxu0 %v7276_v24  ;;  %9507 = vst [vmem:[#allocation4_spill] sm:$0xff] %v7980_v20  ;;  %v7986_v22 = vrot.slane %v943_v19, %v7980_v20 }
  0x92   : > { %1815 = vmatpush2.bf16.msra.mxu1 %v7223_v25 }
  0x93   : > { %1816 = vmatprep.subr.bf16.mxu1 %v7234_v26 }
  0x95   : > { %1778 = vmatmul.mubr.bf16.gmra.mxu1 %v7231_v27  ;;  %1698 = vmatmul.mubr.bf16.gmra.mxu0 %v7279_v28 }
  0x96   : > { %1817 = vmatpush2.bf16.msra.mxu1 %v7232_v29  ;;  %1820 = vmatprep.mubr.bf16.mxu1 %v7240_v30 }
  0x97   : > { %1818 = vmatprep.subr.bf16.mxu1 %v7237_v31 }
  0x9a   : > { %1819 = vmatpush2.bf16.msra.mxu1 %v7235_v32 }
  0x9d   : > { %1821 = vmatmul.mubr.bf16.vlgmr.msra.gmra.mxu1 %v7238_v33 }
  0x9e   : > { %1830 = vmatprep.mubr.bf16.mxu1 %v7244_v34 }
  0xa5   : > { %1831 = vmatmul.mubr.bf16.gmra.mxu1 %v7248_v35 }
  0xa6   : > { %1840 = vmatprep.mubr.bf16.mxu1 %v7250_v36 }
  0xad   : > { %1841 = vmatmul.mubr.bf16.gmra.mxu1 %v7254_v37 }
  0xae   : > { %1850 = vmatprep.mubr.bf16.mxu1 %v7256_v38 }
  0xb5   : > { %1851 = vmatmul.mubr.bf16.gmra.mxu1 %v7260_v41 }
  0xb6   : > { %1860 = vmatprep.mubr.bf16.mxu1 %v7262_v42 }
  0xbd   : > { %1861 = vmatmul.mubr.bf16.gmra.mxu1 %v7266_v45 }
  0xbe   : > { %1870 = vmatprep.mubr.bf16.mxu1 %v7268_v46 }
  0xc5   : > { %1871 = vmatmul.mubr.bf16.gmra.mxu1 %v7272_v49 }
  0xc6   : > { %1880 = vmatprep.mubr.bf16.mxu1 %v7274_v50 }
  0xcd   : > { %1881 = vmatmul.mubr.bf16.gmra.mxu1 %v7278_v53 }
  0xce   : > { %1890 = vmatprep.mubr.bf16.mxu1 %v7280_v54 }
  0xd5   : > { %1891 = vmatmul.mubr.bf16.gmra.mxu1 %v7282_v57 }
  0xd6   : > { %1900 = vmatprep.mubr.bf16.mxu1 %v7283_v58 }
  0xdd   : > { %1901 = vmatmul.mubr.bf16.gmra.mxu1 %v7285_v61 }
  0xde   : > { %1910 = vmatprep.mubr.bf16.mxu1 %v7286_v62 }
  0xe5   : > { %1911 = vmatmul.mubr.bf16.gmra.mxu1 %v7288_v1 }
  0xe6   : > { %1920 = vmatprep.mubr.bf16.mxu1 %v7289_v2 }
  0xed   : > { %1921 = vmatmul.mubr.bf16.gmra.mxu1 %v7291_v5 }
  0xee   : > { %1930 = vmatprep.mubr.bf16.mxu1 %v7292_v6 }
  0xf5   : > { %1931 = vmatmul.mubr.bf16.gmra.mxu1 %v7294_v7  ;;  %v7323_v7 = vld [vmem:[%s9508_s30 + $0x38] sm:$0xff]  }
  0xf6   : > { %1940 = vmatprep.mubr.bf16.mxu1 %v7295_v8  ;;  %6690 = vmatprep.subr.bf16.mxu1 %v7323_v7 }
  0xf7   : > { %6691 = vmatpush3.bf16.msra.mxu1 %v7323_v7 }
  0xfd   : > { %1941 = vmatmul.mubr.bf16.gmra.mxu1 %v7297_v9 }
  0xfe   : > { %1950 = vmatprep.mubr.bf16.mxu1 %v7298_v10 }
 0x105   : > { %1951 = vmatmul.mubr.bf16.gmra.mxu1 %v7300_v11 }
 0x106   : > { %1960 = vmatprep.mubr.bf16.mxu1 %v7301_v12 }
 0x10d   : > { %1961 = vmatmul.mubr.bf16.gmra.mxu1 %v7303_v13 }
 0x10e   : > { %1970 = vmatprep.mubr.bf16.mxu1 %v7304_v14 }
 0x115   : > { %1971 = vmatmul.mubr.bf16.gmra.mxu1 %v7306_v16 }
 0x11d   : > { %v1709_v23 = vpop.f32.mrf.mxu1  ;;  %v7988_v24 = vpop.f32.mrf.mxu0 }
 0x11e   : > { %v7991_v25 = vadd.f32 %v1709_v23, %v7983_v21 }
 0x11f   : > { %v1711_v26 = vpop.f32.mrf.mxu1  ;;  %v7993_v27 = vpop.f32.mrf.mxu0 }
 0x120   : > { %v7996_v28 = vadd.f32 %v1711_v26, %v7986_v22 }
 0x121   : > { %v1713_v29 = vpop.f32.mrf.mxu1  ;;  %v8003_v32 = vpop.f32.mrf.mxu0 }
 0x122   : > { %v7999_v30 = vadd.f32 %v1713_v29, %v7983_v21 }
 0x123   : > { %v8001_v31 = vpop.f32.mrf.mxu1  ;;  %v8008_v36 = vpop.f32.mrf.mxu0 }
 0x125   : > { %v1719_v33 = vpop.f32.mrf.mxu1  ;;  %v8018_v41 = vpop.f32.mrf.mxu0 }
 0x126   : > { %v8006_v34 = vadd.f32 %v1719_v33, %v7983_v21 }
 0x127   : > { %v1721_v35 = vpop.f32.mrf.mxu1  ;;  %v8023_v45 = vpop.f32.mrf.mxu0 }
 0x128   : > { %v8011_v37 = vadd.f32 %v1721_v35, %v7986_v22 }
 0x129   : > { %v1723_v38 = vpop.f32.mrf.mxu1  ;;  %v8033_v50 = vpop.f32.mrf.mxu0 }
 0x12a   : > { %v8014_v39 = vadd.f32 %v1723_v38, %v7983_v21 }
 0x12b   : > { %v8016_v40 = vpop.f32.mrf.mxu1  ;;  %v8038_v54 = vpop.f32.mrf.mxu0 }
 0x12d   : > { %v1729_v42 = vpop.f32.mrf.mxu1  ;;  %v8048_v59 = vpop.f32.mrf.mxu0 }
 0x12e   : > { %v8021_v43 = vadd.f32 %v1729_v42, %v7983_v21 }
 0x12f   : > { %v1731_v44 = vpop.f32.mrf.mxu1  ;;  %v8053_v63 = vpop.f32.mrf.mxu0 }
 0x130   : > { %v8026_v46 = vadd.f32 %v1731_v44, %v7986_v22 }
 0x131   : > { %v1733_v47 = vpop.f32.mrf.mxu1  ;;  %v8063_v4 = vpop.f32.mrf.mxu0 }
 0x132   : > { %v8029_v48 = vadd.f32 %v1733_v47, %v7983_v21  ;;  %v7324_v47 = vld [vmem:[%s9508_s30 + $0x30] sm:$0xff]  }
 0x133   : > { %v8031_v49 = vpop.f32.mrf.mxu1  ;;  %v8071_v9 = vpop.f32.mrf.mxu0  ;;  %6692 = vmatprep.subr.bf16.mxu1 %v7324_v47 }
 0x134   : > { %6693 = vmatpush3.bf16.msra.mxu1 %v7324_v47  ;;  %v1636_v47 = vadd.f32 %v8008_v36, %v7986_v22 }
 0x135   : > { %v1739_v51 = vpop.f32.mrf.mxu1  ;;  %v8081_v14 = vpop.f32.mrf.mxu0  ;;  %6694 = vmatprep.subr.bf16.mxu1 %v7325_v17 }
 0x136   : > { %v8036_v52 = vadd.f32 %v1739_v51, %v7983_v21 }
 0x137   : > { %v1741_v53 = vpop.f32.mrf.mxu1  ;;  %v8086_v23 = vpop.f32.mrf.mxu0 }
 0x138   : > { %v8041_v55 = vadd.f32 %v1741_v53, %v7986_v22  ;;  %6695 = vmatpush3.bf16.msra.mxu1 %v7325_v17  ;;  %v1644_v17 = vadd.f32 %v8033_v50, %v7983_v21 }
 0x139   : > { %v1743_v56 = vpop.f32.mrf.mxu1  ;;  %v8096_v38 = vpop.f32.mrf.mxu0 }
 0x13a   : > { %v8044_v57 = vadd.f32 %v1743_v56, %v7983_v21 }
 0x13b   : > { %v8046_v58 = vpop.f32.mrf.mxu1  ;;  %v8104_v53 = vpop.f32.mrf.mxu0 }
 0x13d   : > { %v1749_v60 = vpop.f32.mrf.mxu1 }
 0x13e   : > { %v8051_v61 = vadd.f32 %v1749_v60, %v7983_v21 }
 0x13f   : > { %v1751_v62 = vpop.f32.mrf.mxu1 }
 0x140   : > { %v8056_v0 = vadd.f32 %v1751_v62, %v7986_v22 }
 0x141   : > { %v1753_v1 = vpop.f32.mrf.mxu1 }
 0x142   : > { %v8059_v2 = vadd.f32 %v1753_v1, %v7983_v21 }
 0x143   : > { %v8061_v3 = vpop.f32.mrf.mxu1 }
 0x145   : > { %v1759_v5 = vpop.f32.mrf.mxu1 }
 0x146   : > { %v8066_v6 = vadd.f32 %v1759_v5, %v7983_v21  ;;  %v8114_v5 = vpop.f32.mrf.mxu0 }
 0x147   : > { %v1761_v8 = vpop.f32.mrf.mxu1 }
 0x148   : > { %v8074_v10 = vadd.f32 %v1761_v8, %v7986_v22  ;;  %v1630_v8 = vadd.f32 %v7988_v24, %v7983_v21 }
 0x149   : > { %v1763_v11 = vpop.f32.mrf.mxu1 }
 0x14a   : > { %v8077_v12 = vadd.f32 %v1763_v11, %v7983_v21 }
 0x14b   : > { %v8079_v13 = vpop.f32.mrf.mxu1 }
 0x14d   : > { %v1769_v15 = vpop.f32.mrf.mxu1 }
 0x14e   : > { %v8084_v16 = vadd.f32 %v1769_v15, %v7983_v21  ;;  %v8118_v15 = vpop.f32.mrf.mxu0 }
 0x14f   : > { %v1771_v19 = vpop.f32.mrf.mxu1 }
 0x150   : > { %v8089_v26 = vadd.f32 %v1771_v19, %v7986_v22  ;;  %v1632_v19 = vadd.f32 %v7993_v27, %v7986_v22  ;;  %v8129_v20 = vpop.f32.mrf.mxu0  ;;  %v7326_v27 = vld [vmem:[%s9508_s30 + $0x20] sm:$0xff]  }
 0x151   : > { %v1773_v29 = vpop.f32.mrf.mxu1  ;;  %6696 = vmatprep.subr.bf16.mxu1 %v7326_v27 }
 0x152   : > { %v8092_v33 = vadd.f32 %v1773_v29, %v7983_v21  ;;  %v1634_v29 = vadd.f32 %v8003_v32, %v7983_v21  ;;  %6697 = vmatpush3.bf16.msra.mxu1 %v7326_v27 }
 0x153   : > { %v8094_v35 = vpop.f32.mrf.mxu1 }
 0x154   : > { %9509 = vst [vmem:[#allocation5_spill] sm:$0xff] %v8092_v33 }
 0x155   : > { %v1779_v42 = vpop.f32.mrf.mxu1 }
 0x156   : > { %v8099_v44 = vadd.f32 %v1779_v42, %v7983_v21 }
 0x157   : > { %v1781_v51 = vpop.f32.mrf.mxu1 }
 0x158   : > { %9510 = vst [vmem:[#allocation6_spill] sm:$0xff] %v8099_v44  ;;  %v8107_v56 = vadd.f32 %v1781_v51, %v7986_v22 }
 0x159   : > { %v1783_v60 = vpop.f32.mrf.mxu1 }
 0x15a   : > { %9511 = vst [vmem:[#allocation7_spill] sm:$0xff] %v8107_v56  ;;  %v8110_v62 = vadd.f32 %v1783_v60, %v7983_v21 }
 0x15b   : > { %v8112_v1 = vpop.f32.mrf.mxu1 }
 0x15c   : > { %9512 = vst [vmem:[#allocation8_spill] sm:$0xff] %v8110_v62  ;;  %9513 = vst [vmem:[#allocation9_spill] sm:$0xff] %v8112_v1 }
 0x15d   : > { %v1822_v7 = vpop.f32.mrf.mxu1 }
 0x15e   : > { %v1823_v24 = vadd.f32 %v1822_v7, %v1630_v8  ;;  %v1640_v8 = vadd.f32 %v8018_v41, %v7983_v21  ;;  %v7328_v41 = vld [vmem:[%s9508_s30 + $0x10] sm:$0xff]  }
 0x15f   : > { %v1824_v11 = vpop.f32.mrf.mxu1 }
 0x160   : > { %v1825_v51 = vadd.f32 %v1824_v11, %v1632_v19  ;;  %v7327_v19 = vld [vmem:[%s9508_s30 + $0x18] sm:$0xff]   ;;  %v1981_v7 = vmax.f32 %v1823_v24, 0.0 }
 0x161   : > { %v1826_v42 = vpop.f32.mrf.mxu1  ;;  %6698 = vmatprep.subr.bf16.mxu1 %v7327_v19 }
 0x162   : > { %v1827_v60 = vadd.f32 %v1826_v42, %v1634_v29  ;;  %v1982_v36 = vmax.f32 %v1825_v51, 0.0  ;;  %v8139_v42 = vpop.f32.mrf.mxu0  ;;  %6699 = vmatpush3.bf16.msra.mxu1 %v7327_v19 }
 0x163   : > { %v1828_v18 = vpop.f32.mrf.mxu1  ;;  %6700 = vmatprep.subr.bf16.mxu1 %v7328_v41 }
 0x164   : > { %v1829_v62 = vadd.f32 %v1828_v18, %v1636_v47  ;;  %v1983_v32 = vmax.f32 %v1827_v60, 0.0  ;;  %v1642_v18 = vadd.f32 %v8023_v45, %v7986_v22  ;;  %v1646_v60 = vadd.f32 %v8038_v54, %v7986_v22  ;;  %v8150_v33 = vpop.f32.mrf.mxu0  ;;  %v7329_v54 = vld [vmem:[%s9508_s30 + $0x8] sm:$0xff]  }
 0x165   : > { %v1832_v56 = vpop.f32.mrf.mxu1 }
 0x166   : > { %v1984_v11 = vmax.f32 %v1829_v62, 0.0  ;;  %v2045_v62 = vpack.c.bf16 %v1983_v32, %v1981_v7  ;;  %v1833_v44 = vadd.f32 %v1832_v56, %v1640_v8  ;;  %v8157_v8 = vpop.f32.mrf.mxu0  ;;  %6701 = vmatpush3.bf16.msra.mxu1 %v7328_v41  ;;  %v1660_v41 = vadd.f32 %v8081_v14, %v7983_v21 }
 0x167   : > { %v1834_v29 = vpop.f32.mrf.mxu1  ;;  %6702 = vmatprep.subr.bf16.mxu1 %v7329_v54 }
 0x168   : > { %v2046_v47 = vpack.c.bf16 %v1984_v11, %v1982_v36  ;;  %v1835_v24 = vadd.f32 %v1834_v29, %v1642_v18  ;;  %v1985_v7 = vmax.f32 %v1833_v44, 0.0  ;;  %v1650_v29 = vadd.f32 %v8048_v59, %v7983_v21 }
 0x169   : > { %v1836_v51 = vpop.f32.mrf.mxu1  ;;  %v1652_v18 = vadd.f32 %v8053_v63, %v7986_v22 }
 0x16a   : > { %v1837_v1 = vadd.f32 %v1836_v51, %v1644_v17  ;;  %2244 = vmatprep.mubr.bf16.mxu0 %v2046_v47  ;;  %v1986_v27 = vmax.f32 %v1835_v24, 0.0  ;;  %v1683_v24 = vpop.f32.mrf.mxu0  ;;  %6703 = vmatpush3.bf16.msra.mxu1 %v7329_v54  ;;  %v1666_v54 = vadd.f32 %v8104_v53, %v7986_v22  ;;  %v1672_v53 = vadd.f32 %v8118_v15, %v7986_v22 }
 0x16b   : > { %v1838_v45 = vpop.f32.mrf.mxu1  ;;  %2245 = vmatmul.mubr.bf16.vlgmr.msra.gmra.mxu0 %v2045_v62  ;;  %v1656_v62 = vadd.f32 %v8071_v9, %v7986_v22 }
 0x16c   : > { %v1839_v50 = vadd.f32 %v1838_v45, %v1646_v60  ;;  %v1987_v32 = vmax.f32 %v1837_v1, 0.0  ;;  %v1654_v1 = vadd.f32 %v8063_v4, %v7983_v21  ;;  %v1685_v9 = vpop.f32.mrf.mxu0 }
 0x16d   : > { %v1842_v36 = vpop.f32.mrf.mxu1 }
 0x16e   : > { %v1988_v11 = vmax.f32 %v1839_v50, 0.0  ;;  %v2047_v17 = vpack.c.bf16 %v1987_v32, %v1985_v7  ;;  %v1843_v59 = vadd.f32 %v1842_v36, %v1650_v29  ;;  %v1662_v7 = vadd.f32 %v8086_v23, %v7986_v22  ;;  %v1689_v14 = vpop.f32.mrf.mxu0 }
 0x16f   : > { %v1844_v56 = vpop.f32.mrf.mxu1  ;;  %v1664_v36 = vadd.f32 %v8096_v38, %v7983_v21  ;;  %v1670_v38 = vadd.f32 %v8114_v5, %v7983_v21 }
 0x170   : > { %v2048_v19 = vpack.c.bf16 %v1988_v11, %v1986_v27  ;;  %v1845_v44 = vadd.f32 %v1844_v56, %v1652_v18  ;;  %v1989_v32 = vmax.f32 %v1843_v59, 0.0 }
 0x171   : > { %v1846_v47 = vpop.f32.mrf.mxu1 }
 0x172   : > { %v1847_v51 = vadd.f32 %v1846_v47, %v1654_v1  ;;  %2252 = vmatprep.mubr.bf16.mxu0 %v2048_v19  ;;  %v1990_v4 = vmax.f32 %v1845_v44, 0.0 }
 0x173   : > { %v1848_v60 = vpop.f32.mrf.mxu1  ;;  %2253 = vmatmul.mubr.bf16.gmra.mxu0 %v2047_v17 }
 0x174   : > { %v1849_v45 = vadd.f32 %v1848_v60, %v1656_v62  ;;  %v1991_v63 = vmax.f32 %v1847_v51, 0.0 }
 0x175   : > { %v1852_v50 = vpop.f32.mrf.mxu1 }
 0x176   : > { %v1992_v27 = vmax.f32 %v1849_v45, 0.0  ;;  %v2049_v56 = vpack.c.bf16 %v1991_v63, %v1989_v32  ;;  %v1853_v17 = vadd.f32 %v1852_v50, %v1660_v41  ;;  %v1691_v63 = vpop.f32.mrf.mxu0  ;;  %v1674_v50 = vadd.f32 %v8129_v20, %v7983_v21 }
 0x177   : > { %v1854_v11 = vpop.f32.mrf.mxu1  ;;  %v1676_v41 = vadd.f32 %v8139_v42, %v7986_v22  ;;  %v1680_v20 = vadd.f32 %v8150_v33, %v7983_v21  ;;  %v1682_v42 = vadd.f32 %v8157_v8, %v7986_v22 }
 0x178   : > { %v2050_v29 = vpack.c.bf16 %v1992_v27, %v1990_v4  ;;  %v1855_v1 = vadd.f32 %v1854_v11, %v1662_v7  ;;  %v1993_v60 = vmax.f32 %v1853_v17, 0.0  ;;  %v1693_v5 = vpop.f32.mrf.mxu0 }
 0x179   : > { %v1856_v18 = vpop.f32.mrf.mxu1 }
 0x17a   : > { %v1857_v19 = vadd.f32 %v1856_v18, %v1664_v36  ;;  %2260 = vmatprep.mubr.bf16.mxu0 %v2050_v29  ;;  %v1994_v23 = vmax.f32 %v1855_v1, 0.0 }
 0x17b   : > { %v1858_v47 = vpop.f32.mrf.mxu1  ;;  %2261 = vmatmul.mubr.bf16.gmra.mxu0 %v2049_v56 }
 0x17c   : > { %v1859_v62 = vadd.f32 %v1858_v47, %v1666_v54  ;;  %v1995_v44 = vmax.f32 %v1857_v19, 0.0  ;;  %v1695_v47 = vpop.f32.mrf.mxu0 }
 0x17d   : > { %v1862_v51 = vpop.f32.mrf.mxu1 }
 0x17e   : > { %v1996_v59 = vmax.f32 %v1859_v62, 0.0  ;;  %v2051_v27 = vpack.c.bf16 %v1995_v44, %v1993_v60  ;;  %v1863_v36 = vadd.f32 %v1862_v51, %v1670_v38  ;;  %v1684_v62 = vadd.f32 %v1683_v24, %v7983_v21 }
 0x17f   : > { %v1864_v45 = vpop.f32.mrf.mxu1  ;;  %v1690_v24 = vadd.f32 %v1689_v14, %v7983_v21 }
 0x180   : > { %v2052_v4 = vpack.c.bf16 %v1996_v59, %v1994_v23  ;;  %v1865_v11 = vadd.f32 %v1864_v45, %v1672_v53  ;;  %v1997_v19 = vmax.f32 %v1863_v36, 0.0  ;;  %v1686_v59 = vadd.f32 %v1685_v9, %v7986_v22 }
 0x181   : > { %v1866_v32 = vpop.f32.mrf.mxu1  ;;  %v1692_v36 = vadd.f32 %v1691_v63, %v7986_v22  ;;  %v1694_v9 = vadd.f32 %v1693_v5, %v7983_v21 }
 0x182   : > { %v1867_v7 = vadd.f32 %v1866_v32, %v1674_v50  ;;  %2268 = vmatprep.mubr.bf16.mxu0 %v2052_v4  ;;  %v1998_v15 = vmax.f32 %v1865_v11, 0.0  ;;  %v1699_v50 = vpop.f32.mrf.mxu0 }
 0x183   : > { %v1868_v29 = vpop.f32.mrf.mxu1  ;;  %2269 = vmatmul.mubr.bf16.gmra.mxu0 %v2051_v27  ;;  %v1700_v5 = vadd.f32 %v1699_v50, %v7983_v21 }
 0x184   : > { %v1869_v56 = vadd.f32 %v1868_v29, %v1676_v41  ;;  %v1999_v18 = vmax.f32 %v1867_v7, 0.0  ;;  %v1701_v7 = vpop.f32.mrf.mxu0 }
 0x185   : > { %v1872_v54 = vpop.f32.mrf.mxu1 }
 0x186   : > { %v2000_v1 = vmax.f32 %v1869_v56, 0.0  ;;  %v2053_v51 = vpack.c.bf16 %v1999_v18, %v1997_v19  ;;  %v1873_v45 = vadd.f32 %v1872_v54, %v1680_v20  ;;  %v1696_v54 = vadd.f32 %v1695_v47, %v7986_v22  ;;  %v1703_v20 = vpop.f32.mrf.mxu0 }
 0x187   : > { %v1874_v17 = vpop.f32.mrf.mxu1  ;;  %v1704_v47 = vadd.f32 %v1703_v20, %v7983_v21 }
 0x188   : > { %v2054_v44 = vpack.c.bf16 %v2000_v1, %v1998_v15  ;;  %v1875_v60 = vadd.f32 %v1874_v17, %v1682_v42  ;;  %v2001_v8 = vmax.f32 %v1873_v45, 0.0 }
 0x189   : > { %v1876_v23 = vpop.f32.mrf.mxu1 }
 0x18a   : > { %v1877_v38 = vadd.f32 %v1876_v23, %v1684_v62  ;;  %2276 = vmatprep.mubr.bf16.mxu0 %v2054_v44  ;;  %v2002_v32 = vmax.f32 %v1875_v60, 0.0  ;;  %v1705_v23 = vpop.f32.mrf.mxu0  ;;  %v1702_v60 = vadd.f32 %v1701_v7, %v7986_v22 }
 0x18b   : > { %v1878_v53 = vpop.f32.mrf.mxu1  ;;  %2277 = vmatmul.mubr.bf16.gmra.mxu0 %v2053_v51 }
 0x18c   : > { %v1879_v33 = vadd.f32 %v1878_v53, %v1686_v59  ;;  %v2003_v4 = vmax.f32 %v1877_v38, 0.0 }
 0x18d   : > { %v1882_v27 = vpop.f32.mrf.mxu1 }
 0x18e   : > { %v2004_v41 = vmax.f32 %v1879_v33, 0.0  ;;  %v2055_v56 = vpack.c.bf16 %v2003_v4, %v2001_v8  ;;  %v1883_v19 = vadd.f32 %v1882_v27, %v1690_v24  ;;  %v1706_v33 = vadd.f32 %v1705_v23, %v7986_v22 }
 0x18f   : > { %v1884_v11 = vpop.f32.mrf.mxu1 }
 0x190   : > { %v2056_v29 = vpack.c.bf16 %v2004_v41, %v2002_v32  ;;  %v1885_v15 = vadd.f32 %v1884_v11, %v1692_v36  ;;  %v2005_v63 = vmax.f32 %v1883_v19, 0.0 }
 0x191   : > { %v1886_v18 = vpop.f32.mrf.mxu1 }
 0x192   : > { %v1887_v1 = vadd.f32 %v1886_v18, %v1694_v9  ;;  %2284 = vmatprep.mubr.bf16.mxu0 %v2056_v29  ;;  %v2006_v44 = vmax.f32 %v1885_v15, 0.0 }
 0x193   : > { %v1888_v17 = vpop.f32.mrf.mxu1  ;;  %2285 = vmatmul.mubr.bf16.gmra.mxu0 %v2055_v56 }
 0x194   : > { %v1889_v42 = vadd.f32 %v1888_v17, %v1696_v54  ;;  %v2007_v14 = vmax.f32 %v1887_v1, 0.0  ;;  %v1716_v54 = vadd.f32 %v8001_v31, %v7986_v22 }
 0x195   : > { %v1892_v62 = vpop.f32.mrf.mxu1 }
 0x196   : > { %v2008_v51 = vmax.f32 %v1889_v42, 0.0  ;;  %v2057_v45 = vpack.c.bf16 %v2007_v14, %v2005_v63  ;;  %v1893_v32 = vadd.f32 %v1892_v62, %v1700_v5 }
 0x197   : > { %v1894_v59 = vpop.f32.mrf.mxu1 }
 0x198   : > { %v2058_v38 = vpack.c.bf16 %v2008_v51, %v2006_v44  ;;  %v1895_v4 = vadd.f32 %v1894_v59, %v1702_v60  ;;  %v2009_v9 = vmax.f32 %v1893_v32, 0.0 }
 0x199   : > { %v1896_v53 = vpop.f32.mrf.mxu1 }
 0x19a   : > { %v1897_v27 = vadd.f32 %v1896_v53, %v1704_v47  ;;  %2292 = vmatprep.mubr.bf16.mxu0 %v2058_v38  ;;  %v2010_v11 = vmax.f32 %v1895_v4, 0.0 }
 0x19b   : > { %v1898_v41 = vpop.f32.mrf.mxu1  ;;  %2293 = vmatmul.mubr.bf16.gmra.mxu0 %v2057_v45 }
 0x19c   : > { %v1899_v8 = vadd.f32 %v1898_v41, %v1706_v33  ;;  %v2011_v24 = vmax.f32 %v1897_v27, 0.0 }
 0x19d   : > { %v1902_v50 = vpop.f32.mrf.mxu1 }
 0x19e   : > { %v2012_v36 = vmax.f32 %v1899_v8, 0.0  ;;  %v1903_v21 = vadd.f32 %v1902_v50, %v7991_v25  ;;  %v2059_v56 = vpack.c.bf16 %v2011_v24, %v2009_v9 }
 0x19f   : > { %v1904_v7 = vpop.f32.mrf.mxu1 }
 0x1a0   : > { %v2060_v29 = vpack.c.bf16 %v2012_v36, %v2010_v11  ;;  %v1905_v15 = vadd.f32 %v1904_v7, %v7996_v28  ;;  %v2013_v20 = vmax.f32 %v1903_v21, 0.0  ;;  %v1726_v28 = vadd.f32 %v8016_v40, %v7986_v22 }
 0x1a1   : > { %v1906_v18 = vpop.f32.mrf.mxu1 }
 0x1a2   : > { %v1907_v1 = vadd.f32 %v1906_v18, %v7999_v30  ;;  %2300 = vmatprep.mubr.bf16.mxu0 %v2060_v29  ;;  %v2014_v62 = vmax.f32 %v1905_v15, 0.0 }
 0x1a3   : > { %v1908_v19 = vpop.f32.mrf.mxu1  ;;  %2301 = vmatmul.mubr.bf16.gmra.mxu0 %v2059_v56  ;;  %v1746_v56 = vadd.f32 %v8046_v58, %v7986_v22 }
 0x1a4   : > { %v2015_v17 = vmax.f32 %v1907_v1, 0.0  ;;  %v1909_v42 = vadd.f32 %v1908_v19, %v1716_v54 }
 0x1a5   : > { %v1912_v14 = vpop.f32.mrf.mxu1 }
 0x1a6   : > { %v2061_v44 = vpack.c.bf16 %v2015_v17, %v2013_v20  ;;  %v2016_v25 = vmax.f32 %v1909_v42, 0.0  ;;  %v1913_v63 = vadd.f32 %v1912_v14, %v8006_v34 }
 0x1a7   : > { %v1914_v51 = vpop.f32.mrf.mxu1 }
 0x1a8   : > { %v2062_v5 = vpack.c.bf16 %v2016_v25, %v2014_v62  ;;  %v1915_v30 = vadd.f32 %v1914_v51, %v8011_v37  ;;  %v2017_v60 = vmax.f32 %v1913_v63, 0.0  ;;  %v1736_v37 = vadd.f32 %v8031_v49, %v7986_v22 }
 0x1a9   : > { %v1916_v23 = vpop.f32.mrf.mxu1 }
 0x1aa   : > { %v1917_v31 = vadd.f32 %v1916_v23, %v8014_v39  ;;  %2308 = vmatprep.mubr.bf16.mxu0 %v2062_v5  ;;  %v2018_v53 = vmax.f32 %v1915_v30, 0.0 }
 0x1ab   : > { %v1918_v59 = vpop.f32.mrf.mxu1  ;;  %2309 = vmatmul.mubr.bf16.gmra.mxu0 %v2061_v44 }
 0x1ac   : > { %v2019_v47 = vmax.f32 %v1917_v31, 0.0  ;;  %v1919_v38 = vadd.f32 %v1918_v59, %v1726_v28 }
 0x1ad   : > { %v1922_v45 = vpop.f32.mrf.mxu1 }
 0x1ae   : > { %v2063_v33 = vpack.c.bf16 %v2019_v47, %v2017_v60  ;;  %v2020_v4 = vmax.f32 %v1919_v38, 0.0  ;;  %v1923_v27 = vadd.f32 %v1922_v45, %v8021_v43  ;;  %v7330_v43 = vld [vmem:[%s9508_s30] sm:$0xff]  }
 0x1af   : > { %v1924_v34 = vpop.f32.mrf.mxu1  ;;  %6704 = vmatprep.subr.bf16.mxu1 %v7330_v43 }
 0x1b0   : > { %v2064_v32 = vpack.c.bf16 %v2020_v4, %v2018_v53  ;;  %v1925_v39 = vadd.f32 %v1924_v34, %v8026_v46  ;;  %v2021_v24 = vmax.f32 %v1923_v27, 0.0  ;;  %6705 = vmatpush3.bf16.msra.mxu1 %v7330_v43 }
 0x1b1   : > { %v1926_v41 = vpop.f32.mrf.mxu1 }
 0x1b2   : > { %v1927_v40 = vadd.f32 %v1926_v41, %v8029_v48  ;;  %2316 = vmatprep.mubr.bf16.mxu0 %v2064_v32  ;;  %v2022_v9 = vmax.f32 %v1925_v39, 0.0 }
 0x1b3   : > { %v1928_v8 = vpop.f32.mrf.mxu1  ;;  %2317 = vmatmul.mubr.bf16.gmra.mxu0 %v2063_v33 }
 0x1b4   : > { %v2023_v50 = vmax.f32 %v1927_v40, 0.0  ;;  %v1929_v11 = vadd.f32 %v1928_v8, %v1736_v37 }
 0x1b5   : > { %v1932_v36 = vpop.f32.mrf.mxu1 }
 0x1b6   : > { %v2065_v7 = vpack.c.bf16 %v2023_v50, %v2021_v24  ;;  %v2024_v21 = vmax.f32 %v1929_v11, 0.0  ;;  %v1933_v49 = vadd.f32 %v1932_v36, %v8036_v52 }
 0x1b7   : > { %v1934_v29 = vpop.f32.mrf.mxu1 }
 0x1b8   : > { %v2066_v46 = vpack.c.bf16 %v2024_v21, %v2022_v9  ;;  %v1935_v18 = vadd.f32 %v1934_v29, %v8041_v55  ;;  %v2025_v1 = vmax.f32 %v1933_v49, 0.0  ;;  %v1756_v55 = vadd.f32 %v8061_v3, %v7986_v22  ;;  %v9515_v49 = vld [vmem:[#allocation6_spill] sm:$0xff] }
 0x1b9   : > { %v1936_v48 = vpop.f32.mrf.mxu1 }
 0x1ba   : > { %v1937_v54 = vadd.f32 %v1936_v48, %v8044_v57  ;;  %2324 = vmatprep.mubr.bf16.mxu0 %v2066_v46  ;;  %v2026_v42 = vmax.f32 %v1935_v18, 0.0  ;;  %v9517_v18 = vld [vmem:[#allocation7_spill] sm:$0xff] }
 0x1bb   : > { %v1938_v15 = vpop.f32.mrf.mxu1  ;;  %2325 = vmatmul.mubr.bf16.gmra.mxu0 %v2065_v7 }
 0x1bc   : > { %v2027_v19 = vmax.f32 %v1937_v54, 0.0  ;;  %v1939_v20 = vadd.f32 %v1938_v15, %v1746_v56  ;;  %v9518_v15 = vld [vmem:[#allocation8_spill] sm:$0xff] }
 0x1bd   : > { %v1942_v17 = vpop.f32.mrf.mxu1 }
 0x1be   : > { %v2067_v52 = vpack.c.bf16 %v2027_v19, %v2025_v1  ;;  %v2028_v14 = vmax.f32 %v1939_v20, 0.0  ;;  %v1943_v44 = vadd.f32 %v1942_v17, %v8051_v61 }
 0x1bf   : > { %v1944_v62 = vpop.f32.mrf.mxu1 }
 0x1c0   : > { %v2068_v25 = vpack.c.bf16 %v2028_v14, %v2026_v42  ;;  %v1945_v57 = vadd.f32 %v1944_v62, %v8056_v0  ;;  %v2029_v5 = vmax.f32 %v1943_v44, 0.0  ;;  %v1766_v0 = vadd.f32 %v8079_v13, %v7986_v22  ;;  %v9514_v13 = vld [vmem:[#allocation5_spill] sm:$0xff] }
 0x1c1   : > { %v1946_v51 = vpop.f32.mrf.mxu1 }
 0x1c2   : > { %v1947_v58 = vadd.f32 %v1946_v51, %v8059_v2  ;;  %2332 = vmatprep.mubr.bf16.mxu0 %v2068_v25  ;;  %v2030_v31 = vmax.f32 %v1945_v57, 0.0 }
 0x1c3   : > { %v1948_v63 = vpop.f32.mrf.mxu1  ;;  %2333 = vmatmul.mubr.bf16.gmra.mxu0 %v2067_v52 }
 0x1c4   : > { %v2031_v23 = vmax.f32 %v1947_v58, 0.0  ;;  %v1949_v28 = vadd.f32 %v1948_v63, %v1756_v55 }
 0x1c5   : > { %v1952_v30 = vpop.f32.mrf.mxu1 }
 0x1c6   : > { %v2069_v59 = vpack.c.bf16 %v2031_v23, %v2029_v5  ;;  %v2032_v60 = vmax.f32 %v1949_v28, 0.0  ;;  %v1953_v47 = vadd.f32 %v1952_v30, %v8066_v6  ;;  %v7331_v23 = vld [vmem:[%s9520_s9 + $0x38] sm:$0xff]  }
 0x1c7   : > { %v1954_v61 = vpop.f32.mrf.mxu1  ;;  %6738 = vmatprep.subr.bf16.mxu1 %v7331_v23 }
 0x1c8   : > { %v2070_v38 = vpack.c.bf16 %v2032_v60, %v2030_v31  ;;  %v1955_v2 = vadd.f32 %v1954_v61, %v8074_v10  ;;  %v2033_v33 = vmax.f32 %v1953_v47, 0.0  ;;  %v1776_v10 = vadd.f32 %v8094_v35, %v7986_v22  ;;  %v9516_v35 = vld [vmem:[#allocation9_spill] sm:$0xff] }
 0x1c9   : > { %v1956_v45 = vpop.f32.mrf.mxu1 }
 0x1ca   : > { %v1957_v3 = vadd.f32 %v1956_v45, %v8077_v12  ;;  %2340 = vmatprep.mubr.bf16.mxu0 %v2070_v38  ;;  %v2034_v32 = vmax.f32 %v1955_v2, 0.0 }
 0x1cb   : > { %v1958_v53 = vpop.f32.mrf.mxu1  ;;  %2341 = vmatmul.mubr.bf16.gmra.mxu0 %v2069_v59 }
 0x1cc   : > { %v2035_v4 = vmax.f32 %v1957_v3, 0.0  ;;  %v1959_v34 = vadd.f32 %v1958_v53, %v1766_v0 }
 0x1cd   : > { %v1962_v27 = vpop.f32.mrf.mxu1 }
 0x1ce   : > { %v2071_v41 = vpack.c.bf16 %v2035_v4, %v2033_v33  ;;  %v2036_v37 = vmax.f32 %v1959_v34, 0.0  ;;  %v1963_v39 = vadd.f32 %v1962_v27, %v8084_v16 }
 0x1cf   : > { %v1964_v6 = vpop.f32.mrf.mxu1 }
 0x1d0   : > { %v2072_v40 = vpack.c.bf16 %v2036_v37, %v2034_v32  ;;  %v1965_v12 = vadd.f32 %v1964_v6, %v8089_v26  ;;  %v2037_v11 = vmax.f32 %v1963_v39, 0.0  ;;  %v1786_v26 = vadd.f32 %v9516_v35, %v7986_v22  ;;  %v8241_v22 = vld [vmem:[%s9519_s29] ss:$0 sm:$0xff]  ;;  %v7332_v37 = vld [vmem:[%s9520_s9 + $0x30] sm:$0xff]   ;;  %s9524_s29 = sld [smem:[#allocation20_spill]] }
 0x1d1   : > { %v1966_v8 = vpop.f32.mrf.mxu1 }
 0x1d2   : > { %v1967_v24 = vadd.f32 %v1966_v8, %v9514_v13  ;;  %2348 = vmatprep.mubr.bf16.mxu0 %v2072_v40  ;;  %v2038_v21 = vmax.f32 %v1965_v12, 0.0  ;;  %v7333_v12 = vld [vmem:[%s9520_s9 + $0x28] sm:$0xff]  }
 0x1d3   : > { %v1968_v50 = vpop.f32.mrf.mxu1  ;;  %2349 = vmatmul.mubr.bf16.gmra.mxu0 %v2071_v41 }
 0x1d4   : > { %v2039_v36 = vmax.f32 %v1967_v24, 0.0  ;;  %v1969_v9 = vadd.f32 %v1968_v50, %v1776_v10 }
 0x1d5   : > { %v1972_v7 = vpop.f32.mrf.mxu1 }
 0x1d6   : > { %v2073_v43 = vpack.c.bf16 %v2039_v36, %v2037_v11  ;;  %v2040_v29 = vmax.f32 %v1969_v9, 0.0  ;;  %v1973_v46 = vadd.f32 %v1972_v7, %v9515_v49  ;;  %v7334_v7 = vld [vmem:[%s9520_s9 + $0x20] sm:$0xff]  }
 0x1d7   : > { %v1974_v16 = vpop.f32.mrf.mxu1 }
 0x1d8   : > { %v2074_v48 = vpack.c.bf16 %v2040_v29, %v2038_v21  ;;  %v1975_v54 = vadd.f32 %v1974_v16, %v9517_v18  ;;  %v2041_v20 = vmax.f32 %v1973_v46, 0.0  ;;  %v7335_v46 = vld [vmem:[%s9520_s9 + $0x18] sm:$0xff]  }
 0x1d9   : > { %v1976_v56 = vpop.f32.mrf.mxu1 }
 0x1da   : > { %v1977_v1 = vadd.f32 %v1976_v56, %v9518_v15  ;;  %2356 = vmatprep.mubr.bf16.mxu0 %v2074_v48  ;;  %v2042_v52 = vmax.f32 %v1975_v54, 0.0  ;;  %v7336_v15 = vld [vmem:[%s9520_s9 + $0x10] sm:$0xff]  }
 0x1db   : > { %v1978_v19 = vpop.f32.mrf.mxu1  ;;  %2357 = vmatmul.mubr.bf16.gmra.mxu0 %v2073_v43 }
 0x1dc   : > { %v2043_v17 = vmax.f32 %v1977_v1, 0.0  ;;  %v1979_v42 = vadd.f32 %v1978_v19, %v1786_v26 }
 0x1de   : > { %v2075_v14 = vpack.c.bf16 %v2043_v17, %v2041_v20  ;;  %v2044_v62 = vmax.f32 %v1979_v42, 0.0 }
 0x1e0   : > { %v2076_v44 = vpack.c.bf16 %v2044_v62, %v2042_v52  ;;  %v7337_v52 = vld [vmem:[%s9520_s9 + $0x8] sm:$0xff]  }
 0x1e2   : > { %2364 = vmatprep.mubr.bf16.mxu0 %v2076_v44 }
 0x1e3   : > { %2365 = vmatmul.mubr.bf16.gmra.mxu0 %v2075_v14 }
 0x22b   : > { %v6402_v25 = vpop.f32.mrf.mxu0 }
 0x22d   : > { %v6403_v51 = vpop.f32.mrf.mxu0 }
 0x22e   : > { %v6404_v55 = vadd.f32 %v6403_v51, %v6402_v25 }
 0x22f   : > { %v6405_v57 = vpop.f32.mrf.mxu0 }
 0x230   : > { %v2247_v63 = vadd.f32 %v6404_v55, %v8241_v22 }
 0x231   : > { %v6406_v58 = vpop.f32.mrf.mxu0 }
 0x232   : > { %v6407_v5 = vadd.f32 %v6406_v58, %v6405_v57  ;;  %v2373_v59 = vmax.f32 %v2247_v63, 0.0 }
 0x233   : > { %v6408_v28 = vpop.f32.mrf.mxu0 }
 0x234   : > { %v2250_v30 = vadd.f32 %v6407_v5, %v8241_v22 }
 0x235   : > { %v6409_v31 = vpop.f32.mrf.mxu0 }
 0x236   : > { %v2374_v60 = vmax.f32 %v2250_v30, 0.0  ;;  %v6410_v61 = vadd.f32 %v6409_v31, %v6408_v28 }
 0x237   : > { %v6411_v47 = vpop.f32.mrf.mxu0 }
 0x238   : > { %v2405_v38 = vpack.c.bf16 %v2374_v60, %v2373_v59  ;;  %v2255_v0 = vadd.f32 %v6410_v61, %v8241_v22 }
 0x239   : > { %v6412_v45 = vpop.f32.mrf.mxu0 }
 0x23a   : > { %v6413_v2 = vadd.f32 %v6412_v45, %v6411_v47  ;;  %6706 = vmatprep.mubr.bf16.mxu1 %v2405_v38  ;;  %v2375_v4 = vmax.f32 %v2255_v0, 0.0 }
 0x23b   : > { %v6414_v3 = vpop.f32.mrf.mxu0 }
 0x23c   : > { %v2258_v53 = vadd.f32 %v6413_v2, %v8241_v22 }
 0x23d   : > { %v6415_v33 = vpop.f32.mrf.mxu0 }
 0x23e   : > { %v2376_v34 = vmax.f32 %v2258_v53, 0.0  ;;  %v6416_v27 = vadd.f32 %v6415_v33, %v6414_v3 }
 0x23f   : > { %v6417_v32 = vpop.f32.mrf.mxu0 }
 0x240   : > { %v2406_v41 = vpack.c.bf16 %v2376_v34, %v2375_v4  ;;  %v2263_v39 = vadd.f32 %v6416_v27, %v8241_v22 }
 0x241   : > { %v6418_v6 = vpop.f32.mrf.mxu0 }
 0x242   : > { %v6419_v40 = vadd.f32 %v6418_v6, %v6417_v32  ;;  %6707 = vmatmul.mubr.bf16.vlgmr.msra.gmra.mxu1 %v2406_v41  ;;  %v2377_v24 = vmax.f32 %v2263_v39, 0.0 }
 0x243   : > { %v6420_v8 = vpop.f32.mrf.mxu0  ;;  %6739 = vmatpush3.bf16.msra.mxu1 %v7331_v23 }
 0x244   : > { %v2266_v10 = vadd.f32 %v6419_v40, %v8241_v22  ;;  %6740 = vmatprep.subr.bf16.mxu1 %v7332_v37 }
 0x245   : > { %v6421_v13 = vpop.f32.mrf.mxu0 }
 0x246   : > { %v2378_v50 = vmax.f32 %v2266_v10, 0.0  ;;  %v6422_v11 = vadd.f32 %v6421_v13, %v6420_v8 }
 0x247   : > { %v6423_v36 = vpop.f32.mrf.mxu0  ;;  %6741 = vmatpush3.bf16.msra.mxu1 %v7332_v37 }
 0x248   : > { %v2407_v9 = vpack.c.bf16 %v2378_v50, %v2377_v24  ;;  %6742 = vmatprep.subr.bf16.mxu1 %v7333_v12  ;;  %v2271_v43 = vadd.f32 %v6422_v11, %v8241_v22 }
 0x249   : > { %v6424_v21 = vpop.f32.mrf.mxu0 }
 0x24a   : > { %v6425_v29 = vadd.f32 %v6424_v21, %v6423_v36  ;;  %6710 = vmatprep.mubr.bf16.mxu1 %v2407_v9  ;;  %v2379_v56 = vmax.f32 %v2271_v43, 0.0 }
 0x24b   : > { %v6426_v16 = vpop.f32.mrf.mxu0  ;;  %6743 = vmatpush3.bf16.msra.mxu1 %v7333_v12 }
 0x24c   : > { %v2274_v49 = vadd.f32 %v6425_v29, %v8241_v22  ;;  %6744 = vmatprep.subr.bf16.mxu1 %v7334_v7 }
 0x24d   : > { %v6427_v48 = vpop.f32.mrf.mxu0 }
 0x24e   : > { %v2380_v35 = vmax.f32 %v2274_v49, 0.0  ;;  %v6428_v26 = vadd.f32 %v6427_v48, %v6426_v16 }
 0x24f   : > { %v6429_v18 = vpop.f32.mrf.mxu0  ;;  %6745 = vmatpush3.bf16.msra.mxu1 %v7334_v7 }
 0x250   : > { %v2408_v54 = vpack.c.bf16 %v2380_v35, %v2379_v56  ;;  %6746 = vmatprep.subr.bf16.mxu1 %v7335_v46  ;;  %v2279_v19 = vadd.f32 %v6428_v26, %v8241_v22 }
 0x251   : > { %v6430_v1 = vpop.f32.mrf.mxu0 }
 0x252   : > { %v6431_v20 = vadd.f32 %v6430_v1, %v6429_v18  ;;  %6711 = vmatmul.mubr.bf16.gmra.mxu1 %v2408_v54  ;;  %v2381_v62 = vmax.f32 %v2279_v19, 0.0 }
 0x253   : > { %v6432_v17 = vpop.f32.mrf.mxu0  ;;  %6747 = vmatpush3.bf16.msra.mxu1 %v7335_v46 }
 0x254   : > { %v2282_v42 = vadd.f32 %v6431_v20, %v8241_v22  ;;  %6748 = vmatprep.subr.bf16.mxu1 %v7336_v15 }
 0x255   : > { %v6433_v14 = vpop.f32.mrf.mxu0 }
 0x256   : > { %v2382_v44 = vmax.f32 %v2282_v42, 0.0  ;;  %v6434_v25 = vadd.f32 %v6433_v14, %v6432_v17 }
 0x257   : > { %v6435_v51 = vpop.f32.mrf.mxu0  ;;  %6749 = vmatpush3.bf16.msra.mxu1 %v7336_v15 }
 0x258   : > { %v2409_v55 = vpack.c.bf16 %v2382_v44, %v2381_v62  ;;  %6750 = vmatprep.subr.bf16.mxu1 %v7337_v52  ;;  %v2287_v58 = vadd.f32 %v6434_v25, %v8241_v22 }
 0x259   : > { %v6436_v57 = vpop.f32.mrf.mxu0 }
 0x25a   : > { %v6437_v63 = vadd.f32 %v6436_v57, %v6435_v51  ;;  %6714 = vmatprep.mubr.bf16.mxu1 %v2409_v55  ;;  %v2383_v30 = vmax.f32 %v2287_v58, 0.0 }
 0x25b   : > { %v6438_v5 = vpop.f32.mrf.mxu0  ;;  %6751 = vmatpush3.bf16.msra.mxu1 %v7337_v52 }
 0x25c   : > { %v2290_v23 = vadd.f32 %v6437_v63, %v8241_v22 }
 0x25d   : > { %v6439_v28 = vpop.f32.mrf.mxu0 }
 0x25e   : > { %v2384_v31 = vmax.f32 %v2290_v23, 0.0  ;;  %v6440_v59 = vadd.f32 %v6439_v28, %v6438_v5 }
 0x25f   : > { %v6441_v60 = vpop.f32.mrf.mxu0 }
 0x260   : > { %v2410_v61 = vpack.c.bf16 %v2384_v31, %v2383_v30  ;;  %v2295_v38 = vadd.f32 %v6440_v59, %v8241_v22  ;;  %v7338_v30 = vld [vmem:[%s9520_s9] sm:$0xff]  }
 0x261   : > { %v6442_v47 = vpop.f32.mrf.mxu0  ;;  %6752 = vmatprep.subr.bf16.mxu1 %v7338_v30 }
 0x262   : > { %v6443_v45 = vadd.f32 %v6442_v47, %v6441_v60  ;;  %6715 = vmatmul.mubr.bf16.gmra.mxu1 %v2410_v61  ;;  %v2385_v53 = vmax.f32 %v2295_v38, 0.0 }
 0x263   : > { %v6444_v0 = vpop.f32.mrf.mxu0  ;;  %6753 = vmatpush3.bf16.msra.mxu1 %v7338_v30 }
 0x264   : > { %v2298_v2 = vadd.f32 %v6443_v45, %v8241_v22 }
 0x265   : > { %v6445_v3 = vpop.f32.mrf.mxu0 }
 0x266   : > { %v2386_v33 = vmax.f32 %v2298_v2, 0.0  ;;  %v6446_v4 = vadd.f32 %v6445_v3, %v6444_v0 }
 0x267   : > { %v6447_v34 = vpop.f32.mrf.mxu0 }
 0x268   : > { %v2411_v27 = vpack.c.bf16 %v2386_v33, %v2385_v53  ;;  %v2303_v41 = vadd.f32 %v6446_v4, %v8241_v22 }
 0x269   : > { %v6448_v32 = vpop.f32.mrf.mxu0 }
 0x26a   : > { %v6449_v37 = vadd.f32 %v6448_v32, %v6447_v34  ;;  %6718 = vmatprep.mubr.bf16.mxu1 %v2411_v27  ;;  %v2387_v8 = vmax.f32 %v2303_v41, 0.0 }
 0x26b   : > { %v6450_v6 = vpop.f32.mrf.mxu0 }
 0x26c   : > { %v2306_v39 = vadd.f32 %v6449_v37, %v8241_v22 }
 0x26d   : > { %v6451_v40 = vpop.f32.mrf.mxu0 }
 0x26e   : > { %v2388_v10 = vmax.f32 %v2306_v39, 0.0  ;;  %v6452_v12 = vadd.f32 %v6451_v40, %v6450_v6 }
 0x26f   : > { %v6453_v13 = vpop.f32.mrf.mxu0 }
 0x270   : > { %v2412_v24 = vpack.c.bf16 %v2388_v10, %v2387_v8  ;;  %v2311_v11 = vadd.f32 %v6452_v12, %v8241_v22 }
 0x271   : > { %v6454_v50 = vpop.f32.mrf.mxu0 }
 0x272   : > { %v6455_v36 = vadd.f32 %v6454_v50, %v6453_v13  ;;  %6719 = vmatmul.mubr.bf16.gmra.mxu1 %v2412_v24  ;;  %v2389_v43 = vmax.f32 %v2311_v11, 0.0 }
 0x273   : > { %v6456_v9 = vpop.f32.mrf.mxu0 }
 0x274   : > { %v2314_v7 = vadd.f32 %v6455_v36, %v8241_v22 }
 0x275   : > { %v6457_v21 = vpop.f32.mrf.mxu0 }
 0x276   : > { %v2390_v29 = vmax.f32 %v2314_v7, 0.0  ;;  %v6458_v16 = vadd.f32 %v6457_v21, %v6456_v9 }
 0x277   : > { %v6459_v49 = vpop.f32.mrf.mxu0 }
 0x278   : > { %v2413_v46 = vpack.c.bf16 %v2390_v29, %v2389_v43  ;;  %v2319_v56 = vadd.f32 %v6458_v16, %v8241_v22 }
 0x279   : > { %v6460_v48 = vpop.f32.mrf.mxu0 }
 0x27a   : > { %v6461_v35 = vadd.f32 %v6460_v48, %v6459_v49  ;;  %6722 = vmatprep.mubr.bf16.mxu1 %v2413_v46  ;;  %v2391_v15 = vmax.f32 %v2319_v56, 0.0 }
 0x27b   : > { %v6462_v26 = vpop.f32.mrf.mxu0 }
 0x27c   : > { %v2322_v18 = vadd.f32 %v6461_v35, %v8241_v22 }
 0x27d   : > { %v6463_v54 = vpop.f32.mrf.mxu0 }
 0x27e   : > { %v2392_v1 = vmax.f32 %v2322_v18, 0.0  ;;  %v6464_v19 = vadd.f32 %v6463_v54, %v6462_v26 }
 0x27f   : > { %v6465_v20 = vpop.f32.mrf.mxu0 }
 0x280   : > { %v2414_v17 = vpack.c.bf16 %v2392_v1, %v2391_v15  ;;  %v2327_v52 = vadd.f32 %v6464_v19, %v8241_v22 }
 0x281   : > { %v6466_v42 = vpop.f32.mrf.mxu0 }
 0x282   : > { %v6467_v14 = vadd.f32 %v6466_v42, %v6465_v20  ;;  %6723 = vmatmul.mubr.bf16.gmra.mxu1 %v2414_v17  ;;  %v2393_v51 = vmax.f32 %v2327_v52, 0.0  ;;  %v7339_v42 = vld [vmem:[%s9521_s0 + $0x38] sm:$0xff]   ;;  %v7340_v52 = vld [vmem:[%s9521_s0 + $0x30] sm:$0xff]  }
 0x283   : > { %v6468_v62 = vpop.f32.mrf.mxu0  ;;  %6786 = vmatprep.subr.bf16.mxu0 %v7339_v42 }
 0x284   : > { %v2330_v44 = vadd.f32 %v6467_v14, %v8241_v22  ;;  %6787 = vmatpush3.bf16.msra.mxu0 %v7339_v42  ;;  %v7342_v14 = vld [vmem:[%s9521_s0 + $0x20] sm:$0xff]  }
 0x285   : > { %v6469_v25 = vpop.f32.mrf.mxu0  ;;  %6788 = vmatprep.subr.bf16.mxu0 %v7340_v52 }
 0x286   : > { %v2394_v55 = vmax.f32 %v2330_v44, 0.0  ;;  %v6470_v57 = vadd.f32 %v6469_v25, %v6468_v62  ;;  %v7343_v62 = vld [vmem:[%s9521_s0 + $0x18] sm:$0xff]  }
 0x287   : > { %v6471_v58 = vpop.f32.mrf.mxu0 }
 0x288   : > { %v2415_v63 = vpack.c.bf16 %v2394_v55, %v2393_v51  ;;  %v2335_v23 = vadd.f32 %v6470_v57, %v8241_v22  ;;  %6789 = vmatpush3.bf16.msra.mxu0 %v7340_v52  ;;  %v7344_v51 = vld [vmem:[%s9521_s0 + $0x10] sm:$0xff]   ;;  %v8320_v55 = vld [vmem:[%s9522_s8] ss:$0 sm:$0xff] }
 0x289   : > { %v6472_v5 = vpop.f32.mrf.mxu0 }
 0x28a   : > { %v6473_v28 = vadd.f32 %v6472_v5, %v6471_v58  ;;  %6726 = vmatprep.mubr.bf16.mxu1 %v2415_v63  ;;  %v2395_v61 = vmax.f32 %v2335_v23, 0.0 }
 0x28b   : > { %v6474_v31 = vpop.f32.mrf.mxu0 }
 0x28c   : > { %v2338_v59 = vadd.f32 %v6473_v28, %v8241_v22  ;;  %v7345_v28 = vld [vmem:[%s9521_s0 + $0x8] sm:$0xff]  }
 0x28d   : > { %v6475_v60 = vpop.f32.mrf.mxu0 }
 0x28e   : > { %v2396_v47 = vmax.f32 %v2338_v59, 0.0  ;;  %v6476_v38 = vadd.f32 %v6475_v60, %v6474_v31 }
 0x28f   : > { %v6477_v45 = vpop.f32.mrf.mxu0 }
 0x290   : > { %v2416_v0 = vpack.c.bf16 %v2396_v47, %v2395_v61  ;;  %v2343_v3 = vadd.f32 %v6476_v38, %v8241_v22  ;;  %v7346_v47 = vld [vmem:[%s9521_s0] sm:$0xff]  }
 0x291   : > { %v6478_v2 = vpop.f32.mrf.mxu0 }
 0x292   : > { %v6479_v53 = vadd.f32 %v6478_v2, %v6477_v45  ;;  %6727 = vmatmul.mubr.bf16.gmra.mxu1 %v2416_v0  ;;  %v2397_v27 = vmax.f32 %v2343_v3, 0.0 }
 0x293   : > { %v6480_v33 = vpop.f32.mrf.mxu0 }
 0x294   : > { %v2346_v4 = vadd.f32 %v6479_v53, %v8241_v22 }
 0x295   : > { %v6481_v34 = vpop.f32.mrf.mxu0 }
 0x296   : > { %v2398_v32 = vmax.f32 %v2346_v4, 0.0  ;;  %v6482_v41 = vadd.f32 %v6481_v34, %v6480_v33 }
 0x297   : > { %v6483_v37 = vpop.f32.mrf.mxu0 }
 0x298   : > { %v2417_v6 = vpack.c.bf16 %v2398_v32, %v2397_v27  ;;  %v2351_v40 = vadd.f32 %v6482_v41, %v8241_v22 }
 0x299   : > { %v6484_v39 = vpop.f32.mrf.mxu0 }
 0x29a   : > { %v6485_v8 = vadd.f32 %v6484_v39, %v6483_v37  ;;  %6730 = vmatprep.mubr.bf16.mxu1 %v2417_v6  ;;  %v2399_v24 = vmax.f32 %v2351_v40, 0.0 }
 0x29b   : > { %v6486_v10 = vpop.f32.mrf.mxu0 }
 0x29c   : > { %v2354_v12 = vadd.f32 %v6485_v8, %v8241_v22 }
 0x29d   : > { %v6487_v13 = vpop.f32.mrf.mxu0 }
 0x29e   : > { %v2400_v50 = vmax.f32 %v2354_v12, 0.0  ;;  %v6488_v11 = vadd.f32 %v6487_v13, %v6486_v10 }
 0x29f   : > { %v6489_v36 = vpop.f32.mrf.mxu0 }
 0x2a0   : > { %v2418_v9 = vpack.c.bf16 %v2400_v50, %v2399_v24  ;;  %v2359_v21 = vadd.f32 %v6488_v11, %v8241_v22 }
 0x2a1   : > { %v6490_v7 = vpop.f32.mrf.mxu0 }
 0x2a2   : > { %v6491_v43 = vadd.f32 %v6490_v7, %v6489_v36  ;;  %6731 = vmatmul.mubr.bf16.gmra.mxu1 %v2418_v9  ;;  %v2401_v46 = vmax.f32 %v2359_v21, 0.0 }
 0x2a3   : > { %v6492_v29 = vpop.f32.mrf.mxu0 }
 0x2a4   : > { %v2362_v16 = vadd.f32 %v6491_v43, %v8241_v22 }
 0x2a5   : > { %v6493_v49 = vpop.f32.mrf.mxu0 }
 0x2a6   : > { %v2402_v48 = vmax.f32 %v2362_v16, 0.0  ;;  %v6494_v56 = vadd.f32 %v6493_v49, %v6492_v29 }
 0x2a7   : > { %v6495_v35 = vpop.f32.mrf.mxu0 }
 0x2a8   : > { %v2419_v26 = vpack.c.bf16 %v2402_v48, %v2401_v46  ;;  %v2367_v54 = vadd.f32 %v6494_v56, %v8241_v22 }
 0x2a9   : > { %v6496_v18 = vpop.f32.mrf.mxu0 }
 0x2aa   : > { %v6497_v15 = vadd.f32 %v6496_v18, %v6495_v35  ;;  %6734 = vmatprep.mubr.bf16.mxu1 %v2419_v26  ;;  %v2403_v19 = vmax.f32 %v2367_v54, 0.0 }
 0x2ac   : > { %v2370_v1 = vadd.f32 %v6497_v15, %v8241_v22  ;;  %v7341_v22 = vld [vmem:[%s9521_s0 + $0x28] sm:$0xff]   ;;  %s8497_s0 = scalar_lea.vmem %s9475_s25, %s6081_s1 }
 0x2ad   : > { %6790 = vmatprep.subr.bf16.mxu0 %v7341_v22 }
 0x2ae   : > { %v2404_v20 = vmax.f32 %v2370_v1, 0.0  ;;  %6791 = vmatpush3.bf16.msra.mxu0 %v7341_v22 }
 0x2af   : > { %6792 = vmatprep.subr.bf16.mxu0 %v7342_v14 }
 0x2b0   : > { %v2420_v17 = vpack.c.bf16 %v2404_v20, %v2403_v19 }
 0x2b2   : > { %6735 = vmatmul.mubr.bf16.gmra.mxu1 %v2420_v17  ;;  %6793 = vmatpush3.bf16.msra.mxu0 %v7342_v14 }
 0x2b3   : > { %6794 = vmatprep.subr.bf16.mxu0 %v7343_v62 }
 0x2b6   : > { %6795 = vmatpush3.bf16.msra.mxu0 %v7343_v62 }
 0x2b7   : > { %6796 = vmatprep.subr.bf16.mxu0 %v7344_v51 }
 0x2ba   : > { %6797 = vmatpush3.bf16.msra.mxu0 %v7344_v51 }
 0x2bb   : > { %6798 = vmatprep.subr.bf16.mxu0 %v7345_v28 }
 0x2be   : > { %6799 = vmatpush3.bf16.msra.mxu0 %v7345_v28 }
 0x2bf   : > { %6800 = vmatprep.subr.bf16.mxu0 %v7346_v47 }
 0x2c2   : > { %6801 = vmatpush3.bf16.msra.mxu0 %v7346_v47 }
 0x302   : > { %v6708_v44 = vpop.f32.mrf.mxu1 }
 0x303   : > { %v2535_v5 = vadd.f32 %v6708_v44, %v8320_v55 }
 0x304   : > { %v2526_v25 = vpop.f32.mrf.mxu1 }
 0x305   : > { %v2527_v58 = vadd.f32 %v8320_v55, %v2526_v25  ;;  %v2655_v61 = vmax.f32 %v2535_v5, 0.0 }
 0x306   : > { %v6709_v57 = vpop.f32.mrf.mxu1 }
 0x307   : > { %v2538_v63 = vadd.f32 %v6709_v57, %v8320_v55  ;;  %v2653_v59 = vmax.f32 %v2527_v58, 0.0 }
 0x308   : > { %v2529_v23 = vpop.f32.mrf.mxu1 }
 0x309   : > { %v2530_v30 = vadd.f32 %v8320_v55, %v2529_v23  ;;  %v2656_v31 = vmax.f32 %v2538_v63, 0.0 }
 0x30b   : > { %v2654_v60 = vmax.f32 %v2530_v30, 0.0  ;;  %v2686_v45 = vpack.c.bf16 %v2656_v31, %v2655_v61 }
 0x30d   : > { %v2685_v38 = vpack.c.bf16 %v2654_v60, %v2653_v59 }
 0x30f   : > { %6754 = vmatprep.mubr.bf16.mxu1 %v2685_v38 }
 0x310   : > { %6755 = vmatmul.mubr.bf16.vlgmr.msra.gmra.mxu1 %v2686_v45 }
 0x312   : > { %v6712_v0 = vpop.f32.mrf.mxu1 }
 0x313   : > { %v2551_v4 = vadd.f32 %v6712_v0, %v8320_v55 }
 0x314   : > { %v2542_v2 = vpop.f32.mrf.mxu1 }
 0x315   : > { %v2543_v53 = vadd.f32 %v8320_v55, %v2542_v2  ;;  %v2659_v6 = vmax.f32 %v2551_v4, 0.0 }
 0x316   : > { %v6713_v3 = vpop.f32.mrf.mxu1 }
 0x317   : > { %v2554_v33 = vadd.f32 %v6713_v3, %v8320_v55  ;;  %v2657_v41 = vmax.f32 %v2543_v53, 0.0 }
 0x318   : > { %v2545_v34 = vpop.f32.mrf.mxu1 }
 0x319   : > { %v2546_v27 = vadd.f32 %v8320_v55, %v2545_v34  ;;  %v2660_v32 = vmax.f32 %v2554_v33, 0.0 }
 0x31b   : > { %v2658_v37 = vmax.f32 %v2546_v27, 0.0  ;;  %v2688_v40 = vpack.c.bf16 %v2660_v32, %v2659_v6 }
 0x31d   : > { %v2687_v39 = vpack.c.bf16 %v2658_v37, %v2657_v41 }
 0x31f   : > { %6758 = vmatprep.mubr.bf16.mxu1 %v2687_v39 }
 0x320   : > { %6759 = vmatmul.mubr.bf16.gmra.mxu1 %v2688_v40 }
 0x322   : > { %v6716_v8 = vpop.f32.mrf.mxu1 }
 0x323   : > { %v2567_v50 = vadd.f32 %v6716_v8, %v8320_v55 }
 0x324   : > { %v2558_v10 = vpop.f32.mrf.mxu1 }
 0x325   : > { %v2559_v13 = vadd.f32 %v8320_v55, %v2558_v10  ;;  %v2663_v43 = vmax.f32 %v2567_v50, 0.0 }
 0x326   : > { %v6717_v12 = vpop.f32.mrf.mxu1 }
 0x327   : > { %v2570_v24 = vadd.f32 %v6717_v12, %v8320_v55  ;;  %v2661_v7 = vmax.f32 %v2559_v13, 0.0 }
 0x328   : > { %v2561_v11 = vpop.f32.mrf.mxu1 }
 0x329   : > { %v2562_v36 = vadd.f32 %v8320_v55, %v2561_v11  ;;  %v2664_v9 = vmax.f32 %v2570_v24, 0.0 }
 0x32b   : > { %v2662_v21 = vmax.f32 %v2562_v36, 0.0  ;;  %v2690_v16 = vpack.c.bf16 %v2664_v9, %v2663_v43 }
 0x32d   : > { %v2689_v29 = vpack.c.bf16 %v2662_v21, %v2661_v7 }
 0x32f   : > { %6762 = vmatprep.mubr.bf16.mxu1 %v2689_v29 }
 0x330   : > { %6763 = vmatmul.mubr.bf16.gmra.mxu1 %v2690_v16 }
 0x332   : > { %v6720_v49 = vpop.f32.mrf.mxu1 }
 0x333   : > { %v2583_v26 = vadd.f32 %v6720_v49, %v8320_v55 }
 0x334   : > { %v2574_v46 = vpop.f32.mrf.mxu1 }
 0x335   : > { %v2575_v56 = vadd.f32 %v8320_v55, %v2574_v46  ;;  %v2667_v20 = vmax.f32 %v2583_v26, 0.0 }
 0x336   : > { %v6721_v48 = vpop.f32.mrf.mxu1 }
 0x337   : > { %v2586_v35 = vadd.f32 %v6721_v48, %v8320_v55  ;;  %v2665_v1 = vmax.f32 %v2575_v56, 0.0 }
 0x338   : > { %v2577_v18 = vpop.f32.mrf.mxu1 }
 0x339   : > { %v2578_v54 = vadd.f32 %v8320_v55, %v2577_v18  ;;  %v2668_v15 = vmax.f32 %v2586_v35, 0.0 }
 0x33b   : > { %v2666_v19 = vmax.f32 %v2578_v54, 0.0  ;;  %v2692_v42 = vpack.c.bf16 %v2668_v15, %v2667_v20  ;;  %v7347_v54 = vld [vmem:[%s9461_s11 + $0x38] sm:$0xff]   ;;  %v7348_v15 = vld [vmem:[%s9461_s11 + $0x30] sm:$0xff]   ;;  %v8372_v20 = vld [vmem:[%s9523_s4] ss:$0 sm:$0xff] }
 0x33c   : > { %6834 = vmatprep.subr.bf16.mxu1 %v7347_v54 }
 0x33d   : > { %v2691_v17 = vpack.c.bf16 %v2666_v19, %v2665_v1  ;;  %6835 = vmatpush3.bf16.msra.mxu1 %v7347_v54  ;;  %v7349_v19 = vld [vmem:[%s9461_s11 + $0x28] sm:$0xff]  }
 0x33e   : > { %6836 = vmatprep.subr.bf16.mxu1 %v7348_v15 }
 0x33f   : > { %6766 = vmatprep.mubr.bf16.mxu1 %v2691_v17 }
 0x340   : > { %6767 = vmatmul.mubr.bf16.gmra.mxu1 %v2692_v42 }
 0x341   : > { %6837 = vmatpush3.bf16.msra.mxu1 %v7348_v15 }
 0x342   : > { %v6724_v52 = vpop.f32.mrf.mxu1  ;;  %6838 = vmatprep.subr.bf16.mxu1 %v7349_v19 }
 0x343   : > { %v2599_v25 = vadd.f32 %v6724_v52, %v8320_v55 }
 0x344   : > { %v2590_v22 = vpop.f32.mrf.mxu1 }
 0x345   : > { %v2591_v62 = vadd.f32 %v8320_v55, %v2590_v22  ;;  %v2671_v23 = vmax.f32 %v2599_v25, 0.0  ;;  %6839 = vmatpush3.bf16.msra.mxu1 %v7349_v19 }
 0x346   : > { %v6725_v14 = vpop.f32.mrf.mxu1 }
 0x347   : > { %v2602_v44 = vadd.f32 %v6725_v14, %v8320_v55  ;;  %v2669_v63 = vmax.f32 %v2591_v62, 0.0  ;;  %v7350_v62 = vld [vmem:[%s9461_s11 + $0x20] sm:$0xff]  }
 0x348   : > { %v2593_v51 = vpop.f32.mrf.mxu1  ;;  %6840 = vmatprep.subr.bf16.mxu1 %v7350_v62 }
 0x349   : > { %v2594_v57 = vadd.f32 %v8320_v55, %v2593_v51  ;;  %v2672_v58 = vmax.f32 %v2602_v44, 0.0  ;;  %6841 = vmatpush3.bf16.msra.mxu1 %v7350_v62 }
 0x34b   : > { %v2670_v5 = vmax.f32 %v2594_v57, 0.0  ;;  %v2694_v30 = vpack.c.bf16 %v2672_v58, %v2671_v23 }
 0x34d   : > { %v2693_v28 = vpack.c.bf16 %v2670_v5, %v2669_v63  ;;  %v7351_v63 = vld [vmem:[%s9461_s11 + $0x18] sm:$0xff]  }
 0x34e   : > { %6842 = vmatprep.subr.bf16.mxu1 %v7351_v63 }
 0x34f   : > { %6770 = vmatprep.mubr.bf16.mxu1 %v2693_v28  ;;  %v7352_v28 = vld [vmem:[%s9461_s11 + $0x10] sm:$0xff]   ;;  %6843 = vmatpush3.bf16.msra.mxu1 %v7351_v63 }
 0x350   : > { %6771 = vmatmul.mubr.bf16.gmra.mxu1 %v2694_v30  ;;  %6844 = vmatprep.subr.bf16.mxu1 %v7352_v28 }
 0x352   : > { %v6728_v31 = vpop.f32.mrf.mxu1 }
 0x353   : > { %v2615_v38 = vadd.f32 %v6728_v31, %v8320_v55  ;;  %6845 = vmatpush3.bf16.msra.mxu1 %v7352_v28 }
 0x354   : > { %v2606_v59 = vpop.f32.mrf.mxu1 }
 0x355   : > { %v2607_v61 = vadd.f32 %v8320_v55, %v2606_v59  ;;  %v2675_v33 = vmax.f32 %v2615_v38, 0.0  ;;  %v7353_v59 = vld [vmem:[%s9461_s11 + $0x8] sm:$0xff]  }
 0x356   : > { %v6729_v60 = vpop.f32.mrf.mxu1  ;;  %6846 = vmatprep.subr.bf16.mxu1 %v7353_v59 }
 0x357   : > { %v2618_v47 = vadd.f32 %v6729_v60, %v8320_v55  ;;  %v2673_v3 = vmax.f32 %v2607_v61, 0.0  ;;  %6847 = vmatpush3.bf16.msra.mxu1 %v7353_v59 }
 0x358   : > { %v2609_v45 = vpop.f32.mrf.mxu1 }
 0x359   : > { %v2610_v0 = vadd.f32 %v8320_v55, %v2609_v45  ;;  %v2676_v2 = vmax.f32 %v2618_v47, 0.0 }
 0x35b   : > { %v2674_v53 = vmax.f32 %v2610_v0, 0.0  ;;  %v2696_v34 = vpack.c.bf16 %v2676_v2, %v2675_v33 }
 0x35d   : > { %v2695_v4 = vpack.c.bf16 %v2674_v53, %v2673_v3 }
 0x35f   : > { %6774 = vmatprep.mubr.bf16.mxu1 %v2695_v4 }
 0x360   : > { %6775 = vmatmul.mubr.bf16.gmra.mxu1 %v2696_v34 }
 0x362   : > { %v6732_v27 = vpop.f32.mrf.mxu1 }
 0x363   : > { %v2631_v39 = vadd.f32 %v6732_v27, %v8320_v55 }
 0x364   : > { %v2622_v32 = vpop.f32.mrf.mxu1 }
 0x365   : > { %v2623_v37 = vadd.f32 %v8320_v55, %v2622_v32  ;;  %v2679_v24 = vmax.f32 %v2631_v39, 0.0 }
 0x366   : > { %v6733_v41 = vpop.f32.mrf.mxu1 }
 0x367   : > { %v2634_v6 = vadd.f32 %v6733_v41, %v8320_v55  ;;  %v2677_v12 = vmax.f32 %v2623_v37, 0.0 }
 0x368   : > { %v2625_v40 = vpop.f32.mrf.mxu1 }
 0x369   : > { %v2626_v8 = vadd.f32 %v8320_v55, %v2625_v40  ;;  %v2680_v10 = vmax.f32 %v2634_v6, 0.0 }
 0x36b   : > { %v2678_v13 = vmax.f32 %v2626_v8, 0.0  ;;  %v2698_v11 = vpack.c.bf16 %v2680_v10, %v2679_v24 }
 0x36d   : > { %v2697_v50 = vpack.c.bf16 %v2678_v13, %v2677_v12 }
 0x36f   : > { %6778 = vmatprep.mubr.bf16.mxu1 %v2697_v50 }
 0x370   : > { %6779 = vmatmul.mubr.bf16.gmra.mxu1 %v2698_v11 }
 0x372   : > { %v6736_v36 = vpop.f32.mrf.mxu1 }
 0x373   : > { %v2647_v29 = vadd.f32 %v6736_v36, %v8320_v55 }
 0x374   : > { %v2638_v9 = vpop.f32.mrf.mxu1 }
 0x375   : > { %v2639_v21 = vadd.f32 %v8320_v55, %v2638_v9  ;;  %v2683_v35 = vmax.f32 %v2647_v29, 0.0 }
 0x376   : > { %v6737_v7 = vpop.f32.mrf.mxu1 }
 0x377   : > { %v2650_v43 = vadd.f32 %v6737_v7, %v8320_v55  ;;  %v2681_v48 = vmax.f32 %v2639_v21, 0.0 }
 0x378   : > { %v2641_v16 = vpop.f32.mrf.mxu1 }
 0x379   : > { %v2642_v49 = vadd.f32 %v8320_v55, %v2641_v16  ;;  %v2684_v46 = vmax.f32 %v2650_v43, 0.0 }
 0x37b   : > { %v2682_v56 = vmax.f32 %v2642_v49, 0.0  ;;  %v2700_v18 = vpack.c.bf16 %v2684_v46, %v2683_v35 }
 0x37d   : > { %v2699_v26 = vpack.c.bf16 %v2682_v56, %v2681_v48 }
 0x37f   : > { %6782 = vmatprep.mubr.bf16.mxu1 %v2699_v26 }
 0x380   : > { %6783 = vmatmul.mubr.bf16.gmra.mxu1 %v2700_v18 }
 0x3d0   : > { %v6756_v1 = vpop.f32.mrf.mxu1 }
 0x3d1   : > { %v2815_v22 = vadd.f32 %v6756_v1, %v8372_v20 }
 0x3d2   : > { %v2806_v55 = vpop.f32.mrf.mxu1 }
 0x3d3   : > { %v2807_v42 = vadd.f32 %v8372_v20, %v2806_v55  ;;  %v2935_v58 = vmax.f32 %v2815_v22, 0.0 }
 0x3d4   : > { %v6757_v17 = vpop.f32.mrf.mxu1 }
 0x3d5   : > { %v2818_v52 = vadd.f32 %v6757_v17, %v8372_v20  ;;  %v2933_v51 = vmax.f32 %v2807_v42, 0.0 }
 0x3d6   : > { %v2809_v14 = vpop.f32.mrf.mxu1 }
 0x3d7   : > { %v2810_v44 = vadd.f32 %v8372_v20, %v2809_v14  ;;  %v2936_v25 = vmax.f32 %v2818_v52, 0.0 }
 0x3d9   : > { %v2934_v57 = vmax.f32 %v2810_v44, 0.0  ;;  %v2966_v23 = vpack.c.bf16 %v2936_v25, %v2935_v58 }
 0x3db   : > { %v2965_v5 = vpack.c.bf16 %v2934_v57, %v2933_v51 }
 0x3dd   : > { %6802 = vmatprep.mubr.bf16.mxu0 %v2965_v5 }
 0x3de   : > { %6803 = vmatmul.mubr.bf16.vlgmr.msra.gmra.mxu0 %v2966_v23 }
 0x3e0   : > { %v6760_v30 = vpop.f32.mrf.mxu1 }
 0x3e1   : > { %v2831_v38 = vadd.f32 %v6760_v30, %v8372_v20 }
 0x3e2   : > { %v2822_v31 = vpop.f32.mrf.mxu1 }
 0x3e3   : > { %v2823_v61 = vadd.f32 %v8372_v20, %v2822_v31  ;;  %v2939_v33 = vmax.f32 %v2831_v38, 0.0  ;;  %v7354_v31 = vld [vmem:[%s9461_s11] sm:$0xff]  }
 0x3e4   : > { %v6761_v60 = vpop.f32.mrf.mxu1  ;;  %6848 = vmatprep.subr.bf16.mxu1 %v7354_v31 }
 0x3e5   : > { %v2834_v47 = vadd.f32 %v6761_v60, %v8372_v20  ;;  %v2937_v3 = vmax.f32 %v2823_v61, 0.0  ;;  %6849 = vmatpush3.bf16.msra.mxu1 %v7354_v31 }
 0x3e6   : > { %v2825_v45 = vpop.f32.mrf.mxu1 }
 0x3e7   : > { %v2826_v0 = vadd.f32 %v8372_v20, %v2825_v45  ;;  %v2940_v2 = vmax.f32 %v2834_v47, 0.0 }
 0x3e9   : > { %v2938_v53 = vmax.f32 %v2826_v0, 0.0  ;;  %v2968_v34 = vpack.c.bf16 %v2940_v2, %v2939_v33 }
 0x3eb   : > { %v2967_v4 = vpack.c.bf16 %v2938_v53, %v2937_v3 }
 0x3ed   : > { %6806 = vmatprep.mubr.bf16.mxu0 %v2967_v4 }
 0x3ee   : > { %6807 = vmatmul.mubr.bf16.gmra.mxu0 %v2968_v34 }
 0x3f0   : > { %v6764_v27 = vpop.f32.mrf.mxu1 }
 0x3f1   : > { %v2847_v39 = vadd.f32 %v6764_v27, %v8372_v20 }
 0x3f2   : > { %v2838_v32 = vpop.f32.mrf.mxu1 }
 0x3f3   : > { %v2839_v37 = vadd.f32 %v8372_v20, %v2838_v32  ;;  %v2943_v24 = vmax.f32 %v2847_v39, 0.0 }
 0x3f4   : > { %v6765_v41 = vpop.f32.mrf.mxu1 }
 0x3f5   : > { %v2850_v6 = vadd.f32 %v6765_v41, %v8372_v20  ;;  %v2941_v12 = vmax.f32 %v2839_v37, 0.0 }
 0x3f6   : > { %v2841_v40 = vpop.f32.mrf.mxu1 }
 0x3f7   : > { %v2842_v8 = vadd.f32 %v8372_v20, %v2841_v40  ;;  %v2944_v10 = vmax.f32 %v2850_v6, 0.0 }
 0x3f9   : > { %v2942_v13 = vmax.f32 %v2842_v8, 0.0  ;;  %v2970_v11 = vpack.c.bf16 %v2944_v10, %v2943_v24 }
 0x3fb   : > { %v2969_v50 = vpack.c.bf16 %v2942_v13, %v2941_v12 }
 0x3fd   : > { %6810 = vmatprep.mubr.bf16.mxu0 %v2969_v50 }
 0x3fe   : > { %6811 = vmatmul.mubr.bf16.gmra.mxu0 %v2970_v11 }
 0x400   : > { %v6768_v36 = vpop.f32.mrf.mxu1 }
 0x401   : > { %v2863_v29 = vadd.f32 %v6768_v36, %v8372_v20 }
 0x402   : > { %v2854_v9 = vpop.f32.mrf.mxu1 }
 0x403   : > { %v2855_v21 = vadd.f32 %v8372_v20, %v2854_v9  ;;  %v2947_v35 = vmax.f32 %v2863_v29, 0.0 }
 0x404   : > { %v6769_v7 = vpop.f32.mrf.mxu1 }
 0x405   : > { %v2866_v43 = vadd.f32 %v6769_v7, %v8372_v20  ;;  %v2945_v48 = vmax.f32 %v2855_v21, 0.0 }
 0x406   : > { %v2857_v16 = vpop.f32.mrf.mxu1 }
 0x407   : > { %v2858_v49 = vadd.f32 %v8372_v20, %v2857_v16  ;;  %v2948_v46 = vmax.f32 %v2866_v43, 0.0 }
 0x409   : > { %v2946_v56 = vmax.f32 %v2858_v49, 0.0  ;;  %v2972_v18 = vpack.c.bf16 %v2948_v46, %v2947_v35  ;;  %v7355_v46 = vld [vmem:[%s9463_s13 + $0x38] sm:$0xff]   ;;  %v7357_v35 = vld [vmem:[%s9463_s13 + $0x28] sm:$0xff]  }
 0x40a   : > { %6882 = vmatprep.subr.bf16.mxu0 %v7355_v46 }
 0x40b   : > { %v2971_v26 = vpack.c.bf16 %v2946_v56, %v2945_v48  ;;  %v7356_v48 = vld [vmem:[%s9463_s13 + $0x30] sm:$0xff]   ;;  %6883 = vmatpush3.bf16.msra.mxu0 %v7355_v46 }
 0x40c   : > { %6884 = vmatprep.subr.bf16.mxu0 %v7356_v48 }
 0x40d   : > { %6814 = vmatprep.mubr.bf16.mxu0 %v2971_v26  ;;  %v8433_v26 = vld [vmem:[%s9524_s29] ss:$0 sm:$0xff]  ;;  %s6385_s29 = sshll.u32 %s9529_s6, 5 }
 0x40e   : > { %6815 = vmatmul.mubr.bf16.gmra.mxu0 %v2972_v18  ;;  %s9157_s2 = scalar_lea.vmem %s9476_s26, %s6385_s29 }
 0x40f   : > { %6885 = vmatpush3.bf16.msra.mxu0 %v7356_v48 }
 0x410   : > { %v6772_v54 = vpop.f32.mrf.mxu1  ;;  %6886 = vmatprep.subr.bf16.mxu0 %v7357_v35 }
 0x411   : > { %v2879_v17 = vadd.f32 %v6772_v54, %v8372_v20 }
 0x412   : > { %v2870_v15 = vpop.f32.mrf.mxu1 }
 0x413   : > { %v2871_v55 = vadd.f32 %v8372_v20, %v2870_v15  ;;  %v2951_v44 = vmax.f32 %v2879_v17, 0.0  ;;  %6887 = vmatpush3.bf16.msra.mxu0 %v7357_v35 }
 0x414   : > { %v6773_v1 = vpop.f32.mrf.mxu1 }
 0x415   : > { %v2882_v19 = vadd.f32 %v6773_v1, %v8372_v20  ;;  %v2949_v14 = vmax.f32 %v2871_v55, 0.0 }
 0x416   : > { %v2873_v42 = vpop.f32.mrf.mxu1 }
 0x417   : > { %v2874_v52 = vadd.f32 %v8372_v20, %v2873_v42  ;;  %v2952_v22 = vmax.f32 %v2882_v19, 0.0  ;;  %v7358_v19 = vld [vmem:[%s9463_s13 + $0x20] sm:$0xff]  }
 0x418   : > { %6888 = vmatprep.subr.bf16.mxu0 %v7358_v19 }
 0x419   : > { %v2950_v62 = vmax.f32 %v2874_v52, 0.0  ;;  %v2974_v51 = vpack.c.bf16 %v2952_v22, %v2951_v44  ;;  %6889 = vmatpush3.bf16.msra.mxu0 %v7358_v19 }
 0x41b   : > { %v2973_v25 = vpack.c.bf16 %v2950_v62, %v2949_v14  ;;  %v7359_v62 = vld [vmem:[%s9463_s13 + $0x18] sm:$0xff]  }
 0x41c   : > { %6890 = vmatprep.subr.bf16.mxu0 %v7359_v62 }
 0x41d   : > { %6818 = vmatprep.mubr.bf16.mxu0 %v2973_v25  ;;  %6891 = vmatpush3.bf16.msra.mxu0 %v7359_v62 }
 0x41e   : > { %6819 = vmatmul.mubr.bf16.gmra.mxu0 %v2974_v51  ;;  %v7360_v51 = vld [vmem:[%s9463_s13 + $0x10] sm:$0xff]  }
 0x41f   : > { %6892 = vmatprep.subr.bf16.mxu0 %v7360_v51 }
 0x420   : > { %v6776_v57 = vpop.f32.mrf.mxu1 }
 0x421   : > { %v2895_v28 = vadd.f32 %v6776_v57, %v8372_v20  ;;  %6893 = vmatpush3.bf16.msra.mxu0 %v7360_v51 }
 0x422   : > { %v2886_v58 = vpop.f32.mrf.mxu1 }
 0x423   : > { %v2887_v5 = vadd.f32 %v8372_v20, %v2886_v58  ;;  %v2955_v38 = vmax.f32 %v2895_v28, 0.0 }
 0x424   : > { %v6777_v63 = vpop.f32.mrf.mxu1 }
 0x425   : > { %v2898_v23 = vadd.f32 %v6777_v63, %v8372_v20  ;;  %v2953_v61 = vmax.f32 %v2887_v5, 0.0  ;;  %v7361_v63 = vld [vmem:[%s9463_s13 + $0x8] sm:$0xff]  }
 0x426   : > { %v2889_v30 = vpop.f32.mrf.mxu1  ;;  %6894 = vmatprep.subr.bf16.mxu0 %v7361_v63 }
 0x427   : > { %v2890_v59 = vadd.f32 %v8372_v20, %v2889_v30  ;;  %v2956_v60 = vmax.f32 %v2898_v23, 0.0  ;;  %6895 = vmatpush3.bf16.msra.mxu0 %v7361_v63 }
 0x429   : > { %v2954_v47 = vmax.f32 %v2890_v59, 0.0  ;;  %v2976_v0 = vpack.c.bf16 %v2956_v60, %v2955_v38 }
 0x42b   : > { %v2975_v45 = vpack.c.bf16 %v2954_v47, %v2953_v61 }
 0x42d   : > { %6822 = vmatprep.mubr.bf16.mxu0 %v2975_v45 }
 0x42e   : > { %6823 = vmatmul.mubr.bf16.gmra.mxu0 %v2976_v0 }
 0x430   : > { %v6780_v2 = vpop.f32.mrf.mxu1 }
 0x431   : > { %v2911_v34 = vadd.f32 %v6780_v2, %v8372_v20 }
 0x432   : > { %v2902_v3 = vpop.f32.mrf.mxu1 }
 0x433   : > { %v2903_v33 = vadd.f32 %v8372_v20, %v2902_v3  ;;  %v2959_v39 = vmax.f32 %v2911_v34, 0.0 }
 0x434   : > { %v6781_v53 = vpop.f32.mrf.mxu1 }
 0x435   : > { %v2914_v4 = vadd.f32 %v6781_v53, %v8372_v20  ;;  %v2957_v37 = vmax.f32 %v2903_v33, 0.0 }
 0x436   : > { %v2905_v27 = vpop.f32.mrf.mxu1 }
 0x437   : > { %v2906_v32 = vadd.f32 %v8372_v20, %v2905_v27  ;;  %v2960_v41 = vmax.f32 %v2914_v4, 0.0 }
 0x439   : > { %v2958_v6 = vmax.f32 %v2906_v32, 0.0  ;;  %v2978_v8 = vpack.c.bf16 %v2960_v41, %v2959_v39 }
 0x43b   : > { %v2977_v40 = vpack.c.bf16 %v2958_v6, %v2957_v37 }
 0x43d   : > { %6826 = vmatprep.mubr.bf16.mxu0 %v2977_v40 }
 0x43e   : > { %6827 = vmatmul.mubr.bf16.gmra.mxu0 %v2978_v8 }
 0x440   : > { %v6784_v10 = vpop.f32.mrf.mxu1 }
 0x441   : > { %v2927_v11 = vadd.f32 %v6784_v10, %v8372_v20 }
 0x442   : > { %v2918_v12 = vpop.f32.mrf.mxu1 }
 0x443   : > { %v2919_v24 = vadd.f32 %v8372_v20, %v2918_v12  ;;  %v2963_v29 = vmax.f32 %v2927_v11, 0.0 }
 0x444   : > { %v6785_v13 = vpop.f32.mrf.mxu1 }
 0x445   : > { %v2930_v50 = vadd.f32 %v6785_v13, %v8372_v20  ;;  %v2961_v21 = vmax.f32 %v2919_v24, 0.0 }
 0x446   : > { %v2921_v36 = vpop.f32.mrf.mxu1 }
 0x447   : > { %v2922_v9 = vadd.f32 %v8372_v20, %v2921_v36  ;;  %v2964_v7 = vmax.f32 %v2930_v50, 0.0 }
 0x449   : > { %v2962_v43 = vmax.f32 %v2922_v9, 0.0  ;;  %v2980_v49 = vpack.c.bf16 %v2964_v7, %v2963_v29 }
 0x44b   : > { %v2979_v16 = vpack.c.bf16 %v2962_v43, %v2961_v21 }
 0x44d   : > { %6830 = vmatprep.mubr.bf16.mxu0 %v2979_v16 }
 0x44e   : > { %6831 = vmatmul.mubr.bf16.gmra.mxu0 %v2980_v49 }
 0x49e   : > { %v6804_v56 = vpop.f32.mrf.mxu0 }
 0x49f   : > { %v3095_v1 = vadd.f32 %v6804_v56, %v8433_v26 }
 0x4a0   : > { %v3086_v20 = vpop.f32.mrf.mxu0 }
 0x4a1   : > { %v3087_v54 = vadd.f32 %v8433_v26, %v3086_v20  ;;  %v3215_v14 = vmax.f32 %v3095_v1, 0.0 }
 0x4a2   : > { %v6805_v18 = vpop.f32.mrf.mxu0 }
 0x4a3   : > { %v3098_v15 = vadd.f32 %v6805_v18, %v8433_v26  ;;  %v3213_v52 = vmax.f32 %v3087_v54, 0.0 }
 0x4a4   : > { %v3089_v55 = vpop.f32.mrf.mxu0 }
 0x4a5   : > { %v3090_v17 = vadd.f32 %v8433_v26, %v3089_v55  ;;  %v3216_v42 = vmax.f32 %v3098_v15, 0.0 }
 0x4a7   : > { %v3214_v22 = vmax.f32 %v3090_v17, 0.0  ;;  %v3246_v25 = vpack.c.bf16 %v3216_v42, %v3215_v14 }
 0x4a9   : > { %v3245_v44 = vpack.c.bf16 %v3214_v22, %v3213_v52 }
 0x4ab   : > { %6850 = vmatprep.mubr.bf16.mxu1 %v3245_v44  ;;  %v7362_v44 = vld [vmem:[%s9463_s13] sm:$0xff]  }
 0x4ac   : > { %6851 = vmatmul.mubr.bf16.vlgmr.msra.gmra.mxu1 %v3246_v25  ;;  %6896 = vmatprep.subr.bf16.mxu0 %v7362_v44 }
 0x4ad   : > { %6897 = vmatpush3.bf16.msra.mxu0 %v7362_v44 }
 0x4ae   : > { %v6808_v57 = vpop.f32.mrf.mxu0 }
 0x4af   : > { %v3111_v30 = vadd.f32 %v6808_v57, %v8433_v26 }
 0x4b0   : > { %v3102_v58 = vpop.f32.mrf.mxu0 }
 0x4b1   : > { %v3103_v23 = vadd.f32 %v8433_v26, %v3102_v58  ;;  %v3219_v38 = vmax.f32 %v3111_v30, 0.0 }
 0x4b2   : > { %v6809_v5 = vpop.f32.mrf.mxu0 }
 0x4b3   : > { %v3114_v28 = vadd.f32 %v6809_v5, %v8433_v26  ;;  %v3217_v61 = vmax.f32 %v3103_v23, 0.0 }
 0x4b4   : > { %v3105_v31 = vpop.f32.mrf.mxu0 }
 0x4b5   : > { %v3106_v59 = vadd.f32 %v8433_v26, %v3105_v31  ;;  %v3220_v60 = vmax.f32 %v3114_v28, 0.0 }
 0x4b7   : > { %v3218_v47 = vmax.f32 %v3106_v59, 0.0  ;;  %v3248_v0 = vpack.c.bf16 %v3220_v60, %v3219_v38 }
 0x4b9   : > { %v3247_v45 = vpack.c.bf16 %v3218_v47, %v3217_v61 }
 0x4bb   : > { %6854 = vmatprep.mubr.bf16.mxu1 %v3247_v45 }
 0x4bc   : > { %6855 = vmatmul.mubr.bf16.gmra.mxu1 %v3248_v0 }
 0x4be   : > { %v6812_v2 = vpop.f32.mrf.mxu0 }
 0x4bf   : > { %v3127_v34 = vadd.f32 %v6812_v2, %v8433_v26 }
 0x4c0   : > { %v3118_v3 = vpop.f32.mrf.mxu0 }
 0x4c1   : > { %v3119_v33 = vadd.f32 %v8433_v26, %v3118_v3  ;;  %v3223_v39 = vmax.f32 %v3127_v34, 0.0 }
 0x4c2   : > { %v6813_v53 = vpop.f32.mrf.mxu0 }
 0x4c3   : > { %v3130_v4 = vadd.f32 %v6813_v53, %v8433_v26  ;;  %v3221_v37 = vmax.f32 %v3119_v33, 0.0 }
 0x4c4   : > { %v3121_v27 = vpop.f32.mrf.mxu0 }
 0x4c5   : > { %v3122_v32 = vadd.f32 %v8433_v26, %v3121_v27  ;;  %v3224_v41 = vmax.f32 %v3130_v4, 0.0 }
 0x4c7   : > { %v3222_v6 = vmax.f32 %v3122_v32, 0.0  ;;  %v3250_v8 = vpack.c.bf16 %v3224_v41, %v3223_v39 }
 0x4c9   : > { %v3249_v40 = vpack.c.bf16 %v3222_v6, %v3221_v37 }
 0x4cb   : > { %6858 = vmatprep.mubr.bf16.mxu1 %v3249_v40 }
 0x4cc   : > { %6859 = vmatmul.mubr.bf16.gmra.mxu1 %v3250_v8 }
 0x4ce   : > { %v6816_v10 = vpop.f32.mrf.mxu0 }
 0x4cf   : > { %v3143_v11 = vadd.f32 %v6816_v10, %v8433_v26 }
 0x4d0   : > { %v3134_v12 = vpop.f32.mrf.mxu0 }
 0x4d1   : > { %v3135_v24 = vadd.f32 %v8433_v26, %v3134_v12  ;;  %v3227_v29 = vmax.f32 %v3143_v11, 0.0 }
 0x4d2   : > { %v6817_v13 = vpop.f32.mrf.mxu0 }
 0x4d3   : > { %v3146_v50 = vadd.f32 %v6817_v13, %v8433_v26  ;;  %v3225_v21 = vmax.f32 %v3135_v24, 0.0 }
 0x4d4   : > { %v3137_v36 = vpop.f32.mrf.mxu0 }
 0x4d5   : > { %v3138_v9 = vadd.f32 %v8433_v26, %v3137_v36  ;;  %v3228_v7 = vmax.f32 %v3146_v50, 0.0 }
 0x4d7   : > { %v3226_v43 = vmax.f32 %v3138_v9, 0.0  ;;  %v3252_v49 = vpack.c.bf16 %v3228_v7, %v3227_v29  ;;  %v7363_v7 = vld [vmem:[%s9465_s15 + $0x38] sm:$0xff]   ;;  %v7365_v29 = vld [vmem:[%s9465_s15 + $0x28] sm:$0xff]  }
 0x4d8   : > { %6930 = vmatprep.subr.bf16.mxu1 %v7363_v7 }
 0x4d9   : > { %v3251_v16 = vpack.c.bf16 %v3226_v43, %v3225_v21  ;;  %v7364_v21 = vld [vmem:[%s9465_s15 + $0x30] sm:$0xff]   ;;  %6931 = vmatpush3.bf16.msra.mxu1 %v7363_v7 }
 0x4da   : > { %6932 = vmatprep.subr.bf16.mxu1 %v7364_v21 }
 0x4db   : > { %6862 = vmatprep.mubr.bf16.mxu1 %v3251_v16 }
 0x4dc   : > { %6863 = vmatmul.mubr.bf16.gmra.mxu1 %v3252_v49 }
 0x4dd   : > { %6933 = vmatpush3.bf16.msra.mxu1 %v7364_v21 }
 0x4de   : > { %v6820_v46 = vpop.f32.mrf.mxu0  ;;  %6934 = vmatprep.subr.bf16.mxu1 %v7365_v29 }
 0x4df   : > { %v3159_v18 = vadd.f32 %v6820_v46, %v8433_v26 }
 0x4e0   : > { %v3150_v48 = vpop.f32.mrf.mxu0 }
 0x4e1   : > { %v3151_v20 = vadd.f32 %v8433_v26, %v3150_v48  ;;  %v3231_v17 = vmax.f32 %v3159_v18, 0.0  ;;  %6935 = vmatpush3.bf16.msra.mxu1 %v7365_v29 }
 0x4e2   : > { %v6821_v56 = vpop.f32.mrf.mxu0 }
 0x4e3   : > { %v3162_v35 = vadd.f32 %v6821_v56, %v8433_v26  ;;  %v3229_v55 = vmax.f32 %v3151_v20, 0.0  ;;  %v7366_v56 = vld [vmem:[%s9465_s15 + $0x20] sm:$0xff]  }
 0x4e4   : > { %v3153_v54 = vpop.f32.mrf.mxu0  ;;  %6936 = vmatprep.subr.bf16.mxu1 %v7366_v56 }
 0x4e5   : > { %v3154_v15 = vadd.f32 %v8433_v26, %v3153_v54  ;;  %v3232_v1 = vmax.f32 %v3162_v35, 0.0  ;;  %v7367_v54 = vld [vmem:[%s9465_s15 + $0x18] sm:$0xff]   ;;  %6937 = vmatpush3.bf16.msra.mxu1 %v7366_v56 }
 0x4e6   : > { %6938 = vmatprep.subr.bf16.mxu1 %v7367_v54 }
 0x4e7   : > { %v3230_v19 = vmax.f32 %v3154_v15, 0.0  ;;  %v3254_v52 = vpack.c.bf16 %v3232_v1, %v3231_v17  ;;  %v7369_v17 = vld [vmem:[%s9465_s15 + $0x8] sm:$0xff]  }
 0x4e9   : > { %v3253_v42 = vpack.c.bf16 %v3230_v19, %v3229_v55  ;;  %v7368_v55 = vld [vmem:[%s9465_s15 + $0x10] sm:$0xff]   ;;  %6939 = vmatpush3.bf16.msra.mxu1 %v7367_v54 }
 0x4ea   : > { %6940 = vmatprep.subr.bf16.mxu1 %v7368_v55 }
 0x4eb   : > { %6866 = vmatprep.mubr.bf16.mxu1 %v3253_v42 }
 0x4ec   : > { %6867 = vmatmul.mubr.bf16.gmra.mxu1 %v3254_v52 }
 0x4ed   : > { %6941 = vmatpush3.bf16.msra.mxu1 %v7368_v55 }
 0x4ee   : > { %v6824_v22 = vpop.f32.mrf.mxu0  ;;  %6942 = vmatprep.subr.bf16.mxu1 %v7369_v17 }
 0x4ef   : > { %v3175_v57 = vadd.f32 %v6824_v22, %v8433_v26 }
 0x4f0   : > { %v3166_v14 = vpop.f32.mrf.mxu0 }
 0x4f1   : > { %v3167_v25 = vadd.f32 %v8433_v26, %v3166_v14  ;;  %v3235_v30 = vmax.f32 %v3175_v57, 0.0  ;;  %6943 = vmatpush3.bf16.msra.mxu1 %v7369_v17 }
 0x4f2   : > { %v6825_v62 = vpop.f32.mrf.mxu0 }
 0x4f3   : > { %v3178_v51 = vadd.f32 %v6825_v62, %v8433_v26  ;;  %v3233_v23 = vmax.f32 %v3167_v25, 0.0 }
 0x4f4   : > { %v3169_v58 = vpop.f32.mrf.mxu0 }
 0x4f5   : > { %v3170_v63 = vadd.f32 %v8433_v26, %v3169_v58  ;;  %v3236_v5 = vmax.f32 %v3178_v51, 0.0 }
 0x4f7   : > { %v3234_v28 = vmax.f32 %v3170_v63, 0.0  ;;  %v3256_v59 = vpack.c.bf16 %v3236_v5, %v3235_v30 }
 0x4f9   : > { %v3255_v31 = vpack.c.bf16 %v3234_v28, %v3233_v23 }
 0x4fb   : > { %6870 = vmatprep.mubr.bf16.mxu1 %v3255_v31 }
 0x4fc   : > { %6871 = vmatmul.mubr.bf16.gmra.mxu1 %v3256_v59 }
 0x4fe   : > { %v6828_v60 = vpop.f32.mrf.mxu0 }
 0x4ff   : > { %v3191_v0 = vadd.f32 %v6828_v60, %v8433_v26 }
 0x500   : > { %v3182_v61 = vpop.f32.mrf.mxu0 }
 0x501   : > { %v3183_v38 = vadd.f32 %v8433_v26, %v3182_v61  ;;  %v3239_v34 = vmax.f32 %v3191_v0, 0.0 }
 0x502   : > { %v6829_v47 = vpop.f32.mrf.mxu0 }
 0x503   : > { %v3194_v45 = vadd.f32 %v6829_v47, %v8433_v26  ;;  %v3237_v33 = vmax.f32 %v3183_v38, 0.0 }
 0x504   : > { %v3185_v2 = vpop.f32.mrf.mxu0 }
 0x505   : > { %v3186_v3 = vadd.f32 %v8433_v26, %v3185_v2  ;;  %v3240_v53 = vmax.f32 %v3194_v45, 0.0 }
 0x507   : > { %v3238_v4 = vmax.f32 %v3186_v3, 0.0  ;;  %v3258_v32 = vpack.c.bf16 %v3240_v53, %v3239_v34 }
 0x509   : > { %v3257_v27 = vpack.c.bf16 %v3238_v4, %v3237_v33 }
 0x50b   : > { %6874 = vmatprep.mubr.bf16.mxu1 %v3257_v27 }
 0x50c   : > { %6875 = vmatmul.mubr.bf16.gmra.mxu1 %v3258_v32 }
 0x50e   : > { %v6832_v41 = vpop.f32.mrf.mxu0 }
 0x50f   : > { %v3207_v8 = vadd.f32 %v6832_v41, %v8433_v26 }
 0x510   : > { %v3198_v37 = vpop.f32.mrf.mxu0 }
 0x511   : > { %v3199_v39 = vadd.f32 %v8433_v26, %v3198_v37  ;;  %v3243_v11 = vmax.f32 %v3207_v8, 0.0 }
 0x512   : > { %v6833_v6 = vpop.f32.mrf.mxu0 }
 0x513   : > { %v3210_v40 = vadd.f32 %v6833_v6, %v8433_v26  ;;  %v3241_v24 = vmax.f32 %v3199_v39, 0.0 }
 0x514   : > { %v3201_v10 = vpop.f32.mrf.mxu0 }
 0x515   : > { %v3202_v12 = vadd.f32 %v8433_v26, %v3201_v10  ;;  %v3244_v13 = vmax.f32 %v3210_v40, 0.0  ;;  %v8492_v26 = vld [vmem:[%s9462_s12] ss:$0 sm:$0xff] }
 0x517   : > { %v3242_v50 = vmax.f32 %v3202_v12, 0.0  ;;  %v3260_v9 = vpack.c.bf16 %v3244_v13, %v3243_v11 }
 0x519   : > { %v3259_v36 = vpack.c.bf16 %v3242_v50, %v3241_v24 }
 0x51b   : > { %6878 = vmatprep.mubr.bf16.mxu1 %v3259_v36 }
 0x51c   : > { %6879 = vmatmul.mubr.bf16.gmra.mxu1 %v3260_v9  ;;  %v7370_v9 = vld [vmem:[%s9465_s15] sm:$0xff]  }
 0x51d   : > { %6944 = vmatprep.subr.bf16.mxu1 %v7370_v9 }
 0x51e   : > { %6945 = vmatpush3.bf16.msra.mxu1 %v7370_v9 }
 0x56c   : > { %v6852_v43 = vpop.f32.mrf.mxu1 }
 0x56d   : > { %v3375_v16 = vadd.f32 %v6852_v43, %v8492_v26 }
 0x56e   : > { %v3366_v49 = vpop.f32.mrf.mxu1 }
 0x56f   : > { %3496 = vst.msk [vmem:[%s8497_s0 + $0x10] sm:$0xff] %vm3493_vm0, %v3375_v16  ;;  %v3367_v46 = vadd.f32 %v8492_v26, %v3366_v49 }
 0x570   : > { %v6853_v48 = vpop.f32.mrf.mxu1 }
 0x571   : > { %3494 = vst.msk [vmem:[%s8497_s0] sm:$0xff] %vm3493_vm0, %v3367_v46  ;;  %v3378_v20 = vadd.f32 %v6853_v48, %v8492_v26 }
 0x572   : > { %v3369_v35 = vpop.f32.mrf.mxu1 }
 0x573   : > { %3497 = vst.msk [vmem:[%s8497_s0 + $0x18] sm:$0xff] %vm3493_vm0, %v3378_v20  ;;  %v3370_v18 = vadd.f32 %v8492_v26, %v3369_v35  ;;  %v3527_v1 = vpack.c.bf16 %v3378_v20, %v3375_v16 }
 0x575   : > { %3495 = vst.msk [vmem:[%s8497_s0 + $0x8] sm:$0xff] %vm3493_vm0, %v3370_v18  ;;  %v3526_v15 = vpack.c.bf16 %v3370_v18, %v3367_v46 }
 0x577   : > { %6898 = vmatprep.mubr.bf16.mxu0 %v3526_v15 }
 0x578   : > { %6899 = vmatmul.mubr.bf16.vlgmr.msra.gmra.mxu0 %v3527_v1 }
 0x57c   : > { %v6856_v19 = vpop.f32.mrf.mxu1 }
 0x57d   : > { %v3391_v42 = vadd.f32 %v6856_v19, %v8492_v26 }
 0x57e   : > { %v3382_v52 = vpop.f32.mrf.mxu1 }
 0x57f   : > { %3500 = vst.msk [vmem:[%s8497_s0 + $0x30] sm:$0xff] %vm3493_vm0, %v3391_v42  ;;  %v3383_v22 = vadd.f32 %v8492_v26, %v3382_v52 }
 0x580   : > { %v6857_v14 = vpop.f32.mrf.mxu1 }
 0x581   : > { %3498 = vst.msk [vmem:[%s8497_s0 + $0x20] sm:$0xff] %vm3493_vm0, %v3383_v22  ;;  %v3394_v62 = vadd.f32 %v6857_v14, %v8492_v26 }
 0x582   : > { %v3385_v44 = vpop.f32.mrf.mxu1 }
 0x583   : > { %3501 = vst.msk [vmem:[%s8497_s0 + $0x38] sm:$0xff] %vm3493_vm0, %v3394_v62  ;;  %v3386_v25 = vadd.f32 %v8492_v26, %v3385_v44  ;;  %v3529_v57 = vpack.c.bf16 %v3394_v62, %v3391_v42 }
 0x585   : > { %3499 = vst.msk [vmem:[%s8497_s0 + $0x28] sm:$0xff] %vm3493_vm0, %v3386_v25  ;;  %v3528_v51 = vpack.c.bf16 %v3386_v25, %v3383_v22 }
 0x587   : > { %6902 = vmatprep.mubr.bf16.mxu0 %v3528_v51  ;;  %v7371_v51 = vld [vmem:[%s9467_s17 + $0x38] sm:$0xff]  }
 0x588   : > { %6903 = vmatmul.mubr.bf16.gmra.mxu0 %v3529_v57  ;;  %v7372_v57 = vld [vmem:[%s9467_s17 + $0x30] sm:$0xff]   ;;  %6978 = vmatprep.subr.bf16.mxu0 %v7371_v51 }
 0x589   : > { %6979 = vmatpush3.bf16.msra.mxu0 %v7371_v51 }
 0x58a   : > { %6980 = vmatprep.subr.bf16.mxu0 %v7372_v57 }
 0x58c   : > { %v6860_v58 = vpop.f32.mrf.mxu1 }
 0x58d   : > { %v3407_v63 = vadd.f32 %v6860_v58, %v8492_v26  ;;  %6981 = vmatpush3.bf16.msra.mxu0 %v7372_v57 }
 0x58e   : > { %v3398_v5 = vpop.f32.mrf.mxu1 }
 0x58f   : > { %3504 = vst.msk [vmem:[%s8497_s0 + $0x50] sm:$0xff] %vm3493_vm0, %v3407_v63  ;;  %v3399_v23 = vadd.f32 %v8492_v26, %v3398_v5  ;;  %v8625_v5 = vld [vmem:[%s9464_s14] ss:$0 sm:$0xff] }
 0x590   : > { %v6861_v28 = vpop.f32.mrf.mxu1 }
 0x591   : > { %3502 = vst.msk [vmem:[%s8497_s0 + $0x40] sm:$0xff] %vm3493_vm0, %v3399_v23  ;;  %v3410_v30 = vadd.f32 %v6861_v28, %v8492_v26 }
 0x592   : > { %v3401_v31 = vpop.f32.mrf.mxu1 }
 0x593   : > { %3505 = vst.msk [vmem:[%s8497_s0 + $0x58] sm:$0xff] %vm3493_vm0, %v3410_v30  ;;  %v3402_v59 = vadd.f32 %v8492_v26, %v3401_v31  ;;  %v3531_v61 = vpack.c.bf16 %v3410_v30, %v3407_v63 }
 0x595   : > { %3503 = vst.msk [vmem:[%s8497_s0 + $0x48] sm:$0xff] %vm3493_vm0, %v3402_v59  ;;  %v3530_v60 = vpack.c.bf16 %v3402_v59, %v3399_v23 }
 0x597   : > { %6906 = vmatprep.mubr.bf16.mxu0 %v3530_v60  ;;  %v7374_v60 = vld [vmem:[%s9467_s17 + $0x20] sm:$0xff]  }
 0x598   : > { %6907 = vmatmul.mubr.bf16.gmra.mxu0 %v3531_v61 }
 0x59c   : > { %v6864_v47 = vpop.f32.mrf.mxu1 }
 0x59d   : > { %v3423_v38 = vadd.f32 %v6864_v47, %v8492_v26 }
 0x59e   : > { %v3414_v45 = vpop.f32.mrf.mxu1 }
 0x59f   : > { %3508 = vst.msk [vmem:[%s8497_s0 + $0x70] sm:$0xff] %vm3493_vm0, %v3423_v38  ;;  %v3415_v0 = vadd.f32 %v8492_v26, %v3414_v45 }
 0x5a0   : > { %v6865_v2 = vpop.f32.mrf.mxu1 }
 0x5a1   : > { %3506 = vst.msk [vmem:[%s8497_s0 + $0x60] sm:$0xff] %vm3493_vm0, %v3415_v0  ;;  %v3426_v3 = vadd.f32 %v6865_v2, %v8492_v26  ;;  %v7375_v2 = vld [vmem:[%s9467_s17 + $0x18] sm:$0xff]  }
 0x5a2   : > { %v3417_v53 = vpop.f32.mrf.mxu1 }
 0x5a3   : > { %3509 = vst.msk [vmem:[%s8497_s0 + $0x78] sm:$0xff] %vm3493_vm0, %v3426_v3  ;;  %v3418_v33 = vadd.f32 %v8492_v26, %v3417_v53  ;;  %v3533_v34 = vpack.c.bf16 %v3426_v3, %v3423_v38 }
 0x5a5   : > { %3507 = vst.msk [vmem:[%s8497_s0 + $0x68] sm:$0xff] %vm3493_vm0, %v3418_v33  ;;  %v3532_v4 = vpack.c.bf16 %v3418_v33, %v3415_v0  ;;  %v7376_v33 = vld [vmem:[%s9467_s17 + $0x10] sm:$0xff]  }
 0x5a7   : > { %6910 = vmatprep.mubr.bf16.mxu0 %v3532_v4 }
 0x5a8   : > { %6911 = vmatmul.mubr.bf16.gmra.mxu0 %v3533_v34 }
 0x5ac   : > { %v6868_v27 = vpop.f32.mrf.mxu1 }
 0x5ad   : > { %v3439_v32 = vadd.f32 %v6868_v27, %v8492_v26  ;;  %v7377_v27 = vld [vmem:[%s9467_s17 + $0x8] sm:$0xff]  }
 0x5ae   : > { %v3430_v41 = vpop.f32.mrf.mxu1 }
 0x5af   : > { %3512 = vst.msk [vmem:[%s8497_s0 + $0x90] sm:$0xff] %vm3493_vm0, %v3439_v32  ;;  %v3431_v37 = vadd.f32 %v8492_v26, %v3430_v41 }
 0x5b0   : > { %v6869_v6 = vpop.f32.mrf.mxu1 }
 0x5b1   : > { %3510 = vst.msk [vmem:[%s8497_s0 + $0x80] sm:$0xff] %vm3493_vm0, %v3431_v37  ;;  %v3442_v39 = vadd.f32 %v6869_v6, %v8492_v26 }
 0x5b2   : > { %v3433_v40 = vpop.f32.mrf.mxu1 }
 0x5b3   : > { %3513 = vst.msk [vmem:[%s8497_s0 + $0x98] sm:$0xff] %vm3493_vm0, %v3442_v39  ;;  %v3434_v8 = vadd.f32 %v8492_v26, %v3433_v40  ;;  %v3535_v12 = vpack.c.bf16 %v3442_v39, %v3439_v32 }
 0x5b5   : > { %3511 = vst.msk [vmem:[%s8497_s0 + $0x88] sm:$0xff] %vm3493_vm0, %v3434_v8  ;;  %v3534_v10 = vpack.c.bf16 %v3434_v8, %v3431_v37 }
 0x5b7   : > { %6914 = vmatprep.mubr.bf16.mxu0 %v3534_v10 }
 0x5b8   : > { %6915 = vmatmul.mubr.bf16.gmra.mxu0 %v3535_v12 }
 0x5bc   : > { %v6872_v13 = vpop.f32.mrf.mxu1 }
 0x5bd   : > { %v3455_v24 = vadd.f32 %v6872_v13, %v8492_v26 }
 0x5be   : > { %v3446_v50 = vpop.f32.mrf.mxu1 }
 0x5bf   : > { %3516 = vst.msk [vmem:[%s8497_s0 + $0xb0] sm:$0xff] %vm3493_vm0, %v3455_v24  ;;  %v3447_v11 = vadd.f32 %v8492_v26, %v3446_v50 }
 0x5c0   : > { %v6873_v36 = vpop.f32.mrf.mxu1 }
 0x5c1   : > { %3514 = vst.msk [vmem:[%s8497_s0 + $0xa0] sm:$0xff] %vm3493_vm0, %v3447_v11  ;;  %v3458_v7 = vadd.f32 %v6873_v36, %v8492_v26 }
 0x5c2   : > { %v3449_v21 = vpop.f32.mrf.mxu1 }
 0x5c3   : > { %3517 = vst.msk [vmem:[%s8497_s0 + $0xb8] sm:$0xff] %vm3493_vm0, %v3458_v7  ;;  %v3450_v43 = vadd.f32 %v8492_v26, %v3449_v21  ;;  %v3537_v16 = vpack.c.bf16 %v3458_v7, %v3455_v24 }
 0x5c5   : > { %3515 = vst.msk [vmem:[%s8497_s0 + $0xa8] sm:$0xff] %vm3493_vm0, %v3450_v43  ;;  %v3536_v29 = vpack.c.bf16 %v3450_v43, %v3447_v11 }
 0x5c7   : > { %6918 = vmatprep.mubr.bf16.mxu0 %v3536_v29 }
 0x5c8   : > { %6919 = vmatmul.mubr.bf16.gmra.mxu0 %v3537_v16 }
 0x5cc   : > { %v6876_v49 = vpop.f32.mrf.mxu1 }
 0x5cd   : > { %v3471_v46 = vadd.f32 %v6876_v49, %v8492_v26 }
 0x5ce   : > { %v3462_v48 = vpop.f32.mrf.mxu1 }
 0x5cf   : > { %3520 = vst.msk [vmem:[%s8497_s0 + $0xd0] sm:$0xff] %vm3493_vm0, %v3471_v46  ;;  %v3463_v56 = vadd.f32 %v8492_v26, %v3462_v48 }
 0x5d0   : > { %v6877_v20 = vpop.f32.mrf.mxu1 }
 0x5d1   : > { %3518 = vst.msk [vmem:[%s8497_s0 + $0xc0] sm:$0xff] %vm3493_vm0, %v3463_v56  ;;  %v3474_v35 = vadd.f32 %v6877_v20, %v8492_v26 }
 0x5d2   : > { %v3465_v18 = vpop.f32.mrf.mxu1 }
 0x5d3   : > { %3521 = vst.msk [vmem:[%s8497_s0 + $0xd8] sm:$0xff] %vm3493_vm0, %v3474_v35  ;;  %v3466_v54 = vadd.f32 %v8492_v26, %v3465_v18  ;;  %v3539_v1 = vpack.c.bf16 %v3474_v35, %v3471_v46 }
 0x5d5   : > { %3519 = vst.msk [vmem:[%s8497_s0 + $0xc8] sm:$0xff] %vm3493_vm0, %v3466_v54  ;;  %v3538_v15 = vpack.c.bf16 %v3466_v54, %v3463_v56 }
 0x5d7   : > { %6922 = vmatprep.mubr.bf16.mxu0 %v3538_v15 }
 0x5d8   : > { %6923 = vmatmul.mubr.bf16.gmra.mxu0 %v3539_v1 }
 0x5dc   : > { %v6880_v55 = vpop.f32.mrf.mxu1 }
 0x5dd   : > { %v3487_v19 = vadd.f32 %v6880_v55, %v8492_v26 }
 0x5de   : > { %v3478_v17 = vpop.f32.mrf.mxu1 }
 0x5df   : > { %3524 = vst.msk [vmem:[%s8497_s0 + $0xf0] sm:$0xff] %vm3493_vm0, %v3487_v19  ;;  %v3479_v42 = vadd.f32 %v8492_v26, %v3478_v17 }
 0x5e0   : > { %v6881_v52 = vpop.f32.mrf.mxu1 }
 0x5e1   : > { %3522 = vst.msk [vmem:[%s8497_s0 + $0xe0] sm:$0xff] %vm3493_vm0, %v3479_v42  ;;  %v3490_v22 = vadd.f32 %v6881_v52, %v8492_v26 }
 0x5e2   : > { %v3481_v14 = vpop.f32.mrf.mxu1 }
 0x5e3   : > { %3525 = vst.msk [vmem:[%s8497_s0 + $0xf8] sm:$0xff] %vm3493_vm0, %v3490_v22  ;;  %v3482_v62 = vadd.f32 %v8492_v26, %v3481_v14  ;;  %v3541_v25 = vpack.c.bf16 %v3490_v22, %v3487_v19  ;;  %v7373_v26 = vld [vmem:[%s9467_s17 + $0x28] sm:$0xff]  }
 0x5e4   : > { %6982 = vmatprep.subr.bf16.mxu0 %v7373_v26 }
 0x5e5   : > { %3523 = vst.msk [vmem:[%s8497_s0 + $0xe8] sm:$0xff] %vm3493_vm0, %v3482_v62  ;;  %v3540_v44 = vpack.c.bf16 %v3482_v62, %v3479_v42  ;;  %6983 = vmatpush3.bf16.msra.mxu0 %v7373_v26 }
 0x5e6   : > { %6984 = vmatprep.subr.bf16.mxu0 %v7374_v60 }
 0x5e7   : > { %6926 = vmatprep.mubr.bf16.mxu0 %v3540_v44 }
 0x5e8   : > { %6927 = vmatmul.mubr.bf16.gmra.mxu0 %v3541_v25 }
 0x5e9   : > { %6985 = vmatpush3.bf16.msra.mxu0 %v7374_v60 }
 0x5ea   : > { %6986 = vmatprep.subr.bf16.mxu0 %v7375_v2 }
 0x5ed   : > { %6987 = vmatpush3.bf16.msra.mxu0 %v7375_v2 }
 0x5ee   : > { %6988 = vmatprep.subr.bf16.mxu0 %v7376_v33 }
 0x5f1   : > { %6989 = vmatpush3.bf16.msra.mxu0 %v7376_v33 }
 0x5f2   : > { %6990 = vmatprep.subr.bf16.mxu0 %v7377_v27 }
 0x5f5   : > { %6991 = vmatpush3.bf16.msra.mxu0 %v7377_v27 }
 0x638   : > { %v6900_v58 = vpop.f32.mrf.mxu0 }
 0x639   : > { %v3656_v31 = vadd.f32 %v6900_v58, %v8625_v5 }
 0x63a   : > { %v3647_v63 = vpop.f32.mrf.mxu0 }
 0x63b   : > { %v3648_v28 = vadd.f32 %v8625_v5, %v3647_v63  ;;  %v3776_v0 = vmax.f32 %v3656_v31, 0.0 }
 0x63c   : > { %v6901_v23 = vpop.f32.mrf.mxu0 }
 0x63d   : > { %v3659_v30 = vadd.f32 %v6901_v23, %v8625_v5  ;;  %v3774_v38 = vmax.f32 %v3648_v28, 0.0 }
 0x63e   : > { %v3650_v59 = vpop.f32.mrf.mxu0 }
 0x63f   : > { %v3651_v61 = vadd.f32 %v8625_v5, %v3650_v59  ;;  %v3777_v47 = vmax.f32 %v3659_v30, 0.0 }
 0x641   : > { %v3775_v45 = vmax.f32 %v3651_v61, 0.0  ;;  %v3807_v53 = vpack.c.bf16 %v3777_v47, %v3776_v0 }
 0x643   : > { %v3806_v3 = vpack.c.bf16 %v3775_v45, %v3774_v38 }
 0x645   : > { %6946 = vmatprep.mubr.bf16.mxu1 %v3806_v3 }
 0x646   : > { %6947 = vmatmul.mubr.bf16.vlgmr.msra.gmra.mxu1 %v3807_v53 }
 0x648   : > { %v6904_v4 = vpop.f32.mrf.mxu0 }
 0x649   : > { %v3672_v6 = vadd.f32 %v6904_v4, %v8625_v5 }
 0x64a   : > { %v3663_v34 = vpop.f32.mrf.mxu0 }
 0x64b   : > { %v3664_v41 = vadd.f32 %v8625_v5, %v3663_v34  ;;  %v3780_v13 = vmax.f32 %v3672_v6, 0.0  ;;  %v7378_v34 = vld [vmem:[%s9467_s17] sm:$0xff]  }
 0x64c   : > { %v6905_v32 = vpop.f32.mrf.mxu0  ;;  %6992 = vmatprep.subr.bf16.mxu0 %v7378_v34 }
 0x64d   : > { %v3675_v37 = vadd.f32 %v6905_v32, %v8625_v5  ;;  %v3778_v10 = vmax.f32 %v3664_v41, 0.0  ;;  %6993 = vmatpush3.bf16.msra.mxu0 %v7378_v34 }
 0x64e   : > { %v3666_v39 = vpop.f32.mrf.mxu0 }
 0x64f   : > { %v3667_v40 = vadd.f32 %v8625_v5, %v3666_v39  ;;  %v3781_v8 = vmax.f32 %v3675_v37, 0.0 }
 0x651   : > { %v3779_v12 = vmax.f32 %v3667_v40, 0.0  ;;  %v3809_v50 = vpack.c.bf16 %v3781_v8, %v3780_v13 }
 0x653   : > { %v3808_v24 = vpack.c.bf16 %v3779_v12, %v3778_v10 }
 0x655   : > { %6950 = vmatprep.mubr.bf16.mxu1 %v3808_v24 }
 0x656   : > { %6951 = vmatmul.mubr.bf16.gmra.mxu1 %v3809_v50 }
 0x658   : > { %v6908_v11 = vpop.f32.mrf.mxu0 }
 0x659   : > { %v3688_v43 = vadd.f32 %v6908_v11, %v8625_v5 }
 0x65a   : > { %v3679_v36 = vpop.f32.mrf.mxu0 }
 0x65b   : > { %v3680_v7 = vadd.f32 %v8625_v5, %v3679_v36  ;;  %v3784_v56 = vmax.f32 %v3688_v43, 0.0 }
 0x65c   : > { %v6909_v9 = vpop.f32.mrf.mxu0 }
 0x65d   : > { %v3691_v21 = vadd.f32 %v6909_v9, %v8625_v5  ;;  %v3782_v46 = vmax.f32 %v3680_v7, 0.0 }
 0x65e   : > { %v3682_v29 = vpop.f32.mrf.mxu0 }
 0x65f   : > { %v3683_v16 = vadd.f32 %v8625_v5, %v3682_v29  ;;  %v3785_v49 = vmax.f32 %v3691_v21, 0.0 }
 0x661   : > { %v3783_v48 = vmax.f32 %v3683_v16, 0.0  ;;  %v3811_v35 = vpack.c.bf16 %v3785_v49, %v3784_v56 }
 0x663   : > { %v3810_v20 = vpack.c.bf16 %v3783_v48, %v3782_v46 }
 0x665   : > { %6954 = vmatprep.mubr.bf16.mxu1 %v3810_v20 }
 0x666   : > { %6955 = vmatmul.mubr.bf16.gmra.mxu1 %v3811_v35 }
 0x668   : > { %v6912_v18 = vpop.f32.mrf.mxu0 }
 0x669   : > { %v3704_v19 = vadd.f32 %v6912_v18, %v8625_v5 }
 0x66a   : > { %v3695_v54 = vpop.f32.mrf.mxu0 }
 0x66b   : > { %v3696_v1 = vadd.f32 %v8625_v5, %v3695_v54  ;;  %v3788_v62 = vmax.f32 %v3704_v19, 0.0 }
 0x66c   : > { %v6913_v15 = vpop.f32.mrf.mxu0 }
 0x66d   : > { %v3707_v55 = vadd.f32 %v6913_v15, %v8625_v5  ;;  %v3786_v22 = vmax.f32 %v3696_v1, 0.0 }
 0x66e   : > { %v3698_v17 = vpop.f32.mrf.mxu0 }
 0x66f   : > { %v3699_v42 = vadd.f32 %v8625_v5, %v3698_v17  ;;  %v3789_v52 = vmax.f32 %v3707_v55, 0.0 }
 0x671   : > { %v3787_v14 = vmax.f32 %v3699_v42, 0.0  ;;  %v3813_v25 = vpack.c.bf16 %v3789_v52, %v3788_v62  ;;  %v7379_v52 = vld [vmem:[%s9469_s19 + $0x38] sm:$0xff]   ;;  %v7381_v62 = vld [vmem:[%s9469_s19 + $0x28] sm:$0xff]  }
 0x672   : > { %7026 = vmatprep.subr.bf16.mxu1 %v7379_v52 }
 0x673   : > { %v3812_v44 = vpack.c.bf16 %v3787_v14, %v3786_v22  ;;  %v7380_v22 = vld [vmem:[%s9469_s19 + $0x30] sm:$0xff]   ;;  %7027 = vmatpush3.bf16.msra.mxu1 %v7379_v52 }
 0x674   : > { %7028 = vmatprep.subr.bf16.mxu1 %v7380_v22 }
 0x675   : > { %6958 = vmatprep.mubr.bf16.mxu1 %v3812_v44  ;;  %v8686_v44 = vld [vmem:[%s9466_s16] ss:$0 sm:$0xff] }
 0x676   : > { %6959 = vmatmul.mubr.bf16.gmra.mxu1 %v3813_v25 }
 0x677   : > { %7029 = vmatpush3.bf16.msra.mxu1 %v7380_v22 }
 0x678   : > { %v6916_v51 = vpop.f32.mrf.mxu0  ;;  %7030 = vmatprep.subr.bf16.mxu1 %v7381_v62 }
 0x679   : > { %v3720_v23 = vadd.f32 %v6916_v51, %v8625_v5 }
 0x67a   : > { %v3711_v57 = vpop.f32.mrf.mxu0 }
 0x67b   : > { %v3712_v63 = vadd.f32 %v8625_v5, %v3711_v57  ;;  %v3792_v61 = vmax.f32 %v3720_v23, 0.0  ;;  %7031 = vmatpush3.bf16.msra.mxu1 %v7381_v62 }
 0x67c   : > { %v6917_v58 = vpop.f32.mrf.mxu0 }
 0x67d   : > { %v3723_v26 = vadd.f32 %v6917_v58, %v8625_v5  ;;  %v3790_v59 = vmax.f32 %v3712_v63, 0.0 }
 0x67e   : > { %v3714_v28 = vpop.f32.mrf.mxu0 }
 0x67f   : > { %v3715_v30 = vadd.f32 %v8625_v5, %v3714_v28  ;;  %v3793_v31 = vmax.f32 %v3723_v26, 0.0  ;;  %v7382_v26 = vld [vmem:[%s9469_s19 + $0x20] sm:$0xff]  }
 0x680   : > { %7032 = vmatprep.subr.bf16.mxu1 %v7382_v26 }
 0x681   : > { %v3791_v60 = vmax.f32 %v3715_v30, 0.0  ;;  %v3815_v38 = vpack.c.bf16 %v3793_v31, %v3792_v61  ;;  %7033 = vmatpush3.bf16.msra.mxu1 %v7382_v26 }
 0x683   : > { %v3814_v47 = vpack.c.bf16 %v3791_v60, %v3790_v59  ;;  %v7383_v60 = vld [vmem:[%s9469_s19 + $0x18] sm:$0xff]  }
 0x684   : > { %7034 = vmatprep.subr.bf16.mxu1 %v7383_v60 }
 0x685   : > { %6962 = vmatprep.mubr.bf16.mxu1 %v3814_v47  ;;  %7035 = vmatpush3.bf16.msra.mxu1 %v7383_v60 }
 0x686   : > { %6963 = vmatmul.mubr.bf16.gmra.mxu1 %v3815_v38  ;;  %v7384_v38 = vld [vmem:[%s9469_s19 + $0x10] sm:$0xff]  }
 0x687   : > { %7036 = vmatprep.subr.bf16.mxu1 %v7384_v38 }
 0x688   : > { %v6920_v45 = vpop.f32.mrf.mxu0 }
 0x689   : > { %v3736_v33 = vadd.f32 %v6920_v45, %v8625_v5  ;;  %7037 = vmatpush3.bf16.msra.mxu1 %v7384_v38 }
 0x68a   : > { %v3727_v0 = vpop.f32.mrf.mxu0 }
 0x68b   : > { %v3728_v3 = vadd.f32 %v8625_v5, %v3727_v0  ;;  %v3796_v6 = vmax.f32 %v3736_v33, 0.0 }
 0x68c   : > { %v6921_v2 = vpop.f32.mrf.mxu0 }
 0x68d   : > { %v3739_v53 = vadd.f32 %v6921_v2, %v8625_v5  ;;  %v3794_v41 = vmax.f32 %v3728_v3, 0.0  ;;  %v7385_v2 = vld [vmem:[%s9469_s19 + $0x8] sm:$0xff]  }
 0x68e   : > { %v3730_v4 = vpop.f32.mrf.mxu0  ;;  %7038 = vmatprep.subr.bf16.mxu1 %v7385_v2 }
 0x68f   : > { %v3731_v27 = vadd.f32 %v8625_v5, %v3730_v4  ;;  %v3797_v32 = vmax.f32 %v3739_v53, 0.0  ;;  %7039 = vmatpush3.bf16.msra.mxu1 %v7385_v2 }
 0x691   : > { %v3795_v37 = vmax.f32 %v3731_v27, 0.0  ;;  %v3817_v40 = vpack.c.bf16 %v3797_v32, %v3796_v6 }
 0x693   : > { %v3816_v39 = vpack.c.bf16 %v3795_v37, %v3794_v41 }
 0x695   : > { %6966 = vmatprep.mubr.bf16.mxu1 %v3816_v39 }
 0x696   : > { %6967 = vmatmul.mubr.bf16.gmra.mxu1 %v3817_v40 }
 0x698   : > { %v6924_v8 = vpop.f32.mrf.mxu0 }
 0x699   : > { %v3752_v50 = vadd.f32 %v6924_v8, %v8625_v5 }
 0x69a   : > { %v3743_v10 = vpop.f32.mrf.mxu0 }
 0x69b   : > { %v3744_v13 = vadd.f32 %v8625_v5, %v3743_v10  ;;  %v3800_v43 = vmax.f32 %v3752_v50, 0.0 }
 0x69c   : > { %v6925_v12 = vpop.f32.mrf.mxu0 }
 0x69d   : > { %v3755_v24 = vadd.f32 %v6925_v12, %v8625_v5  ;;  %v3798_v7 = vmax.f32 %v3744_v13, 0.0 }
 0x69e   : > { %v3746_v11 = vpop.f32.mrf.mxu0 }
 0x69f   : > { %v3747_v36 = vadd.f32 %v8625_v5, %v3746_v11  ;;  %v3801_v9 = vmax.f32 %v3755_v24, 0.0 }
 0x6a1   : > { %v3799_v21 = vmax.f32 %v3747_v36, 0.0  ;;  %v3819_v16 = vpack.c.bf16 %v3801_v9, %v3800_v43 }
 0x6a3   : > { %v3818_v29 = vpack.c.bf16 %v3799_v21, %v3798_v7 }
 0x6a5   : > { %6970 = vmatprep.mubr.bf16.mxu1 %v3818_v29 }
 0x6a6   : > { %6971 = vmatmul.mubr.bf16.gmra.mxu1 %v3819_v16 }
 0x6a8   : > { %v6928_v49 = vpop.f32.mrf.mxu0 }
 0x6a9   : > { %v3768_v35 = vadd.f32 %v6928_v49, %v8625_v5 }
 0x6aa   : > { %v3759_v46 = vpop.f32.mrf.mxu0 }
 0x6ab   : > { %v3760_v56 = vadd.f32 %v8625_v5, %v3759_v46  ;;  %v3804_v19 = vmax.f32 %v3768_v35, 0.0 }
 0x6ac   : > { %v6929_v48 = vpop.f32.mrf.mxu0 }
 0x6ad   : > { %v3771_v20 = vadd.f32 %v6929_v48, %v8625_v5  ;;  %v3802_v1 = vmax.f32 %v3760_v56, 0.0 }
 0x6ae   : > { %v3762_v18 = vpop.f32.mrf.mxu0 }
 0x6af   : > { %v3763_v54 = vadd.f32 %v8625_v5, %v3762_v18  ;;  %v3805_v15 = vmax.f32 %v3771_v20, 0.0 }
 0x6b1   : > { %v3803_v55 = vmax.f32 %v3763_v54, 0.0  ;;  %v3821_v42 = vpack.c.bf16 %v3805_v15, %v3804_v19 }
 0x6b3   : > { %v3820_v17 = vpack.c.bf16 %v3803_v55, %v3802_v1 }
 0x6b5   : > { %6974 = vmatprep.mubr.bf16.mxu1 %v3820_v17 }
 0x6b6   : > { %6975 = vmatmul.mubr.bf16.gmra.mxu1 %v3821_v42 }
 0x706   : > { %v6948_v14 = vpop.f32.mrf.mxu1 }
 0x707   : > { %v3936_v58 = vadd.f32 %v6948_v14, %v8686_v44 }
 0x708   : > { %v3927_v5 = vpop.f32.mrf.mxu1 }
 0x709   : > { %v3928_v51 = vadd.f32 %v8686_v44, %v3927_v5  ;;  %v4056_v59 = vmax.f32 %v3936_v58, 0.0 }
 0x70a   : > { %v6949_v25 = vpop.f32.mrf.mxu1 }
 0x70b   : > { %v3939_v57 = vadd.f32 %v6949_v25, %v8686_v44  ;;  %v4054_v30 = vmax.f32 %v3928_v51, 0.0 }
 0x70c   : > { %v3930_v63 = vpop.f32.mrf.mxu1 }
 0x70d   : > { %v3931_v23 = vadd.f32 %v8686_v44, %v3930_v63  ;;  %v4057_v28 = vmax.f32 %v3939_v57, 0.0 }
 0x70f   : > { %v4055_v31 = vmax.f32 %v3931_v23, 0.0  ;;  %v4087_v47 = vpack.c.bf16 %v4057_v28, %v4056_v59 }
 0x711   : > { %v4086_v61 = vpack.c.bf16 %v4055_v31, %v4054_v30 }
 0x713   : > { %6994 = vmatprep.mubr.bf16.mxu0 %v4086_v61 }
 0x714   : > { %6995 = vmatmul.mubr.bf16.vlgmr.msra.gmra.mxu0 %v4087_v47 }
 0x716   : > { %v6952_v45 = vpop.f32.mrf.mxu1 }
 0x717   : > { %v3952_v4 = vadd.f32 %v6952_v45, %v8686_v44 }
 0x718   : > { %v3943_v0 = vpop.f32.mrf.mxu1 }
 0x719   : > { %v3944_v53 = vadd.f32 %v8686_v44, %v3943_v0  ;;  %v4060_v6 = vmax.f32 %v3952_v4, 0.0  ;;  %v7386_v0 = vld [vmem:[%s9469_s19] sm:$0xff]  }
 0x71a   : > { %v6953_v3 = vpop.f32.mrf.mxu1  ;;  %7040 = vmatprep.subr.bf16.mxu1 %v7386_v0 }
 0x71b   : > { %v3955_v33 = vadd.f32 %v6953_v3, %v8686_v44  ;;  %v4058_v41 = vmax.f32 %v3944_v53, 0.0  ;;  %7041 = vmatpush3.bf16.msra.mxu1 %v7386_v0 }
 0x71c   : > { %v3946_v34 = vpop.f32.mrf.mxu1 }
 0x71d   : > { %v3947_v27 = vadd.f32 %v8686_v44, %v3946_v34  ;;  %v4061_v32 = vmax.f32 %v3955_v33, 0.0 }
 0x71f   : > { %v4059_v37 = vmax.f32 %v3947_v27, 0.0  ;;  %v4089_v40 = vpack.c.bf16 %v4061_v32, %v4060_v6 }
 0x721   : > { %v4088_v39 = vpack.c.bf16 %v4059_v37, %v4058_v41 }
 0x723   : > { %6998 = vmatprep.mubr.bf16.mxu0 %v4088_v39 }
 0x724   : > { %6999 = vmatmul.mubr.bf16.gmra.mxu0 %v4089_v40 }
 0x726   : > { %v6956_v8 = vpop.f32.mrf.mxu1 }
 0x727   : > { %v3968_v50 = vadd.f32 %v6956_v8, %v8686_v44 }
 0x728   : > { %v3959_v10 = vpop.f32.mrf.mxu1 }
 0x729   : > { %v3960_v13 = vadd.f32 %v8686_v44, %v3959_v10  ;;  %v4064_v43 = vmax.f32 %v3968_v50, 0.0 }
 0x72a   : > { %v6957_v12 = vpop.f32.mrf.mxu1 }
 0x72b   : > { %v3971_v24 = vadd.f32 %v6957_v12, %v8686_v44  ;;  %v4062_v7 = vmax.f32 %v3960_v13, 0.0 }
 0x72c   : > { %v3962_v11 = vpop.f32.mrf.mxu1 }
 0x72d   : > { %v3963_v36 = vadd.f32 %v8686_v44, %v3962_v11  ;;  %v4065_v9 = vmax.f32 %v3971_v24, 0.0 }
 0x72f   : > { %v4063_v21 = vmax.f32 %v3963_v36, 0.0  ;;  %v4091_v16 = vpack.c.bf16 %v4065_v9, %v4064_v43 }
 0x731   : > { %v4090_v29 = vpack.c.bf16 %v4063_v21, %v4062_v7 }
 0x733   : > { %7002 = vmatprep.mubr.bf16.mxu0 %v4090_v29 }
 0x734   : > { %7003 = vmatmul.mubr.bf16.gmra.mxu0 %v4091_v16 }
 0x736   : > { %v6960_v49 = vpop.f32.mrf.mxu1 }
 0x737   : > { %v3984_v35 = vadd.f32 %v6960_v49, %v8686_v44 }
 0x738   : > { %v3975_v46 = vpop.f32.mrf.mxu1 }
 0x739   : > { %v3976_v56 = vadd.f32 %v8686_v44, %v3975_v46  ;;  %v4068_v19 = vmax.f32 %v3984_v35, 0.0 }
 0x73a   : > { %v6961_v48 = vpop.f32.mrf.mxu1 }
 0x73b   : > { %v3987_v20 = vadd.f32 %v6961_v48, %v8686_v44  ;;  %v4066_v1 = vmax.f32 %v3976_v56, 0.0 }
 0x73c   : > { %v3978_v18 = vpop.f32.mrf.mxu1 }
 0x73d   : > { %v3979_v54 = vadd.f32 %v8686_v44, %v3978_v18  ;;  %v4069_v15 = vmax.f32 %v3987_v20, 0.0 }
 0x73f   : > { %v4067_v55 = vmax.f32 %v3979_v54, 0.0  ;;  %v4093_v42 = vpack.c.bf16 %v4069_v15, %v4068_v19  ;;  %v7387_v15 = vld [vmem:[%s9471_s21 + $0x70] ss:$8 sps:$4 sm:$0xff]   ;;  %v7390_v19 = vld [vmem:[%s9471_s21 + $0x60] ss:$8 sps:$4 sm:$0xff]  }
 0x741   : > { %v4092_v17 = vpack.c.bf16 %v4067_v55, %v4066_v1  ;;  %v7389_v1 = vld [vmem:[%s9471_s21 + $0x74] ss:$8 sps:$4 sm:$0xff]  }
 0x742   : > { %4770 = vmatprep.subr.bf16.mxu0 %v7389_v1 }
 0x743   : > { %7006 = vmatprep.mubr.bf16.mxu0 %v4092_v17  ;;  %4771 = vmatpush1.bf16.msra.mxu0 %v7387_v15 }
 0x744   : > { %7007 = vmatmul.mubr.bf16.gmra.mxu0 %v4093_v42  ;;  %v7395_v42 = vld [vmem:[%s9471_s21 + $0x54] ss:$8 sps:$4 sm:$0xff]  }
 0x746   : > { %v6964_v52 = vpop.f32.mrf.mxu1 }
 0x747   : > { %v4000_v25 = vadd.f32 %v6964_v52, %v8686_v44  ;;  %v8753_v52 = vld [vmem:[%s9468_s18] ss:$0 sm:$0xff] }
 0x748   : > { %v3991_v22 = vpop.f32.mrf.mxu1 }
 0x749   : > { %v3992_v5 = vadd.f32 %v8686_v44, %v3991_v22  ;;  %v4072_v23 = vmax.f32 %v4000_v25, 0.0 }
 0x74a   : > { %v6965_v14 = vpop.f32.mrf.mxu1 }
 0x74b   : > { %v4003_v62 = vadd.f32 %v6965_v14, %v8686_v44  ;;  %v4070_v63 = vmax.f32 %v3992_v5, 0.0 }
 0x74c   : > { %v3994_v51 = vpop.f32.mrf.mxu1 }
 0x74d   : > { %v3995_v57 = vadd.f32 %v8686_v44, %v3994_v51  ;;  %v4073_v58 = vmax.f32 %v4003_v62, 0.0  ;;  %v7393_v62 = vld [vmem:[%s9471_s21 + $0x50] ss:$8 sps:$4 sm:$0xff]  }
 0x74f   : > { %v4071_v26 = vmax.f32 %v3995_v57, 0.0  ;;  %v4095_v30 = vpack.c.bf16 %v4073_v58, %v4072_v23  ;;  %v7398_v57 = vld [vmem:[%s9471_s21 + $0x44] ss:$8 sps:$4 sm:$0xff]  }
 0x751   : > { %v4094_v28 = vpack.c.bf16 %v4071_v26, %v4070_v63 }
 0x753   : > { %7010 = vmatprep.mubr.bf16.mxu0 %v4094_v28  ;;  %v7396_v28 = vld [vmem:[%s9471_s21 + $0x40] ss:$8 sps:$4 sm:$0xff]  }
 0x754   : > { %7011 = vmatmul.mubr.bf16.gmra.mxu0 %v4095_v30 }
 0x756   : > { %v6968_v31 = vpop.f32.mrf.mxu1 }
 0x757   : > { %v4016_v38 = vadd.f32 %v6968_v31, %v8686_v44  ;;  %v7401_v31 = vld [vmem:[%s9471_s21 + $0x34] ss:$8 sps:$4 sm:$0xff]  }
 0x758   : > { %v4007_v59 = vpop.f32.mrf.mxu1 }
 0x759   : > { %v4008_v61 = vadd.f32 %v8686_v44, %v4007_v59  ;;  %v4076_v4 = vmax.f32 %v4016_v38, 0.0 }
 0x75a   : > { %v6969_v60 = vpop.f32.mrf.mxu1 }
 0x75b   : > { %v4019_v47 = vadd.f32 %v6969_v60, %v8686_v44  ;;  %v4074_v53 = vmax.f32 %v4008_v61, 0.0  ;;  %v7399_v61 = vld [vmem:[%s9471_s21 + $0x30] ss:$8 sps:$4 sm:$0xff]  }
 0x75c   : > { %v4010_v45 = vpop.f32.mrf.mxu1 }
 0x75d   : > { %v4011_v2 = vadd.f32 %v8686_v44, %v4010_v45  ;;  %v4077_v3 = vmax.f32 %v4019_v47, 0.0  ;;  %v7404_v47 = vld [vmem:[%s9471_s21 + $0x24] ss:$8 sps:$4 sm:$0xff]   ;;  %v7402_v45 = vld [vmem:[%s9471_s21 + $0x20] ss:$8 sps:$4 sm:$0xff]  }
 0x75f   : > { %v4075_v33 = vmax.f32 %v4011_v2, 0.0  ;;  %v4097_v27 = vpack.c.bf16 %v4077_v3, %v4076_v4  ;;  %v7407_v2 = vld [vmem:[%s9471_s21 + $0x14] ss:$8 sps:$4 sm:$0xff]   ;;  %v7405_v4 = vld [vmem:[%s9471_s21 + $0x10] ss:$8 sps:$4 sm:$0xff]  }
 0x761   : > { %v4096_v34 = vpack.c.bf16 %v4075_v33, %v4074_v53 }
 0x763   : > { %7014 = vmatprep.mubr.bf16.mxu0 %v4096_v34 }
 0x764   : > { %7015 = vmatmul.mubr.bf16.gmra.mxu0 %v4097_v27 }
 0x766   : > { %v6972_v32 = vpop.f32.mrf.mxu1 }
 0x767   : > { %v4032_v40 = vadd.f32 %v6972_v32, %v8686_v44 }
 0x768   : > { %v4023_v41 = vpop.f32.mrf.mxu1 }
 0x769   : > { %v4024_v6 = vadd.f32 %v8686_v44, %v4023_v41  ;;  %v4080_v50 = vmax.f32 %v4032_v40, 0.0 }
 0x76a   : > { %v6973_v37 = vpop.f32.mrf.mxu1 }
 0x76b   : > { %v4035_v39 = vadd.f32 %v6973_v37, %v8686_v44  ;;  %v4078_v13 = vmax.f32 %v4024_v6, 0.0 }
 0x76c   : > { %v4026_v8 = vpop.f32.mrf.mxu1 }
 0x76d   : > { %v4027_v10 = vadd.f32 %v8686_v44, %v4026_v8  ;;  %v4081_v12 = vmax.f32 %v4035_v39, 0.0 }
 0x76f   : > { %v4079_v24 = vmax.f32 %v4027_v10, 0.0  ;;  %v4099_v36 = vpack.c.bf16 %v4081_v12, %v4080_v50 }
 0x771   : > { %v4098_v11 = vpack.c.bf16 %v4079_v24, %v4078_v13 }
 0x773   : > { %7018 = vmatprep.mubr.bf16.mxu0 %v4098_v11 }
 0x774   : > { %7019 = vmatmul.mubr.bf16.gmra.mxu0 %v4099_v36 }
 0x776   : > { %v6976_v9 = vpop.f32.mrf.mxu1 }
 0x777   : > { %v4048_v16 = vadd.f32 %v6976_v9, %v8686_v44 }
 0x778   : > { %v4039_v7 = vpop.f32.mrf.mxu1 }
 0x779   : > { %v4040_v43 = vadd.f32 %v8686_v44, %v4039_v7  ;;  %v4084_v35 = vmax.f32 %v4048_v16, 0.0 }
 0x77a   : > { %v6977_v21 = vpop.f32.mrf.mxu1 }
 0x77b   : > { %v4051_v29 = vadd.f32 %v6977_v21, %v8686_v44  ;;  %v4082_v56 = vmax.f32 %v4040_v43, 0.0 }
 0x77c   : > { %v4042_v49 = vpop.f32.mrf.mxu1 }
 0x77d   : > { %v4043_v46 = vadd.f32 %v8686_v44, %v4042_v49  ;;  %v4085_v48 = vmax.f32 %v4051_v29, 0.0  ;;  %v7392_v44 = vld [vmem:[%s9471_s21 + $0x64] ss:$8 sps:$4 sm:$0xff]  }
 0x77e   : > { %4772 = vmatprep.subr.bf16.mxu0 %v7392_v44 }
 0x77f   : > { %v4083_v20 = vmax.f32 %v4043_v46, 0.0  ;;  %v4101_v54 = vpack.c.bf16 %v4085_v48, %v4084_v35  ;;  %4773 = vmatpush1.bf16.msra.mxu0 %v7390_v19 }
 0x780   : > { %4774 = vmatprep.subr.bf16.mxu0 %v7395_v42 }
 0x781   : > { %v4100_v18 = vpack.c.bf16 %v4083_v20, %v4082_v56 }
 0x783   : > { %7022 = vmatprep.mubr.bf16.mxu0 %v4100_v18  ;;  %4775 = vmatpush1.bf16.msra.mxu0 %v7393_v62 }
 0x784   : > { %7023 = vmatmul.mubr.bf16.gmra.mxu0 %v4101_v54  ;;  %4776 = vmatprep.subr.bf16.mxu0 %v7398_v57 }
 0x787   : > { %4777 = vmatpush1.bf16.msra.mxu0 %v7396_v28 }
 0x788   : > { %4778 = vmatprep.subr.bf16.mxu0 %v7401_v31 }
 0x78b   : > { %4779 = vmatpush1.bf16.msra.mxu0 %v7399_v61 }
 0x78c   : > { %4780 = vmatprep.subr.bf16.mxu0 %v7404_v47 }
 0x78f   : > { %4781 = vmatpush1.bf16.msra.mxu0 %v7402_v45  ;;  %v7410_v45 = vld [vmem:[%s9471_s21 + $0x4] ss:$8 sps:$4 sm:$0xff]  }
 0x790   : > { %4782 = vmatprep.subr.bf16.mxu0 %v7407_v2 }
 0x793   : > { %4783 = vmatpush1.bf16.msra.mxu0 %v7405_v4 }
 0x794   : > { %4784 = vmatprep.subr.bf16.mxu0 %v7410_v45 }
 0x7d4   : > { %v6996_v55 = vpop.f32.mrf.mxu0 }
 0x7d5   : > { %v4216_v25 = vadd.f32 %v6996_v55, %v8753_v52 }
 0x7d6   : > { %v4207_v17 = vpop.f32.mrf.mxu0 }
 0x7d7   : > { %v4208_v14 = vadd.f32 %v8753_v52, %v4207_v17  ;;  %v4336_v30 = vmax.f32 %v4216_v25, 0.0 }
 0x7d8   : > { %v6997_v22 = vpop.f32.mrf.mxu0 }
 0x7d9   : > { %v4219_v5 = vadd.f32 %v6997_v22, %v8753_v52  ;;  %v4334_v26 = vmax.f32 %v4208_v14, 0.0 }
 0x7da   : > { %v4210_v51 = vpop.f32.mrf.mxu0 }
 0x7db   : > { %v4211_v58 = vadd.f32 %v8753_v52, %v4210_v51  ;;  %v4337_v63 = vmax.f32 %v4219_v5, 0.0 }
 0x7dd   : > { %v4335_v23 = vmax.f32 %v4211_v58, 0.0  ;;  %v4367_v60 = vpack.c.bf16 %v4337_v63, %v4336_v30 }
 0x7df   : > { %v4366_v59 = vpack.c.bf16 %v4335_v23, %v4334_v26 }
 0x7e1   : > { %7042 = vmatprep.mubr.bf16.mxu1 %v4366_v59 }
 0x7e2   : > { %7043 = vmatmul.mubr.bf16.vlgmr.msra.gmra.mxu1 %v4367_v60 }
 0x7e4   : > { %v7000_v38 = vpop.f32.mrf.mxu0 }
 0x7e5   : > { %v4232_v34 = vadd.f32 %v7000_v38, %v8753_v52 }
 0x7e6   : > { %v4223_v0 = vpop.f32.mrf.mxu0 }
 0x7e7   : > { %v4224_v53 = vadd.f32 %v8753_v52, %v4223_v0  ;;  %v4340_v39 = vmax.f32 %v4232_v34, 0.0 }
 0x7e8   : > { %v7001_v3 = vpop.f32.mrf.mxu0 }
 0x7e9   : > { %v4235_v33 = vadd.f32 %v7001_v3, %v8753_v52  ;;  %v4338_v37 = vmax.f32 %v4224_v53, 0.0  ;;  %v7408_v3 = vld [vmem:[%s9471_s21] ss:$8 sps:$4 sm:$0xff]  }
 0x7ea   : > { %v4226_v27 = vpop.f32.mrf.mxu0  ;;  %4785 = vmatpush1.bf16.msra.mxu0 %v7408_v3 }
 0x7eb   : > { %v4227_v32 = vadd.f32 %v8753_v52, %v4226_v27  ;;  %v4341_v41 = vmax.f32 %v4235_v33, 0.0 }
 0x7ed   : > { %v4339_v6 = vmax.f32 %v4227_v32, 0.0  ;;  %v4369_v8 = vpack.c.bf16 %v4341_v41, %v4340_v39  ;;  %v7515_v32 = vmov 0  }
 0x7ee   : > { %4802 = vmatprep.mubr.bf16.mxu0 %v7515_v32 }
 0x7ef   : > { %v4368_v40 = vpack.c.bf16 %v4339_v6, %v4338_v37 }
 0x7f1   : > { %7046 = vmatprep.mubr.bf16.mxu1 %v4368_v40 }
 0x7f2   : > { %7047 = vmatmul.mubr.bf16.gmra.mxu1 %v4369_v8 }
 0x7f4   : > { %v7004_v10 = vpop.f32.mrf.mxu0 }
 0x7f5   : > { %v4248_v11 = vadd.f32 %v7004_v10, %v8753_v52 }
 0x7f6   : > { %v4239_v12 = vpop.f32.mrf.mxu0 }
 0x7f7   : > { %v4240_v24 = vadd.f32 %v8753_v52, %v4239_v12  ;;  %v4344_v29 = vmax.f32 %v4248_v11, 0.0 }
 0x7f8   : > { %v7005_v13 = vpop.f32.mrf.mxu0 }
 0x7f9   : > { %v4251_v50 = vadd.f32 %v7005_v13, %v8753_v52  ;;  %v4342_v21 = vmax.f32 %v4240_v24, 0.0 }
 0x7fa   : > { %v4242_v36 = vpop.f32.mrf.mxu0 }
 0x7fb   : > { %v4243_v9 = vadd.f32 %v8753_v52, %v4242_v36  ;;  %v4345_v7 = vmax.f32 %v4251_v50, 0.0 }
 0x7fd   : > { %v4343_v43 = vmax.f32 %v4243_v9, 0.0  ;;  %v4371_v49 = vpack.c.bf16 %v4345_v7, %v4344_v29 }
 0x7ff   : > { %v4370_v16 = vpack.c.bf16 %v4343_v43, %v4342_v21 }
 0x801   : > { %7050 = vmatprep.mubr.bf16.mxu1 %v4370_v16 }
 0x802   : > { %7051 = vmatmul.mubr.bf16.gmra.mxu1 %v4371_v49 }
 0x804   : > { %v7008_v46 = vpop.f32.mrf.mxu0 }
 0x805   : > { %v4264_v18 = vadd.f32 %v7008_v46, %v8753_v52 }
 0x806   : > { %v4255_v48 = vpop.f32.mrf.mxu0 }
 0x807   : > { %v4256_v20 = vadd.f32 %v8753_v52, %v4255_v48  ;;  %v4348_v19 = vmax.f32 %v4264_v18, 0.0 }
 0x808   : > { %v7009_v56 = vpop.f32.mrf.mxu0 }
 0x809   : > { %v4267_v35 = vadd.f32 %v7009_v56, %v8753_v52  ;;  %v4346_v44 = vmax.f32 %v4256_v20, 0.0 }
 0x80a   : > { %v4258_v54 = vpop.f32.mrf.mxu0 }
 0x80b   : > { %v4259_v15 = vadd.f32 %v8753_v52, %v4258_v54  ;;  %v4349_v1 = vmax.f32 %v4267_v35, 0.0 }
 0x80d   : > { %v4347_v55 = vmax.f32 %v4259_v15, 0.0  ;;  %v4373_v42 = vpack.c.bf16 %v4349_v1, %v4348_v19 }
 0x80f   : > { %v4372_v17 = vpack.c.bf16 %v4347_v55, %v4346_v44  ;;  %v7413_v55 = vld [vmem:[%s9473_s23 + $0xec] ss:$16 sps:$4 sm:$0xff]  }
 0x810   : > { %5658 = vmatprep.subr.bf16.mxu0 %v7413_v55  ;;  %v7473_v55 = vld [vmem:[%s9473_s23 + $0x1e4] ss:$16 sps:$4 sm:$0xff]  }
 0x811   : > { %7054 = vmatprep.mubr.bf16.mxu1 %v4372_v17 }
 0x812   : > { %7055 = vmatmul.mubr.bf16.gmra.mxu1 %v4373_v42  ;;  %v8827_v42 = vld [vmem:[%s9470_s20] ss:$0 sm:$0xff] }
 0x814   : > { %v7012_v22 = vpop.f32.mrf.mxu0 }
 0x815   : > { %v4280_v51 = vadd.f32 %v7012_v22, %v8753_v52 }
 0x816   : > { %v4271_v14 = vpop.f32.mrf.mxu0 }
 0x817   : > { %v4272_v62 = vadd.f32 %v8753_v52, %v4271_v14  ;;  %v4352_v28 = vmax.f32 %v4280_v51, 0.0  ;;  %v7443_v51 = vld [vmem:[%s9473_s23 + $0xc4] ss:$16 sps:$4 sm:$0xff]  }
 0x818   : > { %v7013_v5 = vpop.f32.mrf.mxu0 }
 0x819   : > { %v4283_v25 = vadd.f32 %v7013_v5, %v8753_v52  ;;  %v4350_v26 = vmax.f32 %v4272_v62, 0.0  ;;  %v7435_v5 = vld [vmem:[%s9473_s23 + $0xe0] ss:$16 sps:$4 sm:$0xff]  }
 0x81a   : > { %v4274_v57 = vpop.f32.mrf.mxu0 }
 0x81b   : > { %v4275_v58 = vadd.f32 %v8753_v52, %v4274_v57  ;;  %v4353_v63 = vmax.f32 %v4283_v25, 0.0  ;;  %v7437_v25 = vld [vmem:[%s9473_s23 + $0xe4] ss:$16 sps:$4 sm:$0xff]  }
 0x81c   : > { %5465 = vmatprep.subr.bf16.mxu1 %v7437_v25 }
 0x81d   : > { %v4351_v23 = vmax.f32 %v4275_v58, 0.0  ;;  %v4375_v31 = vpack.c.bf16 %v4353_v63, %v4352_v28  ;;  %v7411_v63 = vld [vmem:[%s9473_s23 + $0xe8] ss:$16 sps:$4 sm:$0xff]   ;;  %5466 = vmatpush1.bf16.msra.mxu1 %v7435_v5  ;;  %v7416_v28 = vld [vmem:[%s9473_s23 + $0xcc] ss:$16 sps:$4 sm:$0xff]  }
 0x81e   : > { %5467 = vmatprep.subr.bf16.mxu1 %v7443_v51  ;;  %v7471_v5 = vld [vmem:[%s9473_s23 + $0x1e0] ss:$16 sps:$4 sm:$0xff]  }
 0x81f   : > { %v4374_v30 = vpack.c.bf16 %v4351_v23, %v4350_v26 }
 0x821   : > { %7058 = vmatprep.mubr.bf16.mxu1 %v4374_v30  ;;  %v7441_v30 = vld [vmem:[%s9473_s23 + $0xc0] ss:$16 sps:$4 sm:$0xff]  }
 0x822   : > { %7059 = vmatmul.mubr.bf16.gmra.mxu1 %v4375_v31  ;;  %v7446_v31 = vld [vmem:[%s9473_s23 + $0xa4] ss:$16 sps:$4 sm:$0xff]  }
 0x823   : > { %5468 = vmatpush1.bf16.msra.mxu1 %v7441_v30 }
 0x824   : > { %v7016_v59 = vpop.f32.mrf.mxu0  ;;  %5469 = vmatprep.subr.bf16.mxu1 %v7446_v31  ;;  %v7447_v31 = vld [vmem:[%s9473_s23 + $0x1c8] ss:$16 sps:$4 sm:$0xff]  }
 0x825   : > { %v4296_v0 = vadd.f32 %v7016_v59, %v8753_v52 }
 0x826   : > { %v4287_v60 = vpop.f32.mrf.mxu0 }
 0x827   : > { %v4288_v47 = vadd.f32 %v8753_v52, %v4287_v60  ;;  %v4356_v27 = vmax.f32 %v4296_v0, 0.0  ;;  %v7414_v60 = vld [vmem:[%s9473_s23 + $0xc8] ss:$16 sps:$4 sm:$0xff]   ;;  %v7452_v0 = vld [vmem:[%s9473_s23 + $0x84] ss:$16 sps:$4 sm:$0xff]  }
 0x828   : > { %v7017_v61 = vpop.f32.mrf.mxu0 }
 0x829   : > { %v4299_v38 = vadd.f32 %v7017_v61, %v8753_v52  ;;  %v4354_v4 = vmax.f32 %v4288_v47, 0.0  ;;  %v7419_v47 = vld [vmem:[%s9473_s23 + $0xac] ss:$16 sps:$4 sm:$0xff]  }
 0x82a   : > { %v4290_v2 = vpop.f32.mrf.mxu0 }
 0x82b   : > { %v4291_v53 = vadd.f32 %v8753_v52, %v4290_v2  ;;  %v4357_v33 = vmax.f32 %v4299_v38, 0.0  ;;  %v7444_v38 = vld [vmem:[%s9473_s23 + $0xa0] ss:$16 sps:$4 sm:$0xff]  }
 0x82c   : > { %5470 = vmatpush1.bf16.msra.mxu1 %v7444_v38  ;;  %v7488_v38 = vld [vmem:[%s9473_s23 + $0x184] ss:$16 sps:$4 sm:$0xff]  }
 0x82d   : > { %v4355_v34 = vmax.f32 %v4291_v53, 0.0  ;;  %v4377_v37 = vpack.c.bf16 %v4357_v33, %v4356_v27  ;;  %v7417_v53 = vld [vmem:[%s9473_s23 + $0xa8] ss:$16 sps:$4 sm:$0xff]   ;;  %5471 = vmatprep.subr.bf16.mxu1 %v7452_v0 }
 0x82f   : > { %v4376_v41 = vpack.c.bf16 %v4355_v34, %v4354_v4  ;;  %v7422_v4 = vld [vmem:[%s9473_s23 + $0x8c] ss:$16 sps:$4 sm:$0xff]   ;;  %v7450_v34 = vld [vmem:[%s9473_s23 + $0x80] ss:$16 sps:$4 sm:$0xff]  }
 0x830   : > { %5472 = vmatpush1.bf16.msra.mxu1 %v7450_v34  ;;  %v7491_v34 = vld [vmem:[%s9473_s23 + $0x164] ss:$16 sps:$4 sm:$0xff]  }
 0x831   : > { %7062 = vmatprep.mubr.bf16.mxu1 %v4376_v41  ;;  %v7455_v41 = vld [vmem:[%s9473_s23 + $0x64] ss:$16 sps:$4 sm:$0xff]  }
 0x832   : > { %7063 = vmatmul.mubr.bf16.gmra.mxu1 %v4377_v37  ;;  %5473 = vmatprep.subr.bf16.mxu1 %v7455_v41 }
 0x834   : > { %v7020_v6 = vpop.f32.mrf.mxu0 }
 0x835   : > { %v4312_v12 = vadd.f32 %v7020_v6, %v8753_v52 }
 0x836   : > { %v4303_v39 = vpop.f32.mrf.mxu0 }
 0x837   : > { %v4304_v8 = vadd.f32 %v8753_v52, %v4303_v39  ;;  %v4360_v9 = vmax.f32 %v4312_v12, 0.0  ;;  %v7420_v39 = vld [vmem:[%s9473_s23 + $0x88] ss:$16 sps:$4 sm:$0xff]   ;;  %v7461_v12 = vld [vmem:[%s9473_s23 + $0x44] ss:$16 sps:$4 sm:$0xff]  }
 0x838   : > { %v7021_v40 = vpop.f32.mrf.mxu0 }
 0x839   : > { %v4315_v10 = vadd.f32 %v7021_v40, %v8753_v52  ;;  %v4358_v11 = vmax.f32 %v4304_v8, 0.0  ;;  %v7425_v8 = vld [vmem:[%s9473_s23 + $0x6c] ss:$16 sps:$4 sm:$0xff]  }
 0x83a   : > { %v4306_v13 = vpop.f32.mrf.mxu0 }
 0x83b   : > { %v4307_v24 = vadd.f32 %v8753_v52, %v4306_v13  ;;  %v4361_v50 = vmax.f32 %v4315_v10, 0.0  ;;  %v7453_v10 = vld [vmem:[%s9473_s23 + $0x60] ss:$16 sps:$4 sm:$0xff]  }
 0x83c   : > { %5474 = vmatpush1.bf16.msra.mxu1 %v7453_v10 }
 0x83d   : > { %v4359_v36 = vmax.f32 %v4307_v24, 0.0  ;;  %v4379_v21 = vpack.c.bf16 %v4361_v50, %v4360_v9  ;;  %v7423_v50 = vld [vmem:[%s9473_s23 + $0x68] ss:$16 sps:$4 sm:$0xff]   ;;  %v7428_v9 = vld [vmem:[%s9473_s23 + $0x4c] ss:$16 sps:$4 sm:$0xff]   ;;  %5475 = vmatprep.subr.bf16.mxu1 %v7461_v12 }
 0x83e   : > { %v7474_v12 = vld [vmem:[%s9473_s23 + $0x168] ss:$16 sps:$4 sm:$0xff]  }
 0x83f   : > { %v4378_v7 = vpack.c.bf16 %v4359_v36, %v4358_v11 }
 0x841   : > { %7066 = vmatprep.mubr.bf16.mxu1 %v4378_v7  ;;  %v7459_v7 = vld [vmem:[%s9473_s23 + $0x40] ss:$16 sps:$4 sm:$0xff]  }
 0x842   : > { %7067 = vmatmul.mubr.bf16.gmra.mxu1 %v4379_v21  ;;  %v7464_v21 = vld [vmem:[%s9473_s23 + $0x24] ss:$16 sps:$4 sm:$0xff]  }
 0x843   : > { %5476 = vmatpush1.bf16.msra.mxu1 %v7459_v7  ;;  %v7494_v7 = vld [vmem:[%s9473_s23 + $0x12c] ss:$16 sps:$4 sm:$0xff]  }
 0x844   : > { %v7024_v43 = vpop.f32.mrf.mxu0  ;;  %5477 = vmatprep.subr.bf16.mxu1 %v7464_v21 }
 0x845   : > { %v4328_v48 = vadd.f32 %v7024_v43, %v8753_v52 }
 0x846   : > { %v4319_v29 = vpop.f32.mrf.mxu0 }
 0x847   : > { %v4320_v49 = vadd.f32 %v8753_v52, %v4319_v29  ;;  %v4364_v15 = vmax.f32 %v4328_v48, 0.0  ;;  %v7426_v29 = vld [vmem:[%s9473_s23 + $0x48] ss:$16 sps:$4 sm:$0xff]  }
 0x848   : > { %v7025_v16 = vpop.f32.mrf.mxu0 }
 0x849   : > { %v4331_v46 = vadd.f32 %v7025_v16, %v8753_v52  ;;  %v4362_v18 = vmax.f32 %v4320_v49, 0.0  ;;  %v7431_v49 = vld [vmem:[%s9473_s23 + $0x2c] ss:$16 sps:$4 sm:$0xff]  }
 0x84a   : > { %v4322_v56 = vpop.f32.mrf.mxu0 }
 0x84b   : > { %v4323_v20 = vadd.f32 %v8753_v52, %v4322_v56  ;;  %v4365_v35 = vmax.f32 %v4331_v46, 0.0  ;;  %v7462_v46 = vld [vmem:[%s9473_s23 + $0x20] ss:$16 sps:$4 sm:$0xff]   ;;  %v7470_v56 = vld [vmem:[%s9473_s23 + $0x4] ss:$16 sps:$4 sm:$0xff]  }
 0x84c   : > { %5478 = vmatpush1.bf16.msra.mxu1 %v7462_v46 }
 0x84d   : > { %v4363_v54 = vmax.f32 %v4323_v20, 0.0  ;;  %v4381_v44 = vpack.c.bf16 %v4365_v35, %v4364_v15  ;;  %v7434_v15 = vld [vmem:[%s9473_s23 + $0xc] ss:$16 sps:$4 sm:$0xff]   ;;  %5479 = vmatprep.subr.bf16.mxu1 %v7470_v56 }
 0x84f   : > { %v4380_v1 = vpack.c.bf16 %v4363_v54, %v4362_v18  ;;  %v7429_v18 = vld [vmem:[%s9473_s23 + $0x28] ss:$16 sps:$4 sm:$0xff]  }
 0x851   : > { %7070 = vmatprep.mubr.bf16.mxu1 %v4380_v1  ;;  %v7468_v1 = vld [vmem:[%s9473_s23] ss:$16 sps:$4 sm:$0xff]  }
 0x852   : > { %7071 = vmatmul.mubr.bf16.gmra.mxu1 %v4381_v44 }
 0x853   : > { %5480 = vmatpush1.bf16.msra.mxu1 %v7468_v1 }
 0x854   : > { %5481 = vmatprep.subr.bf16.mxu1 %v7473_v55  ;;  %v7495_v55 = vld [vmem:[%s9473_s23 + $0x140] ss:$16 sps:$4 sm:$0xff]  }
 0x857   : > { %5482 = vmatpush2.bf16.msra.mxu1 %v7471_v5  ;;  %v7498_v5 = vld [vmem:[%s9473_s23 + $0x120] ss:$16 sps:$4 sm:$0xff]  }
 0x8a2   : > { %v7044_v19 = vpop.f32.mrf.mxu1 }
 0x8a3   : > { %v4496_v59 = vadd.f32 %v7044_v19, %v8827_v42 }
 0x8a4   : > { %v4487_v17 = vpop.f32.mrf.mxu1 }
 0x8a5   : > { %v4488_v22 = vadd.f32 %v8827_v42, %v4487_v17  ;;  %v4616_v2 = vmax.f32 %v4496_v59, 0.0 }
 0x8a6   : > { %v7045_v52 = vpop.f32.mrf.mxu1 }
 0x8a7   : > { %v4614_v57 = vmax.f32 %v4488_v22, 0.0  ;;  %v4499_v26 = vadd.f32 %v7045_v52, %v8827_v42  ;;  %v7432_v52 = vld [vmem:[%s9473_s23 + $0x8] ss:$16 sps:$4 sm:$0xff]  }
 0x8a8   : > { %v4490_v14 = vpop.f32.mrf.mxu1 }
 0x8a9   : > { %v4491_v62 = vadd.f32 %v8827_v42, %v4490_v14  ;;  %v4617_v61 = vmax.f32 %v4499_v26, 0.0  ;;  %v7440_v14 = vld [vmem:[%s9473_s23 + $0x1ec] ss:$16 sps:$4 sm:$0xff]  }
 0x8aa   : > { %v7449_v26 = vld [vmem:[%s9473_s23 + $0x1cc] ss:$16 sps:$4 sm:$0xff]  }
 0x8ab   : > { %v4615_v58 = vmax.f32 %v4491_v62, 0.0  ;;  %v4647_v33 = vpack.c.bf16 %v4617_v61, %v4616_v2  ;;  %v7479_v62 = vld [vmem:[%s9473_s23 + $0x1c4] ss:$16 sps:$4 sm:$0xff]   ;;  %v7480_v61 = vld [vmem:[%s9473_s23 + $0x1a0] ss:$16 sps:$4 sm:$0xff]  }
 0x8ac   : > { %5483 = vmatprep.subr.bf16.mxu1 %v7479_v62  ;;  %v7456_v2 = vld [vmem:[%s9473_s23 + $0x1a8] ss:$16 sps:$4 sm:$0xff]  }
 0x8ad   : > { %v4646_v23 = vpack.c.bf16 %v4615_v58, %v4614_v57  ;;  %v7438_v57 = vld [vmem:[%s9473_s23 + $0x1e8] ss:$16 sps:$4 sm:$0xff]  }
 0x8af   : > { %4803 = vmatmul.mubr.bf16.vlgmr.msra.gmra.mxu0 %v4646_v23  ;;  %v7477_v23 = vld [vmem:[%s9473_s23 + $0x1c0] ss:$16 sps:$4 sm:$0xff]  }
 0x8b0   : > { %4812 = vmatprep.mubr.bf16.mxu0 %v7515_v32  ;;  %5659 = vmatpush1.bf16.msra.mxu0 %v7411_v63 }
 0x8b1   : > { %5660 = vmatprep.subr.bf16.mxu0 %v7416_v28  ;;  %v7482_v28 = vld [vmem:[%s9473_s23 + $0x1a4] ss:$16 sps:$4 sm:$0xff]   ;;  %5484 = vmatpush2.bf16.msra.mxu1 %v7477_v23  ;;  %v7504_v23 = vld [vmem:[%s9473_s23 + $0x100] ss:$16 sps:$4 sm:$0xff]  }
 0x8b2   : > { %v7048_v45 = vpop.f32.mrf.mxu1  ;;  %5485 = vmatprep.subr.bf16.mxu1 %v7482_v28 }
 0x8b3   : > { %v4512_v43 = vadd.f32 %v7048_v45, %v8827_v42 }
 0x8b4   : > { %v4503_v3 = vpop.f32.mrf.mxu1  ;;  %5661 = vmatpush1.bf16.msra.mxu0 %v7414_v60  ;;  %v7458_v60 = vld [vmem:[%s9473_s23 + $0x1ac] ss:$16 sps:$4 sm:$0xff]  }
 0x8b5   : > { %5662 = vmatprep.subr.bf16.mxu0 %v7419_v47  ;;  %v4504_v37 = vadd.f32 %v8827_v42, %v4503_v3  ;;  %v4620_v20 = vmax.f32 %v4512_v43, 0.0  ;;  %5486 = vmatpush2.bf16.msra.mxu1 %v7480_v61 }
 0x8b6   : > { %v7049_v27 = vpop.f32.mrf.mxu1  ;;  %5487 = vmatprep.subr.bf16.mxu1 %v7488_v38 }
 0x8b7   : > { %4813 = vmatmul.mubr.bf16.gmra.mxu0 %v4647_v33  ;;  %v4618_v13 = vmax.f32 %v4504_v37, 0.0  ;;  %v4515_v11 = vadd.f32 %v7049_v27, %v8827_v42  ;;  %v7486_v33 = vld [vmem:[%s9473_s23 + $0x180] ss:$16 sps:$4 sm:$0xff]   ;;  %v7465_v37 = vld [vmem:[%s9473_s23 + $0x188] ss:$16 sps:$4 sm:$0xff]  }
 0x8b8   : > { %v4506_v6 = vpop.f32.mrf.mxu1  ;;  %4822 = vmatprep.mubr.bf16.mxu0 %v7515_v32  ;;  %5663 = vmatpush1.bf16.msra.mxu0 %v7417_v53  ;;  %v7467_v53 = vld [vmem:[%s9473_s23 + $0x18c] ss:$16 sps:$4 sm:$0xff]  }
 0x8b9   : > { %v4507_v40 = vadd.f32 %v8827_v42, %v4506_v6  ;;  %5664 = vmatprep.subr.bf16.mxu0 %v7422_v4  ;;  %v4621_v16 = vmax.f32 %v4515_v11, 0.0  ;;  %5488 = vmatpush2.bf16.msra.mxu1 %v7486_v33 }
 0x8ba   : > { %5489 = vmatprep.subr.bf16.mxu1 %v7491_v34 }
 0x8bb   : > { %v4619_v24 = vmax.f32 %v4507_v40, 0.0  ;;  %v4649_v54 = vpack.c.bf16 %v4621_v16, %v4620_v20  ;;  %v7489_v40 = vld [vmem:[%s9473_s23 + $0x160] ss:$16 sps:$4 sm:$0xff]   ;;  %v7492_v16 = vld [vmem:[%s9473_s23 + $0x128] ss:$16 sps:$4 sm:$0xff]  }
 0x8bc   : > { %5665 = vmatpush1.bf16.msra.mxu0 %v7420_v39  ;;  %v7476_v39 = vld [vmem:[%s9473_s23 + $0x16c] ss:$16 sps:$4 sm:$0xff]  }
 0x8bd   : > { %v4648_v36 = vpack.c.bf16 %v4619_v24, %v4618_v13  ;;  %5666 = vmatprep.subr.bf16.mxu0 %v7425_v8  ;;  %5490 = vmatpush2.bf16.msra.mxu1 %v7489_v40 }
 0x8bf   : > { %4823 = vmatmul.mubr.bf16.gmra.mxu0 %v4648_v36  ;;  %v7483_v36 = vld [vmem:[%s9473_s23 + $0x148] ss:$16 sps:$4 sm:$0xff]  }
 0x8c0   : > { %4832 = vmatprep.mubr.bf16.mxu0 %v7515_v32  ;;  %5667 = vmatpush1.bf16.msra.mxu0 %v7423_v50  ;;  %v7485_v50 = vld [vmem:[%s9473_s23 + $0x14c] ss:$16 sps:$4 sm:$0xff]  }
 0x8c1   : > { %5668 = vmatprep.subr.bf16.mxu0 %v7428_v9 }
 0x8c2   : > { %v7052_v48 = vpop.f32.mrf.mxu1 }
 0x8c3   : > { %v4528_v30 = vadd.f32 %v7052_v48, %v8827_v42 }
 0x8c4   : > { %v4519_v35 = vpop.f32.mrf.mxu1  ;;  %5669 = vmatpush1.bf16.msra.mxu0 %v7426_v29 }
 0x8c5   : > { %5670 = vmatprep.subr.bf16.mxu0 %v7431_v49  ;;  %v4520_v19 = vadd.f32 %v8827_v42, %v4519_v35  ;;  %v4624_v45 = vmax.f32 %v4528_v30, 0.0 }
 0x8c6   : > { %v7053_v44 = vpop.f32.mrf.mxu1 }
 0x8c7   : > { %4833 = vmatmul.mubr.bf16.gmra.mxu0 %v4649_v54  ;;  %v4622_v25 = vmax.f32 %v4520_v19, 0.0  ;;  %v4531_v58 = vadd.f32 %v7053_v44, %v8827_v42  ;;  %v7497_v44 = vld [vmem:[%s9473_s23 + $0x144] ss:$16 sps:$4 sm:$0xff]  }
 0x8c8   : > { %v4522_v17 = vpop.f32.mrf.mxu1  ;;  %4842 = vmatprep.mubr.bf16.mxu0 %v7515_v32  ;;  %5671 = vmatpush1.bf16.msra.mxu0 %v7429_v18 }
 0x8c9   : > { %v4523_v22 = vadd.f32 %v8827_v42, %v4522_v17  ;;  %5672 = vmatprep.subr.bf16.mxu0 %v7434_v15  ;;  %v4625_v59 = vmax.f32 %v4531_v58, 0.0  ;;  %5491 = vmatprep.subr.bf16.mxu1 %v7497_v44  ;;  %v7506_v58 = vld [vmem:[%s9473_s23 + $0x104] ss:$16 sps:$4 sm:$0xff]  }
 0x8ca   : > { %5492 = vmatpush2.bf16.msra.mxu1 %v7495_v55 }
 0x8cb   : > { %v4623_v51 = vmax.f32 %v4523_v22, 0.0  ;;  %v4651_v3 = vpack.c.bf16 %v4625_v59, %v4624_v45  ;;  %v7500_v22 = vld [vmem:[%s9473_s23 + $0x124] ss:$16 sps:$4 sm:$0xff]  }
 0x8cc   : > { %5673 = vmatpush1.bf16.msra.mxu0 %v7432_v52  ;;  %5493 = vmatprep.subr.bf16.mxu1 %v7500_v22 }
 0x8cd   : > { %v4650_v63 = vpack.c.bf16 %v4623_v51, %v4622_v25  ;;  %5674 = vmatprep.subr.bf16.mxu0 %v7440_v14 }
 0x8ce   : > { %5494 = vmatpush2.bf16.msra.mxu1 %v7498_v5 }
 0x8cf   : > { %4843 = vmatmul.mubr.bf16.gmra.mxu0 %v4650_v63  ;;  %5495 = vmatprep.subr.bf16.mxu1 %v7506_v58 }
 0x8d0   : > { %4852 = vmatprep.mubr.bf16.mxu0 %v7515_v32  ;;  %5675 = vmatpush2.bf16.msra.mxu0 %v7438_v57  ;;  %v7503_v57 = vld [vmem:[%s9473_s23 + $0x10c] ss:$16 sps:$4 sm:$0xff]  }
 0x8d1   : > { %5676 = vmatprep.subr.bf16.mxu0 %v7449_v26  ;;  %v7501_v26 = vld [vmem:[%s9473_s23 + $0x108] ss:$16 sps:$4 sm:$0xff]  }
 0x8d2   : > { %v7056_v47 = vpop.f32.mrf.mxu1  ;;  %5496 = vmatpush2.bf16.msra.mxu1 %v7504_v23 }
 0x8d3   : > { %v4544_v11 = vadd.f32 %v7056_v47, %v8827_v42 }
 0x8d4   : > { %v4535_v0 = vpop.f32.mrf.mxu1  ;;  %5677 = vmatpush2.bf16.msra.mxu0 %v7447_v31 }
 0x8d5   : > { %5678 = vmatprep.subr.bf16.mxu0 %v7458_v60  ;;  %v4536_v27 = vadd.f32 %v8827_v42, %v4535_v0  ;;  %v4628_v43 = vmax.f32 %v4544_v11, 0.0 }
 0x8d6   : > { %v7057_v4 = vpop.f32.mrf.mxu1 }
 0x8d7   : > { %4853 = vmatmul.mubr.bf16.gmra.mxu0 %v4651_v3  ;;  %v4626_v8 = vmax.f32 %v4536_v27, 0.0  ;;  %v4547_v13 = vadd.f32 %v7057_v4, %v8827_v42 }
 0x8d8   : > { %v4538_v41 = vpop.f32.mrf.mxu1  ;;  %4862 = vmatprep.mubr.bf16.mxu0 %v7515_v32  ;;  %5679 = vmatpush2.bf16.msra.mxu0 %v7456_v2 }
 0x8d9   : > { %v4539_v6 = vadd.f32 %v8827_v42, %v4538_v41  ;;  %5680 = vmatprep.subr.bf16.mxu0 %v7467_v53  ;;  %v4629_v9 = vmax.f32 %v4547_v13, 0.0 }
 0x8db   : > { %v4627_v10 = vmax.f32 %v4539_v6, 0.0  ;;  %v4653_v49 = vpack.c.bf16 %v4629_v9, %v4628_v43 }
 0x8dc   : > { %5681 = vmatpush2.bf16.msra.mxu0 %v7465_v37 }
 0x8dd   : > { %v4652_v24 = vpack.c.bf16 %v4627_v10, %v4626_v8  ;;  %5682 = vmatprep.subr.bf16.mxu0 %v7476_v39 }
 0x8df   : > { %4863 = vmatmul.mubr.bf16.gmra.mxu0 %v4652_v24 }
 0x8e0   : > { %4872 = vmatprep.mubr.bf16.mxu0 %v7515_v32  ;;  %5683 = vmatpush2.bf16.msra.mxu0 %v7474_v12 }
 0x8e1   : > { %5684 = vmatprep.subr.bf16.mxu0 %v7485_v50 }
 0x8e2   : > { %v7060_v21 = vpop.f32.mrf.mxu1 }
 0x8e3   : > { %v4560_v1 = vadd.f32 %v7060_v21, %v8827_v42 }
 0x8e4   : > { %v4551_v29 = vpop.f32.mrf.mxu1  ;;  %5685 = vmatpush2.bf16.msra.mxu0 %v7483_v36 }
 0x8e5   : > { %5686 = vmatprep.subr.bf16.mxu0 %v7494_v7  ;;  %v4552_v48 = vadd.f32 %v8827_v42, %v4551_v29  ;;  %v4632_v52 = vmax.f32 %v4560_v1, 0.0 }
 0x8e6   : > { %v7061_v46 = vpop.f32.mrf.mxu1 }
 0x8e7   : > { %4873 = vmatmul.mubr.bf16.gmra.mxu0 %v4653_v49  ;;  %v4630_v35 = vmax.f32 %v4552_v48, 0.0  ;;  %v4563_v54 = vadd.f32 %v7061_v46, %v8827_v42  ;;  %v4678_v46 = vld [vmem:[%s9472_s22] sm:$0x3] }
 0x8e8   : > { %v4554_v56 = vpop.f32.mrf.mxu1  ;;  %4882 = vmatprep.mubr.bf16.mxu0 %v7515_v32  ;;  %5687 = vmatpush2.bf16.msra.mxu0 %v7492_v16 }
 0x8e9   : > { %v4555_v20 = vadd.f32 %v8827_v42, %v4554_v56  ;;  %v4633_v19 = vmax.f32 %v4563_v54, 0.0  ;;  %5688 = vmatprep.subr.bf16.mxu0 %v7503_v57  ;;  %v9525_v56 = vld [vmem:[#allocation4_spill] sm:$0xff] }
 0x8eb   : > { %v4631_v18 = vmax.f32 %v4555_v20, 0.0  ;;  %v4655_v62 = vpack.c.bf16 %v4633_v19, %v4632_v52  ;;  %v9069_v20 = vrot.slane %v4678_v46, %v9525_v56 }
 0x8ec   : > { %5689 = vmatpush2.bf16.msra.mxu0 %v7501_v26 }
 0x8ed   : > { %v4654_v15 = vpack.c.bf16 %v4631_v18, %v4630_v35  ;;  %v9526_v35 = vld [vmem:[#allocation3_spill] sm:$0xff] }
 0x8ee   : > { %v9072_v18 = vrot.slane %v4678_v46, %v9526_v35 }
 0x8ef   : > { %4883 = vmatmul.mubr.bf16.gmra.mxu0 %v4654_v15 }
 0x8f0   : > { %4892 = vmatprep.mubr.bf16.mxu0 %v7515_v32 }
 0x8f2   : > { %v7064_v17 = vpop.f32.mrf.mxu1 }
 0x8f3   : > { %v4576_v61 = vadd.f32 %v7064_v17, %v8827_v42 }
 0x8f4   : > { %v4567_v14 = vpop.f32.mrf.mxu1 }
 0x8f5   : > { %v4568_v51 = vadd.f32 %v8827_v42, %v4567_v14  ;;  %v4636_v45 = vmax.f32 %v4576_v61, 0.0 }
 0x8f6   : > { %v7065_v25 = vpop.f32.mrf.mxu1 }
 0x8f7   : > { %4893 = vmatmul.mubr.bf16.gmra.mxu0 %v4655_v62  ;;  %v4634_v30 = vmax.f32 %v4568_v51, 0.0  ;;  %v4579_v59 = vadd.f32 %v7065_v25, %v8827_v42 }
 0x8f8   : > { %v4570_v63 = vpop.f32.mrf.mxu1  ;;  %4902 = vmatprep.mubr.bf16.mxu0 %v7515_v32 }
 0x8f9   : > { %v4571_v28 = vadd.f32 %v8827_v42, %v4570_v63  ;;  %v4637_v47 = vmax.f32 %v4579_v59, 0.0 }
 0x8fb   : > { %v4635_v31 = vmax.f32 %v4571_v28, 0.0  ;;  %v4657_v2 = vpack.c.bf16 %v4637_v47, %v4636_v45 }
 0x8fd   : > { %v4656_v60 = vpack.c.bf16 %v4635_v31, %v4634_v30 }
 0x8ff   : > { %4903 = vmatmul.mubr.bf16.gmra.mxu0 %v4656_v60 }
 0x900   : > { %4912 = vmatprep.mubr.bf16.mxu0 %v7515_v32 }
 0x902   : > { %v7068_v38 = vpop.f32.mrf.mxu1 }
 0x903   : > { %v4592_v6 = vadd.f32 %v7068_v38, %v8827_v42 }
 0x904   : > { %v4583_v0 = vpop.f32.mrf.mxu1 }
 0x905   : > { %v4584_v53 = vadd.f32 %v8827_v42, %v4583_v0  ;;  %v4640_v8 = vmax.f32 %v4592_v6, 0.0 }
 0x906   : > { %v7069_v3 = vpop.f32.mrf.mxu1 }
 0x907   : > { %4913 = vmatmul.mubr.bf16.gmra.mxu0 %v4657_v2  ;;  %v4638_v34 = vmax.f32 %v4584_v53, 0.0  ;;  %v4595_v41 = vadd.f32 %v7069_v3, %v8827_v42 }
 0x908   : > { %v4586_v33 = vpop.f32.mrf.mxu1  ;;  %4922 = vmatprep.mubr.bf16.mxu0 %v7515_v32 }
 0x909   : > { %v4587_v4 = vadd.f32 %v8827_v42, %v4586_v33  ;;  %v4641_v39 = vmax.f32 %v4595_v41, 0.0 }
 0x90b   : > { %v4639_v27 = vmax.f32 %v4587_v4, 0.0  ;;  %v4659_v12 = vpack.c.bf16 %v4641_v39, %v4640_v8 }
 0x90d   : > { %v4658_v37 = vpack.c.bf16 %v4639_v27, %v4638_v34 }
 0x90f   : > { %4923 = vmatmul.mubr.bf16.gmra.mxu0 %v4658_v37 }
 0x910   : > { %4932 = vmatprep.mubr.bf16.mxu0 %v7515_v32 }
 0x912   : > { %v7072_v40 = vpop.f32.mrf.mxu1 }
 0x913   : > { %v4608_v43 = vadd.f32 %v7072_v40, %v8827_v42 }
 0x914   : > { %v4599_v10 = vpop.f32.mrf.mxu1 }
 0x915   : > { %v4600_v24 = vadd.f32 %v8827_v42, %v4599_v10  ;;  %v4644_v16 = vmax.f32 %v4608_v43, 0.0 }
 0x916   : > { %v7073_v13 = vpop.f32.mrf.mxu1 }
 0x917   : > { %4933 = vmatmul.mubr.bf16.gmra.mxu0 %v4659_v12  ;;  %v4642_v36 = vmax.f32 %v4600_v24, 0.0  ;;  %v4611_v7 = vadd.f32 %v7073_v13, %v8827_v42 }
 0x918   : > { %v4602_v50 = vpop.f32.mrf.mxu1  ;;  %4942 = vmatprep.mubr.bf16.mxu0 %v7515_v32 }
 0x919   : > { %v4603_v11 = vadd.f32 %v8827_v42, %v4602_v50  ;;  %v4645_v29 = vmax.f32 %v4611_v7, 0.0 }
 0x91b   : > { %v4643_v9 = vmax.f32 %v4603_v11, 0.0  ;;  %v4661_v49 = vpack.c.bf16 %v4645_v29, %v4644_v16 }
 0x91d   : > { %v4660_v21 = vpack.c.bf16 %v4643_v9, %v4642_v36 }
 0x91f   : > { %4943 = vmatmul.mubr.bf16.gmra.mxu0 %v4660_v21 }
 0x920   : > { %4952 = vmatprep.mubr.bf16.mxu0 %v7515_v32 }
 0x927   : > { %4953 = vmatmul.mubr.bf16.gmra.mxu0 %v4661_v49 }
 0x96f   : > { %v4804_v48 = vpop.f32.mrf.mxu0 }
 0x970   : > { %v4805_v1 = vadd.f32 %v4804_v48, %v9072_v18 }
 0x971   : > { %v4806_v54 = vpop.f32.mrf.mxu0 }
 0x972   : > { %v4807_v15 = vadd.f32 %v4806_v54, %v9069_v20  ;;  %v4963_v14 = vmax.f32 %v4805_v1, 0.0 }
 0x973   : > { %v4808_v42 = vpop.f32.mrf.mxu0 }
 0x974   : > { %v4809_v32 = vadd.f32 %v4808_v42, %v9072_v18  ;;  %v4964_v52 = vmax.f32 %v4807_v15, 0.0 }
 0x975   : > { %v4810_v44 = vpop.f32.mrf.mxu0 }
 0x976   : > { %v4811_v55 = vadd.f32 %v4810_v44, %v9069_v20  ;;  %v4965_v19 = vmax.f32 %v4809_v32, 0.0 }
 0x977   : > { %v4814_v17 = vpop.f32.mrf.mxu0 }
 0x978   : > { %v4966_v22 = vmax.f32 %v4811_v55, 0.0  ;;  %v5027_v25 = vpack.c.bf16 %v4965_v19, %v4963_v14  ;;  %v4815_v63 = vadd.f32 %v4814_v17, %v9072_v18 }
 0x979   : > { %v4816_v5 = vpop.f32.mrf.mxu0 }
 0x97a   : > { %v5028_v62 = vpack.c.bf16 %v4966_v22, %v4964_v52  ;;  %v4817_v57 = vadd.f32 %v4816_v5, %v9069_v20  ;;  %v4967_v60 = vmax.f32 %v4815_v63, 0.0 }
 0x97b   : > { %v4818_v51 = vpop.f32.mrf.mxu0 }
 0x97c   : > { %v4819_v58 = vadd.f32 %v4818_v51, %v9072_v18  ;;  %5497 = vmatprep.mubr.bf16.mxu1 %v5028_v62  ;;  %5690 = vmatprep.mubr.bf16.mxu0 %v5028_v62  ;;  %v4968_v31 = vmax.f32 %v4817_v57, 0.0 }
 0x97d   : > { %v4820_v26 = vpop.f32.mrf.mxu0  ;;  %5498 = vmatmul.mubr.bf16.vlgmr.msra.gmra.mxu1 %v5027_v25  ;;  %5691 = vmatmul.mubr.bf16.vlgmr.msra.gmra.mxu0 %v5027_v25 }
 0x97e   : > { %v4821_v23 = vadd.f32 %v4820_v26, %v9069_v20  ;;  %v4969_v28 = vmax.f32 %v4819_v58, 0.0 }
 0x97f   : > { %v4824_v30 = vpop.f32.mrf.mxu0 }
 0x980   : > { %v4970_v59 = vmax.f32 %v4821_v23, 0.0  ;;  %v5029_v38 = vpack.c.bf16 %v4969_v28, %v4967_v60  ;;  %v4825_v3 = vadd.f32 %v4824_v30, %v9072_v18 }
 0x981   : > { %v4826_v61 = vpop.f32.mrf.mxu0 }
 0x982   : > { %v5030_v47 = vpack.c.bf16 %v4970_v59, %v4968_v31  ;;  %v4827_v0 = vadd.f32 %v4826_v61, %v9069_v20  ;;  %v4971_v37 = vmax.f32 %v4825_v3, 0.0 }
 0x983   : > { %v4828_v45 = vpop.f32.mrf.mxu0 }
 0x984   : > { %v4829_v2 = vadd.f32 %v4828_v45, %v9072_v18  ;;  %5507 = vmatprep.mubr.bf16.mxu1 %v5030_v47  ;;  %5700 = vmatprep.mubr.bf16.mxu0 %v5030_v47  ;;  %v4972_v27 = vmax.f32 %v4827_v0, 0.0 }
 0x985   : > { %v4830_v53 = vpop.f32.mrf.mxu0  ;;  %5508 = vmatmul.mubr.bf16.gmra.mxu1 %v5029_v38  ;;  %5701 = vmatmul.mubr.bf16.gmra.mxu0 %v5029_v38 }
 0x986   : > { %v4831_v33 = vadd.f32 %v4830_v53, %v9069_v20  ;;  %v4973_v4 = vmax.f32 %v4829_v2, 0.0 }
 0x987   : > { %v4834_v34 = vpop.f32.mrf.mxu0 }
 0x988   : > { %v4974_v41 = vmax.f32 %v4831_v33, 0.0  ;;  %v5031_v40 = vpack.c.bf16 %v4973_v4, %v4971_v37  ;;  %v4835_v13 = vadd.f32 %v4834_v34, %v9072_v18 }
 0x989   : > { %v4836_v6 = vpop.f32.mrf.mxu0 }
 0x98a   : > { %v5032_v39 = vpack.c.bf16 %v4974_v41, %v4972_v27  ;;  %v4837_v10 = vadd.f32 %v4836_v6, %v9069_v20  ;;  %v4975_v21 = vmax.f32 %v4835_v13, 0.0 }
 0x98b   : > { %v4838_v8 = vpop.f32.mrf.mxu0 }
 0x98c   : > { %v4839_v12 = vadd.f32 %v4838_v8, %v9072_v18  ;;  %5517 = vmatprep.mubr.bf16.mxu1 %v5032_v39  ;;  %5710 = vmatprep.mubr.bf16.mxu0 %v5032_v39  ;;  %v4976_v9 = vmax.f32 %v4837_v10, 0.0 }
 0x98d   : > { %v4840_v24 = vpop.f32.mrf.mxu0  ;;  %5518 = vmatmul.mubr.bf16.gmra.mxu1 %v5031_v40  ;;  %5711 = vmatmul.mubr.bf16.gmra.mxu0 %v5031_v40 }
 0x98e   : > { %v4841_v50 = vadd.f32 %v4840_v24, %v9069_v20  ;;  %v4977_v11 = vmax.f32 %v4839_v12, 0.0 }
 0x98f   : > { %v4844_v36 = vpop.f32.mrf.mxu0 }
 0x990   : > { %v4978_v7 = vmax.f32 %v4841_v50, 0.0  ;;  %v5033_v16 = vpack.c.bf16 %v4977_v11, %v4975_v21  ;;  %v4845_v54 = vadd.f32 %v4844_v36, %v9072_v18 }
 0x991   : > { %v4846_v43 = vpop.f32.mrf.mxu0 }
 0x992   : > { %v5034_v29 = vpack.c.bf16 %v4978_v7, %v4976_v9  ;;  %v4847_v46 = vadd.f32 %v4846_v43, %v9069_v20  ;;  %v4979_v19 = vmax.f32 %v4845_v54, 0.0 }
 0x993   : > { %v4848_v49 = vpop.f32.mrf.mxu0 }
 0x994   : > { %v4849_v48 = vadd.f32 %v4848_v49, %v9072_v18  ;;  %5527 = vmatprep.mubr.bf16.mxu1 %v5034_v29  ;;  %5720 = vmatprep.mubr.bf16.mxu0 %v5034_v29  ;;  %v4980_v44 = vmax.f32 %v4847_v46, 0.0 }
 0x995   : > { %v4850_v42 = vpop.f32.mrf.mxu0  ;;  %5528 = vmatmul.mubr.bf16.gmra.mxu1 %v5033_v16  ;;  %5721 = vmatmul.mubr.bf16.gmra.mxu0 %v5033_v16 }
 0x996   : > { %v4851_v15 = vadd.f32 %v4850_v42, %v9069_v20  ;;  %v4981_v32 = vmax.f32 %v4849_v48, 0.0 }
 0x997   : > { %v4854_v1 = vpop.f32.mrf.mxu0 }
 0x998   : > { %v4982_v55 = vmax.f32 %v4851_v15, 0.0  ;;  %v5035_v22 = vpack.c.bf16 %v4981_v32, %v4979_v19  ;;  %v4855_v25 = vadd.f32 %v4854_v1, %v9072_v18 }
 0x999   : > { %v4856_v17 = vpop.f32.mrf.mxu0 }
 0x99a   : > { %v5036_v52 = vpack.c.bf16 %v4982_v55, %v4980_v44  ;;  %v4857_v5 = vadd.f32 %v4856_v17, %v9069_v20  ;;  %v4983_v28 = vmax.f32 %v4855_v25, 0.0 }
 0x99b   : > { %v4858_v14 = vpop.f32.mrf.mxu0 }
 0x99c   : > { %v4859_v62 = vadd.f32 %v4858_v14, %v9072_v18  ;;  %5537 = vmatprep.mubr.bf16.mxu1 %v5036_v52  ;;  %5730 = vmatprep.mubr.bf16.mxu0 %v5036_v52  ;;  %v4984_v26 = vmax.f32 %v4857_v5, 0.0 }
 0x99d   : > { %v4860_v51 = vpop.f32.mrf.mxu0  ;;  %5538 = vmatmul.mubr.bf16.gmra.mxu1 %v5035_v22  ;;  %5731 = vmatmul.mubr.bf16.gmra.mxu0 %v5035_v22 }
 0x99e   : > { %v4861_v57 = vadd.f32 %v4860_v51, %v9069_v20  ;;  %v4985_v58 = vmax.f32 %v4859_v62, 0.0 }
 0x99f   : > { %v4864_v63 = vpop.f32.mrf.mxu0 }
 0x9a0   : > { %v4986_v23 = vmax.f32 %v4861_v57, 0.0  ;;  %v5037_v59 = vpack.c.bf16 %v4985_v58, %v4983_v28  ;;  %v4865_v38 = vadd.f32 %v4864_v63, %v9072_v18 }
 0x9a1   : > { %v4866_v30 = vpop.f32.mrf.mxu0 }
 0x9a2   : > { %v5038_v31 = vpack.c.bf16 %v4986_v23, %v4984_v26  ;;  %v4867_v61 = vadd.f32 %v4866_v30, %v9069_v20  ;;  %v4987_v4 = vmax.f32 %v4865_v38, 0.0 }
 0x9a3   : > { %v4868_v60 = vpop.f32.mrf.mxu0 }
 0x9a4   : > { %v4869_v47 = vadd.f32 %v4868_v60, %v9072_v18  ;;  %5547 = vmatprep.mubr.bf16.mxu1 %v5038_v31  ;;  %5740 = vmatprep.mubr.bf16.mxu0 %v5038_v31  ;;  %v4988_v53 = vmax.f32 %v4867_v61, 0.0 }
 0x9a5   : > { %v4870_v45 = vpop.f32.mrf.mxu0  ;;  %5548 = vmatmul.mubr.bf16.gmra.mxu1 %v5037_v59  ;;  %5741 = vmatmul.mubr.bf16.gmra.mxu0 %v5037_v59 }
 0x9a6   : > { %v4871_v0 = vadd.f32 %v4870_v45, %v9069_v20  ;;  %v4989_v2 = vmax.f32 %v4869_v47, 0.0 }
 0x9a7   : > { %v4874_v3 = vpop.f32.mrf.mxu0 }
 0x9a8   : > { %v4990_v33 = vmax.f32 %v4871_v0, 0.0  ;;  %v5039_v41 = vpack.c.bf16 %v4989_v2, %v4987_v4  ;;  %v4875_v40 = vadd.f32 %v4874_v3, %v9072_v18 }
 0x9a9   : > { %v4876_v34 = vpop.f32.mrf.mxu0 }
 0x9aa   : > { %v5040_v27 = vpack.c.bf16 %v4990_v33, %v4988_v53  ;;  %v4877_v6 = vadd.f32 %v4876_v34, %v9069_v20  ;;  %v4991_v11 = vmax.f32 %v4875_v40, 0.0 }
 0x9ab   : > { %v4878_v37 = vpop.f32.mrf.mxu0 }
 0x9ac   : > { %v4879_v39 = vadd.f32 %v4878_v37, %v9072_v18  ;;  %5557 = vmatprep.mubr.bf16.mxu1 %v5040_v27  ;;  %5750 = vmatprep.mubr.bf16.mxu0 %v5040_v27  ;;  %v4992_v24 = vmax.f32 %v4877_v6, 0.0 }
 0x9ad   : > { %v4880_v8 = vpop.f32.mrf.mxu0  ;;  %5558 = vmatmul.mubr.bf16.gmra.mxu1 %v5039_v41  ;;  %5751 = vmatmul.mubr.bf16.gmra.mxu0 %v5039_v41 }
 0x9ae   : > { %v4881_v10 = vadd.f32 %v4880_v8, %v9069_v20  ;;  %v4993_v12 = vmax.f32 %v4879_v39, 0.0 }
 0x9af   : > { %v4884_v13 = vpop.f32.mrf.mxu0 }
 0x9b0   : > { %v4994_v50 = vmax.f32 %v4881_v10, 0.0  ;;  %v5041_v7 = vpack.c.bf16 %v4993_v12, %v4991_v11  ;;  %v4885_v16 = vadd.f32 %v4884_v13, %v9072_v18 }
 0x9b1   : > { %v4886_v36 = vpop.f32.mrf.mxu0 }
 0x9b2   : > { %v5042_v9 = vpack.c.bf16 %v4994_v50, %v4992_v24  ;;  %v4887_v43 = vadd.f32 %v4886_v36, %v9069_v20  ;;  %v4995_v32 = vmax.f32 %v4885_v16, 0.0 }
 0x9b3   : > { %v4888_v21 = vpop.f32.mrf.mxu0 }
 0x9b4   : > { %v4889_v29 = vadd.f32 %v4888_v21, %v9072_v18  ;;  %5567 = vmatprep.mubr.bf16.mxu1 %v5042_v9  ;;  %5760 = vmatprep.mubr.bf16.mxu0 %v5042_v9  ;;  %v4996_v42 = vmax.f32 %v4887_v43, 0.0 }
 0x9b5   : > { %v4890_v49 = vpop.f32.mrf.mxu0  ;;  %5568 = vmatmul.mubr.bf16.gmra.mxu1 %v5041_v7  ;;  %5761 = vmatmul.mubr.bf16.gmra.mxu0 %v5041_v7 }
 0x9b6   : > { %v4891_v46 = vadd.f32 %v4890_v49, %v9069_v20  ;;  %v4997_v48 = vmax.f32 %v4889_v29, 0.0 }
 0x9b7   : > { %v4894_v54 = vpop.f32.mrf.mxu0 }
 0x9b8   : > { %v4998_v15 = vmax.f32 %v4891_v46, 0.0  ;;  %v5043_v55 = vpack.c.bf16 %v4997_v48, %v4995_v32  ;;  %v4895_v22 = vadd.f32 %v4894_v54, %v9072_v18 }
 0x9b9   : > { %v4896_v1 = vpop.f32.mrf.mxu0 }
 0x9ba   : > { %v5044_v44 = vpack.c.bf16 %v4998_v15, %v4996_v42  ;;  %v4897_v17 = vadd.f32 %v4896_v1, %v9069_v20  ;;  %v4999_v58 = vmax.f32 %v4895_v22, 0.0 }
 0x9bb   : > { %v4898_v19 = vpop.f32.mrf.mxu0 }
 0x9bc   : > { %v4899_v52 = vadd.f32 %v4898_v19, %v9072_v18  ;;  %5577 = vmatprep.mubr.bf16.mxu1 %v5044_v44  ;;  %5770 = vmatprep.mubr.bf16.mxu0 %v5044_v44  ;;  %v5000_v51 = vmax.f32 %v4897_v17, 0.0 }
 0x9bd   : > { %v4900_v14 = vpop.f32.mrf.mxu0  ;;  %5578 = vmatmul.mubr.bf16.gmra.mxu1 %v5043_v55  ;;  %5771 = vmatmul.mubr.bf16.gmra.mxu0 %v5043_v55 }
 0x9be   : > { %v4901_v5 = vadd.f32 %v4900_v14, %v9069_v20  ;;  %v5001_v62 = vmax.f32 %v4899_v52, 0.0 }
 0x9bf   : > { %v4904_v25 = vpop.f32.mrf.mxu0 }
 0x9c0   : > { %v5002_v57 = vmax.f32 %v4901_v5, 0.0  ;;  %v5045_v23 = vpack.c.bf16 %v5001_v62, %v4999_v58  ;;  %v4905_v59 = vadd.f32 %v4904_v25, %v9072_v18 }
 0x9c1   : > { %v4906_v63 = vpop.f32.mrf.mxu0 }
 0x9c2   : > { %v5046_v26 = vpack.c.bf16 %v5002_v57, %v5000_v51  ;;  %v4907_v30 = vadd.f32 %v4906_v63, %v9069_v20  ;;  %v5003_v2 = vmax.f32 %v4905_v59, 0.0 }
 0x9c3   : > { %v4908_v28 = vpop.f32.mrf.mxu0 }
 0x9c4   : > { %v4909_v31 = vadd.f32 %v4908_v28, %v9072_v18  ;;  %5587 = vmatprep.mubr.bf16.mxu1 %v5046_v26  ;;  %5780 = vmatprep.mubr.bf16.mxu0 %v5046_v26  ;;  %v5004_v45 = vmax.f32 %v4907_v30, 0.0 }
 0x9c5   : > { %v4910_v60 = vpop.f32.mrf.mxu0  ;;  %5588 = vmatmul.mubr.bf16.gmra.mxu1 %v5045_v23  ;;  %5781 = vmatmul.mubr.bf16.gmra.mxu0 %v5045_v23 }
 0x9c6   : > { %v4911_v61 = vadd.f32 %v4910_v60, %v9069_v20  ;;  %v5005_v47 = vmax.f32 %v4909_v31, 0.0 }
 0x9c7   : > { %v4914_v38 = vpop.f32.mrf.mxu0 }
 0x9c8   : > { %v5006_v0 = vmax.f32 %v4911_v61, 0.0  ;;  %v5047_v33 = vpack.c.bf16 %v5005_v47, %v5003_v2  ;;  %v4915_v41 = vadd.f32 %v4914_v38, %v9072_v18 }
 0x9c9   : > { %v4916_v3 = vpop.f32.mrf.mxu0 }
 0x9ca   : > { %v5048_v53 = vpack.c.bf16 %v5006_v0, %v5004_v45  ;;  %v4917_v34 = vadd.f32 %v4916_v3, %v9069_v20  ;;  %v5007_v12 = vmax.f32 %v4915_v41, 0.0 }
 0x9cb   : > { %v4918_v4 = vpop.f32.mrf.mxu0 }
 0x9cc   : > { %v4919_v27 = vadd.f32 %v4918_v4, %v9072_v18  ;;  %5597 = vmatprep.mubr.bf16.mxu1 %v5048_v53  ;;  %5790 = vmatprep.mubr.bf16.mxu0 %v5048_v53  ;;  %v5008_v8 = vmax.f32 %v4917_v34, 0.0 }
 0x9cd   : > { %v4920_v37 = vpop.f32.mrf.mxu0  ;;  %5598 = vmatmul.mubr.bf16.gmra.mxu1 %v5047_v33  ;;  %5791 = vmatmul.mubr.bf16.gmra.mxu0 %v5047_v33 }
 0x9ce   : > { %v4921_v6 = vadd.f32 %v4920_v37, %v9069_v20  ;;  %v5009_v39 = vmax.f32 %v4919_v27, 0.0 }
 0x9cf   : > { %v4924_v40 = vpop.f32.mrf.mxu0 }
 0x9d0   : > { %v5010_v10 = vmax.f32 %v4921_v6, 0.0  ;;  %v5049_v50 = vpack.c.bf16 %v5009_v39, %v5007_v12  ;;  %v4925_v7 = vadd.f32 %v4924_v40, %v9072_v18 }
 0x9d1   : > { %v4926_v13 = vpop.f32.mrf.mxu0 }
 0x9d2   : > { %v5050_v24 = vpack.c.bf16 %v5010_v10, %v5008_v8  ;;  %v4927_v36 = vadd.f32 %v4926_v13, %v9069_v20  ;;  %v5011_v48 = vmax.f32 %v4925_v7, 0.0  ;;  %v9527_v8 = vld [vmem:[#allocation2_spill] sm:$0xff] }
 0x9d3   : > { %v4928_v11 = vpop.f32.mrf.mxu0  ;;  %v5135_v10 = vsub.s32 2, %v9527_v8  ;;  %v5139_v12 = vsub.s32 3, %v9527_v8 }
 0x9d4   : > { %v4929_v9 = vadd.f32 %v4928_v11, %v9072_v18  ;;  %5607 = vmatprep.mubr.bf16.mxu1 %v5050_v24  ;;  %5800 = vmatprep.mubr.bf16.mxu0 %v5050_v24  ;;  %v5012_v49 = vmax.f32 %v4927_v36, 0.0 }
 0x9d5   : > { %v4930_v21 = vpop.f32.mrf.mxu0  ;;  %5608 = vmatmul.mubr.bf16.gmra.mxu1 %v5049_v50  ;;  %5801 = vmatmul.mubr.bf16.gmra.mxu0 %v5049_v50 }
 0x9d6   : > { %v4931_v43 = vadd.f32 %v4930_v21, %v9069_v20  ;;  %v5013_v29 = vmax.f32 %v4929_v9, 0.0 }
 0x9d7   : > { %v4934_v16 = vpop.f32.mrf.mxu0 }
 0x9d8   : > { %v5014_v46 = vmax.f32 %v4931_v43, 0.0  ;;  %v5051_v15 = vpack.c.bf16 %v5013_v29, %v5011_v48  ;;  %v4935_v55 = vadd.f32 %v4934_v16, %v9072_v18 }
 0x9d9   : > { %v4936_v54 = vpop.f32.mrf.mxu0 }
 0x9da   : > { %v5052_v42 = vpack.c.bf16 %v5014_v46, %v5012_v49  ;;  %v4937_v1 = vadd.f32 %v4936_v54, %v9069_v20  ;;  %v5015_v62 = vmax.f32 %v4935_v55, 0.0 }
 0x9db   : > { %v4938_v32 = vpop.f32.mrf.mxu0 }
 0x9dc   : > { %v4939_v44 = vadd.f32 %v4938_v32, %v9072_v18  ;;  %5617 = vmatprep.mubr.bf16.mxu1 %v5052_v42  ;;  %5810 = vmatprep.mubr.bf16.mxu0 %v5052_v42  ;;  %v5016_v14 = vmax.f32 %v4937_v1, 0.0 }
 0x9dd   : > { %v4940_v19 = vpop.f32.mrf.mxu0  ;;  %5618 = vmatmul.mubr.bf16.gmra.mxu1 %v5051_v15  ;;  %5811 = vmatmul.mubr.bf16.gmra.mxu0 %v5051_v15 }
 0x9de   : > { %v4941_v17 = vadd.f32 %v4940_v19, %v9069_v20  ;;  %v5017_v52 = vmax.f32 %v4939_v44, 0.0 }
 0x9df   : > { %v4944_v22 = vpop.f32.mrf.mxu0 }
 0x9e0   : > { %v5018_v5 = vmax.f32 %v4941_v17, 0.0  ;;  %v5053_v57 = vpack.c.bf16 %v5017_v52, %v5015_v62  ;;  %v4945_v23 = vadd.f32 %v4944_v22, %v9072_v18 }
 0x9e1   : > { %v4946_v25 = vpop.f32.mrf.mxu0 }
 0x9e2   : > { %v5054_v51 = vpack.c.bf16 %v5018_v5, %v5016_v14  ;;  %v4947_v63 = vadd.f32 %v4946_v25, %v9069_v20  ;;  %v5019_v47 = vmax.f32 %v4945_v23, 0.0 }
 0x9e3   : > { %v4948_v58 = vpop.f32.mrf.mxu0 }
 0x9e4   : > { %v4949_v26 = vadd.f32 %v4948_v58, %v9072_v18  ;;  %5627 = vmatprep.mubr.bf16.mxu1 %v5054_v51  ;;  %5820 = vmatprep.mubr.bf16.mxu0 %v5054_v51  ;;  %v5020_v60 = vmax.f32 %v4947_v63, 0.0 }
 0x9e5   : > { %v4950_v28 = vpop.f32.mrf.mxu0  ;;  %5628 = vmatmul.mubr.bf16.gmra.mxu1 %v5053_v57  ;;  %5821 = vmatmul.mubr.bf16.gmra.mxu0 %v5053_v57 }
 0x9e6   : > { %v4951_v30 = vadd.f32 %v4950_v28, %v9069_v20  ;;  %v5021_v31 = vmax.f32 %v4949_v26, 0.0 }
 0x9e7   : > { %v4954_v59 = vpop.f32.mrf.mxu0 }
 0x9e8   : > { %v5022_v61 = vmax.f32 %v4951_v30, 0.0  ;;  %v5055_v0 = vpack.c.bf16 %v5021_v31, %v5019_v47  ;;  %v4955_v33 = vadd.f32 %v4954_v59, %v9072_v18 }
 0x9e9   : > { %v4956_v38 = vpop.f32.mrf.mxu0 }
 0x9ea   : > { %v5056_v45 = vpack.c.bf16 %v5022_v61, %v5020_v60  ;;  %v4957_v3 = vadd.f32 %v4956_v38, %v9069_v20  ;;  %v5023_v6 = vmax.f32 %v4955_v33, 0.0 }
 0x9eb   : > { %v4958_v2 = vpop.f32.mrf.mxu0 }
 0x9ec   : > { %v4959_v53 = vadd.f32 %v4958_v2, %v9072_v18  ;;  %5637 = vmatprep.mubr.bf16.mxu1 %v5056_v45  ;;  %5830 = vmatprep.mubr.bf16.mxu0 %v5056_v45  ;;  %v5024_v41 = vmax.f32 %v4957_v3, 0.0  ;;  %v5123_v18 = vld [vmem:[%s9474_s24] sm:$0xf] }
 0x9ed   : > { %v4960_v4 = vpop.f32.mrf.mxu0  ;;  %5638 = vmatmul.mubr.bf16.gmra.mxu1 %v5055_v0  ;;  %5831 = vmatmul.mubr.bf16.gmra.mxu0 %v5055_v0  ;;  %v9147_v13 = vrot.slane %v5123_v18, %v5135_v10  ;;  %v9150_v24 = vrot.slane %v5123_v18, %v9525_v56  ;;  %v9152_v50 = vrot.slane %v5123_v18, %v5139_v12 }
 0x9ee   : > { %v4961_v34 = vadd.f32 %v4960_v4, %v9069_v20  ;;  %v5025_v27 = vmax.f32 %v4959_v53, 0.0  ;;  %v9145_v20 = vrot.slane %v5123_v18, %v9526_v35 }
 0x9f0   : > { %v5026_v37 = vmax.f32 %v4961_v34, 0.0  ;;  %v5057_v40 = vpack.c.bf16 %v5025_v27, %v5023_v6 }
 0x9f2   : > { %v5058_v39 = vpack.c.bf16 %v5026_v37, %v5024_v41 }
 0x9f4   : > { %5647 = vmatprep.mubr.bf16.mxu1 %v5058_v39  ;;  %5840 = vmatprep.mubr.bf16.mxu0 %v5058_v39 }
 0x9f5   : > { %5648 = vmatmul.mubr.bf16.gmra.mxu1 %v5057_v40  ;;  %5841 = vmatmul.mubr.bf16.gmra.mxu0 %v5057_v40 }
 0xa3d   : > { %v5499_v11 = vpop.f32.mrf.mxu1  ;;  %v5692_v36 = vpop.f32.mrf.mxu0 }
 0xa3e   : > { %v5500_v35 = vadd.f32 %v5499_v11, %v9145_v20  ;;  %v5693_v9 = vadd.f32 %v5692_v36, %v9147_v13 }
 0xa3f   : > { %v5501_v56 = vpop.f32.mrf.mxu1  ;;  %v5694_v7 = vpop.f32.mrf.mxu0 }
 0xa40   : > { %5851 = vst [vmem:[%s9157_s2] sm:$0xff] %v5500_v35  ;;  %5853 = vst [vmem:[%s9157_s2 + $0x10] sm:$0xff] %v5693_v9  ;;  %v5502_v21 = vadd.f32 %v5501_v56, %v9150_v24  ;;  %v5695_v43 = vadd.f32 %v5694_v7, %v9152_v50 }
 0xa41   : > { %v5503_v29 = vpop.f32.mrf.mxu1  ;;  %v5696_v16 = vpop.f32.mrf.mxu0 }
 0xa42   : > { %5852 = vst [vmem:[%s9157_s2 + $0x8] sm:$0xff] %v5502_v21  ;;  %5855 = vst.msk [vmem:[%s9157_s2 + $0x18] sm:$0xff] %vm5854_vm1, %v5695_v43  ;;  %v5504_v49 = vadd.f32 %v5503_v29, %v9145_v20  ;;  %v5697_v46 = vadd.f32 %v5696_v16, %v9147_v13 }
 0xa43   : > { %v5505_v48 = vpop.f32.mrf.mxu1  ;;  %v5698_v54 = vpop.f32.mrf.mxu0 }
 0xa44   : > { %5856 = vst [vmem:[%s9157_s2 + $0x20] sm:$0xff] %v5504_v49  ;;  %5858 = vst [vmem:[%s9157_s2 + $0x30] sm:$0xff] %v5697_v46  ;;  %v5506_v42 = vadd.f32 %v5505_v48, %v9150_v24  ;;  %v5699_v15 = vadd.f32 %v5698_v54, %v9152_v50 }
 0xa45   : > { %v5509_v32 = vpop.f32.mrf.mxu1  ;;  %v5702_v1 = vpop.f32.mrf.mxu0 }
 0xa46   : > { %5857 = vst [vmem:[%s9157_s2 + $0x28] sm:$0xff] %v5506_v42  ;;  %5859 = vst.msk [vmem:[%s9157_s2 + $0x38] sm:$0xff] %vm5854_vm1, %v5699_v15  ;;  %v5510_v44 = vadd.f32 %v5509_v32, %v9145_v20  ;;  %v5703_v55 = vadd.f32 %v5702_v1, %v9147_v13 }
 0xa47   : > { %v5511_v19 = vpop.f32.mrf.mxu1  ;;  %v5704_v17 = vpop.f32.mrf.mxu0 }
 0xa48   : > { %5860 = vst [vmem:[%s9157_s2 + $0x40] sm:$0xff] %v5510_v44  ;;  %5862 = vst [vmem:[%s9157_s2 + $0x50] sm:$0xff] %v5703_v55  ;;  %v5512_v52 = vadd.f32 %v5511_v19, %v9150_v24  ;;  %v5705_v22 = vadd.f32 %v5704_v17, %v9152_v50 }
 0xa49   : > { %v5513_v14 = vpop.f32.mrf.mxu1  ;;  %v5706_v5 = vpop.f32.mrf.mxu0 }
 0xa4a   : > { %5861 = vst [vmem:[%s9157_s2 + $0x48] sm:$0xff] %v5512_v52  ;;  %5863 = vst.msk [vmem:[%s9157_s2 + $0x58] sm:$0xff] %vm5854_vm1, %v5705_v22  ;;  %v5514_v62 = vadd.f32 %v5513_v14, %v9145_v20  ;;  %v5707_v25 = vadd.f32 %v5706_v5, %v9147_v13 }
 0xa4b   : > { %v5515_v51 = vpop.f32.mrf.mxu1  ;;  %v5708_v57 = vpop.f32.mrf.mxu0 }
 0xa4c   : > { %5864 = vst [vmem:[%s9157_s2 + $0x60] sm:$0xff] %v5514_v62  ;;  %5866 = vst [vmem:[%s9157_s2 + $0x70] sm:$0xff] %v5707_v25  ;;  %v5516_v58 = vadd.f32 %v5515_v51, %v9150_v24  ;;  %v5709_v63 = vadd.f32 %v5708_v57, %v9152_v50 }
 0xa4d   : > { %v5519_v26 = vpop.f32.mrf.mxu1  ;;  %v5712_v23 = vpop.f32.mrf.mxu0 }
 0xa4e   : > { %5865 = vst [vmem:[%s9157_s2 + $0x68] sm:$0xff] %v5516_v58  ;;  %5867 = vst.msk [vmem:[%s9157_s2 + $0x78] sm:$0xff] %vm5854_vm1, %v5709_v63  ;;  %v5520_v28 = vadd.f32 %v5519_v26, %v9145_v20  ;;  %v5713_v30 = vadd.f32 %v5712_v23, %v9147_v13 }
 0xa4f   : > { %v5521_v31 = vpop.f32.mrf.mxu1  ;;  %v5714_v59 = vpop.f32.mrf.mxu0 }
 0xa50   : > { %5868 = vst [vmem:[%s9157_s2 + $0x80] sm:$0xff] %v5520_v28  ;;  %5870 = vst [vmem:[%s9157_s2 + $0x90] sm:$0xff] %v5713_v30  ;;  %v5522_v60 = vadd.f32 %v5521_v31, %v9150_v24  ;;  %v5715_v61 = vadd.f32 %v5714_v59, %v9152_v50 }
 0xa51   : > { %v5523_v47 = vpop.f32.mrf.mxu1  ;;  %v5716_v38 = vpop.f32.mrf.mxu0 }
 0xa52   : > { %5869 = vst [vmem:[%s9157_s2 + $0x88] sm:$0xff] %v5522_v60  ;;  %5871 = vst.msk [vmem:[%s9157_s2 + $0x98] sm:$0xff] %vm5854_vm1, %v5715_v61  ;;  %v5524_v45 = vadd.f32 %v5523_v47, %v9145_v20  ;;  %v5717_v0 = vadd.f32 %v5716_v38, %v9147_v13 }
 0xa53   : > { %v5525_v2 = vpop.f32.mrf.mxu1  ;;  %v5718_v3 = vpop.f32.mrf.mxu0 }
 0xa54   : > { %5872 = vst [vmem:[%s9157_s2 + $0xa0] sm:$0xff] %v5524_v45  ;;  %5874 = vst [vmem:[%s9157_s2 + $0xb0] sm:$0xff] %v5717_v0  ;;  %v5526_v53 = vadd.f32 %v5525_v2, %v9150_v24  ;;  %v5719_v33 = vadd.f32 %v5718_v3, %v9152_v50 }
 0xa55   : > { %v5529_v4 = vpop.f32.mrf.mxu1  ;;  %v5722_v34 = vpop.f32.mrf.mxu0 }
 0xa56   : > { %5873 = vst [vmem:[%s9157_s2 + $0xa8] sm:$0xff] %v5526_v53  ;;  %5875 = vst.msk [vmem:[%s9157_s2 + $0xb8] sm:$0xff] %vm5854_vm1, %v5719_v33  ;;  %v5530_v27 = vadd.f32 %v5529_v4, %v9145_v20  ;;  %v5723_v41 = vadd.f32 %v5722_v34, %v9147_v13 }
 0xa57   : > { %v5531_v37 = vpop.f32.mrf.mxu1  ;;  %v5724_v6 = vpop.f32.mrf.mxu0 }
 0xa58   : > { %5876 = vst [vmem:[%s9157_s2 + $0xc0] sm:$0xff] %v5530_v27  ;;  %5878 = vst [vmem:[%s9157_s2 + $0xd0] sm:$0xff] %v5723_v41  ;;  %v5532_v39 = vadd.f32 %v5531_v37, %v9150_v24  ;;  %v5725_v40 = vadd.f32 %v5724_v6, %v9152_v50 }
 0xa59   : > { %v5533_v8 = vpop.f32.mrf.mxu1  ;;  %v5726_v10 = vpop.f32.mrf.mxu0 }
 0xa5a   : > { %5877 = vst [vmem:[%s9157_s2 + $0xc8] sm:$0xff] %v5532_v39  ;;  %5879 = vst.msk [vmem:[%s9157_s2 + $0xd8] sm:$0xff] %vm5854_vm1, %v5725_v40  ;;  %v5534_v18 = vadd.f32 %v5533_v8, %v9145_v20  ;;  %v5727_v12 = vadd.f32 %v5726_v10, %v9147_v13 }
 0xa5b   : > { %v5535_v11 = vpop.f32.mrf.mxu1  ;;  %v5728_v36 = vpop.f32.mrf.mxu0 }
 0xa5c   : > { %5880 = vst [vmem:[%s9157_s2 + $0xe0] sm:$0xff] %v5534_v18  ;;  %5882 = vst [vmem:[%s9157_s2 + $0xf0] sm:$0xff] %v5727_v12  ;;  %v5536_v35 = vadd.f32 %v5535_v11, %v9150_v24  ;;  %v5729_v9 = vadd.f32 %v5728_v36, %v9152_v50 }
 0xa5d   : > { %v5539_v56 = vpop.f32.mrf.mxu1  ;;  %v5732_v7 = vpop.f32.mrf.mxu0 }
 0xa5e   : > { %5881 = vst [vmem:[%s9157_s2 + $0xe8] sm:$0xff] %v5536_v35  ;;  %5883 = vst.msk [vmem:[%s9157_s2 + $0xf8] sm:$0xff] %vm5854_vm1, %v5729_v9  ;;  %v5540_v21 = vadd.f32 %v5539_v56, %v9145_v20  ;;  %v5733_v43 = vadd.f32 %v5732_v7, %v9147_v13 }
 0xa5f   : > { %v5541_v29 = vpop.f32.mrf.mxu1  ;;  %v5734_v16 = vpop.f32.mrf.mxu0 }
 0xa60   : > { %5884 = vst [vmem:[%s9157_s2 + $0x100] sm:$0xff] %v5540_v21  ;;  %5886 = vst [vmem:[%s9157_s2 + $0x110] sm:$0xff] %v5733_v43  ;;  %v5542_v49 = vadd.f32 %v5541_v29, %v9150_v24  ;;  %v5735_v46 = vadd.f32 %v5734_v16, %v9152_v50 }
 0xa61   : > { %v5543_v48 = vpop.f32.mrf.mxu1  ;;  %v5736_v54 = vpop.f32.mrf.mxu0 }
 0xa62   : > { %5885 = vst [vmem:[%s9157_s2 + $0x108] sm:$0xff] %v5542_v49  ;;  %5887 = vst.msk [vmem:[%s9157_s2 + $0x118] sm:$0xff] %vm5854_vm1, %v5735_v46  ;;  %v5544_v42 = vadd.f32 %v5543_v48, %v9145_v20  ;;  %v5737_v15 = vadd.f32 %v5736_v54, %v9147_v13 }
 0xa63   : > { %v5545_v32 = vpop.f32.mrf.mxu1  ;;  %v5738_v1 = vpop.f32.mrf.mxu0 }
 0xa64   : > { %5888 = vst [vmem:[%s9157_s2 + $0x120] sm:$0xff] %v5544_v42  ;;  %5890 = vst [vmem:[%s9157_s2 + $0x130] sm:$0xff] %v5737_v15  ;;  %v5546_v44 = vadd.f32 %v5545_v32, %v9150_v24  ;;  %v5739_v55 = vadd.f32 %v5738_v1, %v9152_v50 }
 0xa65   : > { %v5549_v19 = vpop.f32.mrf.mxu1  ;;  %v5742_v17 = vpop.f32.mrf.mxu0 }
 0xa66   : > { %5889 = vst [vmem:[%s9157_s2 + $0x128] sm:$0xff] %v5546_v44  ;;  %5891 = vst.msk [vmem:[%s9157_s2 + $0x138] sm:$0xff] %vm5854_vm1, %v5739_v55  ;;  %v5550_v52 = vadd.f32 %v5549_v19, %v9145_v20  ;;  %v5743_v22 = vadd.f32 %v5742_v17, %v9147_v13 }
 0xa67   : > { %v5551_v14 = vpop.f32.mrf.mxu1  ;;  %v5744_v5 = vpop.f32.mrf.mxu0 }
 0xa68   : > { %5892 = vst [vmem:[%s9157_s2 + $0x140] sm:$0xff] %v5550_v52  ;;  %5894 = vst [vmem:[%s9157_s2 + $0x150] sm:$0xff] %v5743_v22  ;;  %v5552_v62 = vadd.f32 %v5551_v14, %v9150_v24  ;;  %v5745_v25 = vadd.f32 %v5744_v5, %v9152_v50 }
 0xa69   : > { %v5553_v51 = vpop.f32.mrf.mxu1  ;;  %v5746_v57 = vpop.f32.mrf.mxu0 }
 0xa6a   : > { %5893 = vst [vmem:[%s9157_s2 + $0x148] sm:$0xff] %v5552_v62  ;;  %5895 = vst.msk [vmem:[%s9157_s2 + $0x158] sm:$0xff] %vm5854_vm1, %v5745_v25  ;;  %v5554_v58 = vadd.f32 %v5553_v51, %v9145_v20  ;;  %v5747_v63 = vadd.f32 %v5746_v57, %v9147_v13 }
 0xa6b   : > { %v5555_v26 = vpop.f32.mrf.mxu1  ;;  %v5748_v23 = vpop.f32.mrf.mxu0 }
 0xa6c   : > { %5896 = vst [vmem:[%s9157_s2 + $0x160] sm:$0xff] %v5554_v58  ;;  %5898 = vst [vmem:[%s9157_s2 + $0x170] sm:$0xff] %v5747_v63  ;;  %v5556_v28 = vadd.f32 %v5555_v26, %v9150_v24  ;;  %v5749_v30 = vadd.f32 %v5748_v23, %v9152_v50 }
 0xa6d   : > { %v5559_v31 = vpop.f32.mrf.mxu1  ;;  %v5752_v59 = vpop.f32.mrf.mxu0 }
 0xa6e   : > { %5897 = vst [vmem:[%s9157_s2 + $0x168] sm:$0xff] %v5556_v28  ;;  %5899 = vst.msk [vmem:[%s9157_s2 + $0x178] sm:$0xff] %vm5854_vm1, %v5749_v30  ;;  %v5560_v60 = vadd.f32 %v5559_v31, %v9145_v20  ;;  %v5753_v61 = vadd.f32 %v5752_v59, %v9147_v13 }
 0xa6f   : > { %v5561_v47 = vpop.f32.mrf.mxu1  ;;  %v5754_v38 = vpop.f32.mrf.mxu0 }
 0xa70   : > { %5900 = vst [vmem:[%s9157_s2 + $0x180] sm:$0xff] %v5560_v60  ;;  %5902 = vst [vmem:[%s9157_s2 + $0x190] sm:$0xff] %v5753_v61  ;;  %v5562_v45 = vadd.f32 %v5561_v47, %v9150_v24  ;;  %v5755_v0 = vadd.f32 %v5754_v38, %v9152_v50 }
 0xa71   : > { %v5563_v2 = vpop.f32.mrf.mxu1  ;;  %v5756_v3 = vpop.f32.mrf.mxu0 }
 0xa72   : > { %5901 = vst [vmem:[%s9157_s2 + $0x188] sm:$0xff] %v5562_v45  ;;  %5903 = vst.msk [vmem:[%s9157_s2 + $0x198] sm:$0xff] %vm5854_vm1, %v5755_v0  ;;  %v5564_v53 = vadd.f32 %v5563_v2, %v9145_v20  ;;  %v5757_v33 = vadd.f32 %v5756_v3, %v9147_v13 }
 0xa73   : > { %v5565_v4 = vpop.f32.mrf.mxu1  ;;  %v5758_v34 = vpop.f32.mrf.mxu0 }
 0xa74   : > { %5904 = vst [vmem:[%s9157_s2 + $0x1a0] sm:$0xff] %v5564_v53  ;;  %5906 = vst [vmem:[%s9157_s2 + $0x1b0] sm:$0xff] %v5757_v33  ;;  %v5566_v27 = vadd.f32 %v5565_v4, %v9150_v24  ;;  %v5759_v41 = vadd.f32 %v5758_v34, %v9152_v50 }
 0xa75   : > { %v5569_v37 = vpop.f32.mrf.mxu1  ;;  %v5762_v6 = vpop.f32.mrf.mxu0 }
 0xa76   : > { %5905 = vst [vmem:[%s9157_s2 + $0x1a8] sm:$0xff] %v5566_v27  ;;  %5907 = vst.msk [vmem:[%s9157_s2 + $0x1b8] sm:$0xff] %vm5854_vm1, %v5759_v41  ;;  %v5570_v39 = vadd.f32 %v5569_v37, %v9145_v20  ;;  %v5763_v40 = vadd.f32 %v5762_v6, %v9147_v13 }
 0xa77   : > { %v5571_v8 = vpop.f32.mrf.mxu1  ;;  %v5764_v10 = vpop.f32.mrf.mxu0 }
 0xa78   : > { %5908 = vst [vmem:[%s9157_s2 + $0x1c0] sm:$0xff] %v5570_v39  ;;  %5910 = vst [vmem:[%s9157_s2 + $0x1d0] sm:$0xff] %v5763_v40  ;;  %v5572_v18 = vadd.f32 %v5571_v8, %v9150_v24  ;;  %v5765_v12 = vadd.f32 %v5764_v10, %v9152_v50 }
 0xa79   : > { %v5573_v11 = vpop.f32.mrf.mxu1  ;;  %v5766_v36 = vpop.f32.mrf.mxu0 }
 0xa7a   : > { %5909 = vst [vmem:[%s9157_s2 + $0x1c8] sm:$0xff] %v5572_v18  ;;  %5911 = vst.msk [vmem:[%s9157_s2 + $0x1d8] sm:$0xff] %vm5854_vm1, %v5765_v12  ;;  %v5574_v35 = vadd.f32 %v5573_v11, %v9145_v20  ;;  %v5767_v9 = vadd.f32 %v5766_v36, %v9147_v13 }
 0xa7b   : > { %v5575_v56 = vpop.f32.mrf.mxu1  ;;  %v5768_v7 = vpop.f32.mrf.mxu0 }
 0xa7c   : > { %5912 = vst [vmem:[%s9157_s2 + $0x1e0] sm:$0xff] %v5574_v35  ;;  %5914 = vst [vmem:[%s9157_s2 + $0x1f0] sm:$0xff] %v5767_v9  ;;  %v5576_v21 = vadd.f32 %v5575_v56, %v9150_v24  ;;  %v5769_v43 = vadd.f32 %v5768_v7, %v9152_v50 }
 0xa7d   : > { %v5579_v29 = vpop.f32.mrf.mxu1  ;;  %v5772_v16 = vpop.f32.mrf.mxu0 }
 0xa7e   : > { %5913 = vst [vmem:[%s9157_s2 + $0x1e8] sm:$0xff] %v5576_v21  ;;  %5915 = vst.msk [vmem:[%s9157_s2 + $0x1f8] sm:$0xff] %vm5854_vm1, %v5769_v43  ;;  %v5580_v49 = vadd.f32 %v5579_v29, %v9145_v20  ;;  %v5773_v46 = vadd.f32 %v5772_v16, %v9147_v13 }
 0xa7f   : > { %v5581_v48 = vpop.f32.mrf.mxu1  ;;  %v5774_v54 = vpop.f32.mrf.mxu0 }
 0xa80   : > { %5916 = vst [vmem:[%s9157_s2 + $0x200] sm:$0xff] %v5580_v49  ;;  %5918 = vst [vmem:[%s9157_s2 + $0x210] sm:$0xff] %v5773_v46  ;;  %v5582_v42 = vadd.f32 %v5581_v48, %v9150_v24  ;;  %v5775_v15 = vadd.f32 %v5774_v54, %v9152_v50 }
 0xa81   : > { %v5583_v32 = vpop.f32.mrf.mxu1  ;;  %v5776_v1 = vpop.f32.mrf.mxu0 }
 0xa82   : > { %5917 = vst [vmem:[%s9157_s2 + $0x208] sm:$0xff] %v5582_v42  ;;  %5919 = vst.msk [vmem:[%s9157_s2 + $0x218] sm:$0xff] %vm5854_vm1, %v5775_v15  ;;  %v5584_v44 = vadd.f32 %v5583_v32, %v9145_v20  ;;  %v5777_v55 = vadd.f32 %v5776_v1, %v9147_v13 }
 0xa83   : > { %v5585_v19 = vpop.f32.mrf.mxu1  ;;  %v5778_v17 = vpop.f32.mrf.mxu0 }
 0xa84   : > { %5920 = vst [vmem:[%s9157_s2 + $0x220] sm:$0xff] %v5584_v44  ;;  %5922 = vst [vmem:[%s9157_s2 + $0x230] sm:$0xff] %v5777_v55  ;;  %v5586_v52 = vadd.f32 %v5585_v19, %v9150_v24  ;;  %v5779_v22 = vadd.f32 %v5778_v17, %v9152_v50 }
 0xa85   : > { %v5589_v14 = vpop.f32.mrf.mxu1  ;;  %v5782_v5 = vpop.f32.mrf.mxu0 }
 0xa86   : > { %5921 = vst [vmem:[%s9157_s2 + $0x228] sm:$0xff] %v5586_v52  ;;  %5923 = vst.msk [vmem:[%s9157_s2 + $0x238] sm:$0xff] %vm5854_vm1, %v5779_v22  ;;  %v5590_v62 = vadd.f32 %v5589_v14, %v9145_v20  ;;  %v5783_v25 = vadd.f32 %v5782_v5, %v9147_v13 }
 0xa87   : > { %v5591_v51 = vpop.f32.mrf.mxu1  ;;  %v5784_v57 = vpop.f32.mrf.mxu0 }
 0xa88   : > { %5924 = vst [vmem:[%s9157_s2 + $0x240] sm:$0xff] %v5590_v62  ;;  %5926 = vst [vmem:[%s9157_s2 + $0x250] sm:$0xff] %v5783_v25  ;;  %v5592_v58 = vadd.f32 %v5591_v51, %v9150_v24  ;;  %v5785_v63 = vadd.f32 %v5784_v57, %v9152_v50 }
 0xa89   : > { %v5593_v26 = vpop.f32.mrf.mxu1  ;;  %v5786_v23 = vpop.f32.mrf.mxu0 }
 0xa8a   : > { %5925 = vst [vmem:[%s9157_s2 + $0x248] sm:$0xff] %v5592_v58  ;;  %5927 = vst.msk [vmem:[%s9157_s2 + $0x258] sm:$0xff] %vm5854_vm1, %v5785_v63  ;;  %v5594_v28 = vadd.f32 %v5593_v26, %v9145_v20  ;;  %v5787_v30 = vadd.f32 %v5786_v23, %v9147_v13 }
 0xa8b   : > { %v5595_v31 = vpop.f32.mrf.mxu1  ;;  %v5788_v59 = vpop.f32.mrf.mxu0 }
 0xa8c   : > { %5928 = vst [vmem:[%s9157_s2 + $0x260] sm:$0xff] %v5594_v28  ;;  %5930 = vst [vmem:[%s9157_s2 + $0x270] sm:$0xff] %v5787_v30  ;;  %v5596_v60 = vadd.f32 %v5595_v31, %v9150_v24  ;;  %v5789_v61 = vadd.f32 %v5788_v59, %v9152_v50 }
 0xa8d   : > { %v5599_v47 = vpop.f32.mrf.mxu1  ;;  %v5792_v38 = vpop.f32.mrf.mxu0 }
 0xa8e   : > { %5929 = vst [vmem:[%s9157_s2 + $0x268] sm:$0xff] %v5596_v60  ;;  %5931 = vst.msk [vmem:[%s9157_s2 + $0x278] sm:$0xff] %vm5854_vm1, %v5789_v61  ;;  %v5600_v45 = vadd.f32 %v5599_v47, %v9145_v20  ;;  %v5793_v0 = vadd.f32 %v5792_v38, %v9147_v13 }
 0xa8f   : > { %v5601_v2 = vpop.f32.mrf.mxu1  ;;  %v5794_v3 = vpop.f32.mrf.mxu0 }
 0xa90   : > { %5932 = vst [vmem:[%s9157_s2 + $0x280] sm:$0xff] %v5600_v45  ;;  %5934 = vst [vmem:[%s9157_s2 + $0x290] sm:$0xff] %v5793_v0  ;;  %v5602_v53 = vadd.f32 %v5601_v2, %v9150_v24  ;;  %v5795_v33 = vadd.f32 %v5794_v3, %v9152_v50 }
 0xa91   : > { %v5603_v4 = vpop.f32.mrf.mxu1  ;;  %v5796_v34 = vpop.f32.mrf.mxu0 }
 0xa92   : > { %5933 = vst [vmem:[%s9157_s2 + $0x288] sm:$0xff] %v5602_v53  ;;  %5935 = vst.msk [vmem:[%s9157_s2 + $0x298] sm:$0xff] %vm5854_vm1, %v5795_v33  ;;  %v5604_v27 = vadd.f32 %v5603_v4, %v9145_v20  ;;  %v5797_v41 = vadd.f32 %v5796_v34, %v9147_v13 }
 0xa93   : > { %v5605_v37 = vpop.f32.mrf.mxu1  ;;  %v5798_v6 = vpop.f32.mrf.mxu0 }
 0xa94   : > { %5936 = vst [vmem:[%s9157_s2 + $0x2a0] sm:$0xff] %v5604_v27  ;;  %5938 = vst [vmem:[%s9157_s2 + $0x2b0] sm:$0xff] %v5797_v41  ;;  %v5606_v39 = vadd.f32 %v5605_v37, %v9150_v24  ;;  %v5799_v40 = vadd.f32 %v5798_v6, %v9152_v50 }
 0xa95   : > { %v5609_v8 = vpop.f32.mrf.mxu1  ;;  %v5802_v10 = vpop.f32.mrf.mxu0 }
 0xa96   : > { %5937 = vst [vmem:[%s9157_s2 + $0x2a8] sm:$0xff] %v5606_v39  ;;  %5939 = vst.msk [vmem:[%s9157_s2 + $0x2b8] sm:$0xff] %vm5854_vm1, %v5799_v40  ;;  %v5610_v18 = vadd.f32 %v5609_v8, %v9145_v20  ;;  %v5803_v12 = vadd.f32 %v5802_v10, %v9147_v13 }
 0xa97   : > { %v5611_v11 = vpop.f32.mrf.mxu1  ;;  %v5804_v36 = vpop.f32.mrf.mxu0 }
 0xa98   : > { %5940 = vst [vmem:[%s9157_s2 + $0x2c0] sm:$0xff] %v5610_v18  ;;  %5942 = vst [vmem:[%s9157_s2 + $0x2d0] sm:$0xff] %v5803_v12  ;;  %v5612_v35 = vadd.f32 %v5611_v11, %v9150_v24  ;;  %v5805_v9 = vadd.f32 %v5804_v36, %v9152_v50 }
 0xa99   : > { %v5613_v56 = vpop.f32.mrf.mxu1  ;;  %v5806_v7 = vpop.f32.mrf.mxu0 }
 0xa9a   : > { %5941 = vst [vmem:[%s9157_s2 + $0x2c8] sm:$0xff] %v5612_v35  ;;  %5943 = vst.msk [vmem:[%s9157_s2 + $0x2d8] sm:$0xff] %vm5854_vm1, %v5805_v9  ;;  %v5614_v21 = vadd.f32 %v5613_v56, %v9145_v20  ;;  %v5807_v43 = vadd.f32 %v5806_v7, %v9147_v13 }
 0xa9b   : > { %v5615_v29 = vpop.f32.mrf.mxu1  ;;  %v5808_v16 = vpop.f32.mrf.mxu0 }
 0xa9c   : > { %5944 = vst [vmem:[%s9157_s2 + $0x2e0] sm:$0xff] %v5614_v21  ;;  %5946 = vst [vmem:[%s9157_s2 + $0x2f0] sm:$0xff] %v5807_v43  ;;  %v5616_v49 = vadd.f32 %v5615_v29, %v9150_v24  ;;  %v5809_v46 = vadd.f32 %v5808_v16, %v9152_v50 }
 0xa9d   : > { %v5619_v48 = vpop.f32.mrf.mxu1  ;;  %v5812_v54 = vpop.f32.mrf.mxu0 }
 0xa9e   : > { %5945 = vst [vmem:[%s9157_s2 + $0x2e8] sm:$0xff] %v5616_v49  ;;  %5947 = vst.msk [vmem:[%s9157_s2 + $0x2f8] sm:$0xff] %vm5854_vm1, %v5809_v46  ;;  %v5620_v42 = vadd.f32 %v5619_v48, %v9145_v20  ;;  %v5813_v15 = vadd.f32 %v5812_v54, %v9147_v13 }
 0xa9f   : > { %v5621_v32 = vpop.f32.mrf.mxu1  ;;  %v5814_v1 = vpop.f32.mrf.mxu0 }
 0xaa0   : > { %5948 = vst [vmem:[%s9157_s2 + $0x300] sm:$0xff] %v5620_v42  ;;  %5950 = vst [vmem:[%s9157_s2 + $0x310] sm:$0xff] %v5813_v15  ;;  %v5622_v44 = vadd.f32 %v5621_v32, %v9150_v24  ;;  %v5815_v55 = vadd.f32 %v5814_v1, %v9152_v50 }
 0xaa1   : > { %v5623_v19 = vpop.f32.mrf.mxu1  ;;  %v5816_v17 = vpop.f32.mrf.mxu0 }
 0xaa2   : > { %5949 = vst [vmem:[%s9157_s2 + $0x308] sm:$0xff] %v5622_v44  ;;  %5951 = vst.msk [vmem:[%s9157_s2 + $0x318] sm:$0xff] %vm5854_vm1, %v5815_v55  ;;  %v5624_v52 = vadd.f32 %v5623_v19, %v9145_v20  ;;  %v5817_v22 = vadd.f32 %v5816_v17, %v9147_v13 }
 0xaa3   : > { %v5625_v14 = vpop.f32.mrf.mxu1  ;;  %v5818_v5 = vpop.f32.mrf.mxu0 }
 0xaa4   : > { %5952 = vst [vmem:[%s9157_s2 + $0x320] sm:$0xff] %v5624_v52  ;;  %5954 = vst [vmem:[%s9157_s2 + $0x330] sm:$0xff] %v5817_v22  ;;  %v5626_v62 = vadd.f32 %v5625_v14, %v9150_v24  ;;  %v5819_v25 = vadd.f32 %v5818_v5, %v9152_v50 }
 0xaa5   : > { %v5629_v51 = vpop.f32.mrf.mxu1  ;;  %v5822_v57 = vpop.f32.mrf.mxu0 }
 0xaa6   : > { %5953 = vst [vmem:[%s9157_s2 + $0x328] sm:$0xff] %v5626_v62  ;;  %5955 = vst.msk [vmem:[%s9157_s2 + $0x338] sm:$0xff] %vm5854_vm1, %v5819_v25  ;;  %v5630_v58 = vadd.f32 %v5629_v51, %v9145_v20  ;;  %v5823_v63 = vadd.f32 %v5822_v57, %v9147_v13 }
 0xaa7   : > { %v5631_v26 = vpop.f32.mrf.mxu1  ;;  %v5824_v23 = vpop.f32.mrf.mxu0 }
 0xaa8   : > { %5956 = vst [vmem:[%s9157_s2 + $0x340] sm:$0xff] %v5630_v58  ;;  %5958 = vst [vmem:[%s9157_s2 + $0x350] sm:$0xff] %v5823_v63  ;;  %v5632_v28 = vadd.f32 %v5631_v26, %v9150_v24  ;;  %v5825_v30 = vadd.f32 %v5824_v23, %v9152_v50 }
 0xaa9   : > { %v5633_v31 = vpop.f32.mrf.mxu1  ;;  %v5826_v59 = vpop.f32.mrf.mxu0 }
 0xaaa   : > { %5957 = vst [vmem:[%s9157_s2 + $0x348] sm:$0xff] %v5632_v28  ;;  %5959 = vst.msk [vmem:[%s9157_s2 + $0x358] sm:$0xff] %vm5854_vm1, %v5825_v30  ;;  %v5634_v60 = vadd.f32 %v5633_v31, %v9145_v20  ;;  %v5827_v61 = vadd.f32 %v5826_v59, %v9147_v13 }
 0xaab   : > { %v5635_v47 = vpop.f32.mrf.mxu1  ;;  %v5828_v38 = vpop.f32.mrf.mxu0 }
 0xaac   : > { %5960 = vst [vmem:[%s9157_s2 + $0x360] sm:$0xff] %v5634_v60  ;;  %5962 = vst [vmem:[%s9157_s2 + $0x370] sm:$0xff] %v5827_v61  ;;  %v5636_v45 = vadd.f32 %v5635_v47, %v9150_v24  ;;  %v5829_v0 = vadd.f32 %v5828_v38, %v9152_v50 }
 0xaad   : > { %v5639_v2 = vpop.f32.mrf.mxu1  ;;  %v5832_v3 = vpop.f32.mrf.mxu0 }
 0xaae   : > { %5961 = vst [vmem:[%s9157_s2 + $0x368] sm:$0xff] %v5636_v45  ;;  %5963 = vst.msk [vmem:[%s9157_s2 + $0x378] sm:$0xff] %vm5854_vm1, %v5829_v0  ;;  %v5640_v53 = vadd.f32 %v5639_v2, %v9145_v20  ;;  %v5833_v33 = vadd.f32 %v5832_v3, %v9147_v13 }
 0xaaf   : > { %v5641_v4 = vpop.f32.mrf.mxu1  ;;  %v5834_v34 = vpop.f32.mrf.mxu0 }
 0xab0   : > { %5964 = vst [vmem:[%s9157_s2 + $0x380] sm:$0xff] %v5640_v53  ;;  %5966 = vst [vmem:[%s9157_s2 + $0x390] sm:$0xff] %v5833_v33  ;;  %v5642_v27 = vadd.f32 %v5641_v4, %v9150_v24  ;;  %v5835_v41 = vadd.f32 %v5834_v34, %v9152_v50 }
 0xab1   : > { %v5643_v37 = vpop.f32.mrf.mxu1  ;;  %v5836_v6 = vpop.f32.mrf.mxu0 }
 0xab2   : > { %5965 = vst [vmem:[%s9157_s2 + $0x388] sm:$0xff] %v5642_v27  ;;  %5967 = vst.msk [vmem:[%s9157_s2 + $0x398] sm:$0xff] %vm5854_vm1, %v5835_v41  ;;  %v5644_v39 = vadd.f32 %v5643_v37, %v9145_v20  ;;  %v5837_v40 = vadd.f32 %v5836_v6, %v9147_v13 }
 0xab3   : > { %v5645_v8 = vpop.f32.mrf.mxu1  ;;  %v5838_v10 = vpop.f32.mrf.mxu0 }
 0xab4   : > { %5968 = vst [vmem:[%s9157_s2 + $0x3a0] sm:$0xff] %v5644_v39  ;;  %5970 = vst [vmem:[%s9157_s2 + $0x3b0] sm:$0xff] %v5837_v40  ;;  %v5646_v18 = vadd.f32 %v5645_v8, %v9150_v24  ;;  %v5839_v12 = vadd.f32 %v5838_v10, %v9152_v50 }
 0xab5   : > { %v5649_v11 = vpop.f32.mrf.mxu1  ;;  %v5842_v36 = vpop.f32.mrf.mxu0 }
 0xab6   : > { %5969 = vst [vmem:[%s9157_s2 + $0x3a8] sm:$0xff] %v5646_v18  ;;  %5971 = vst.msk [vmem:[%s9157_s2 + $0x3b8] sm:$0xff] %vm5854_vm1, %v5839_v12  ;;  %v5650_v35 = vadd.f32 %v5649_v11, %v9145_v20  ;;  %v5843_v9 = vadd.f32 %v5842_v36, %v9147_v13 }
 0xab7   : > { %v5651_v56 = vpop.f32.mrf.mxu1  ;;  %v5844_v7 = vpop.f32.mrf.mxu0 }
 0xab8   : > { %5972 = vst [vmem:[%s9157_s2 + $0x3c0] sm:$0xff] %v5650_v35  ;;  %5974 = vst [vmem:[%s9157_s2 + $0x3d0] sm:$0xff] %v5843_v9  ;;  %v5652_v21 = vadd.f32 %v5651_v56, %v9150_v24  ;;  %v5845_v43 = vadd.f32 %v5844_v7, %v9152_v50 }
 0xab9   : > { %v5653_v29 = vpop.f32.mrf.mxu1  ;;  %v5846_v16 = vpop.f32.mrf.mxu0 }
 0xaba   : > { %5973 = vst [vmem:[%s9157_s2 + $0x3c8] sm:$0xff] %v5652_v21  ;;  %5975 = vst.msk [vmem:[%s9157_s2 + $0x3d8] sm:$0xff] %vm5854_vm1, %v5845_v43  ;;  %v5654_v49 = vadd.f32 %v5653_v29, %v9145_v20  ;;  %v5847_v46 = vadd.f32 %v5846_v16, %v9147_v13 }
 0xabb   : > { %v5655_v48 = vpop.f32.mrf.mxu1  ;;  %v5848_v54 = vpop.f32.mrf.mxu0 }
 0xabc   : > { %5976 = vst [vmem:[%s9157_s2 + $0x3e0] sm:$0xff] %v5654_v49  ;;  %5978 = vst [vmem:[%s9157_s2 + $0x3f0] sm:$0xff] %v5847_v46  ;;  %v5656_v42 = vadd.f32 %v5655_v48, %v9150_v24  ;;  %v5849_v15 = vadd.f32 %v5848_v54, %v9152_v50 }
 0xabe   : > { %5977 = vst [vmem:[%s9157_s2 + $0x3e8] sm:$0xff] %v5656_v42  ;;  %5979 = vst.msk [vmem:[%s9157_s2 + $0x3f8] sm:$0xff] %vm5854_vm1, %v5849_v15 }
 0xabf PF: > { %s37_s27 = sadd.s32 1, %s7513_s27  }
 0xac0   : > { %p34_p4 = scmp.ge.s32.totalorder %s37_s27, 4  }
 0xac2   :  { %36 = sbr.rel (!%p34_p4) target bundleno = 12 (0xc), region = 162 }

</bundles_post_ra>
